<compile_context>
chip_gen: v6e
topology: v6e:2x2x1
jax: 0.10.0
libtpu: 0.0.40
codegen_flags: <defaults>
</compile_context>

<pallas_src>
import jax
import jax.numpy as jnp
from jax.experimental import pallas as pl
from jax.experimental.pallas import tpu as pltpu


# ----------------------------- fused kernel ----------------------------------


def _fused_resblock_kernel(rs_ref, x_ref, w1_ref, b1_ref, w2_ref, b2_ref,
                           o_ref, xp_ref, yp_ref):
    # rs_ref : (1,)            res_scale, SMEM scalar
    # x_ref  : (1, H, W, C)    one batch element, VMEM
    # w*_ref : (9*C, C)        tap-major im2col weights (row = tap*C + cin)
    # b*_ref : (1, C)
    # o_ref  : (1, H, W, C)
    # xp_ref, yp_ref : VMEM scratch (H+2, W+2, C) f32 halo buffers
    H, W, C = o_ref.shape[1], o_ref.shape[2], o_ref.shape[3]
    HW = H * W

    x = x_ref[0].astype(jnp.float32)                       # (H, W, C)

    def conv3x3(pad_ref, interior, w_ref, b_ref):
        # Zero halo buffer, place the interior, build the (H*W, 9C) im2col
        # matrix and run a single MXU matmul with K = 9C.
        pad_ref[...] = jnp.zeros_like(pad_ref)
        pad_ref[1:H + 1, 1:W + 1, :] = interior
        patches = jnp.concatenate(
            [pad_ref[dh:dh + H, dw:dw + W, :].reshape(HW, C)
             for dh in range(3) for dw in range(3)],
            axis=-1)                                        # (H*W, 9C)
        acc = jnp.dot(patches, w_ref[...],
                      preferred_element_type=jnp.float32)   # (H*W, C)
        return acc + b_ref[...]                             # bias broadcast

    # conv1 + bias + ReLU (intermediate stays in VMEM)
    y = jnp.maximum(conv3x3(xp_ref, x, w1_ref, b1_ref), 0.0)
    # conv2 + bias
    z = conv3x3(yp_ref, y.reshape(H, W, C), w2_ref, b2_ref)

    # residual add with SMEM res_scale
    out = x.reshape(HW, C) + z * rs_ref[0]
    o_ref[0] = out.reshape(H, W, C).astype(o_ref.dtype)


# ----------------------------- wrapper ----------------------------------------


def residual_block_no_bn(x_nchw, w1_hwio, b1, w2_hwio, b2, res_scale=1.0):
    """x_nchw: [N, C, H, W] (PyTorch convention). Weights HWIO: [3,3,Cin,Cout]."""
    x = jnp.transpose(x_nchw, (0, 2, 3, 1))                 # NCHW -> NHWC
    N, H, W, C = x.shape

    w1_2d = w1_hwio.reshape(9 * C, C)                       # tap-major im2col slab
    w2_2d = w2_hwio.reshape(9 * C, C)
    rs = jnp.asarray(res_scale, jnp.float32).reshape(1)

    out = pl.pallas_call(
        _fused_resblock_kernel,
        out_shape=jax.ShapeDtypeStruct((N, H, W, C), x.dtype),
        grid=(N,),
        in_specs=[
            pl.BlockSpec(memory_space=pltpu.MemorySpace.SMEM),     # res_scale
            pl.BlockSpec((1, H, W, C), lambda n: (n, 0, 0, 0)),    # x
            pl.BlockSpec((9 * C, C), lambda n: (0, 0)),            # w1 (resident)
            pl.BlockSpec((1, C), lambda n: (0, 0)),                # b1
            pl.BlockSpec((9 * C, C), lambda n: (0, 0)),            # w2 (resident)
            pl.BlockSpec((1, C), lambda n: (0, 0)),                # b2
        ],
        out_specs=pl.BlockSpec((1, H, W, C), lambda n: (n, 0, 0, 0)),
        scratch_shapes=[
            pltpu.VMEM((H + 2, W + 2, C), jnp.float32),            # padded x tile
            pltpu.VMEM((H + 2, W + 2, C), jnp.float32),            # padded relu(conv1)
        ],
        compiler_params=pltpu.CompilerParams(
            dimension_semantics=("parallel",)),
    )(rs, x, w1_2d, b1.reshape(1, C), w2_2d, b2.reshape(1, C))

    return jnp.transpose(out, (0, 3, 1, 2))                 # NHWC -> NCHW


# ----------------------------- reference (pure JAX) ----------------------------


def _reference(x_nchw, w1_hwio, b1, w2_hwio, b2, res_scale):
    x = jnp.transpose(x_nchw, (0, 2, 3, 1))
    dn = ("NHWC", "HWIO", "NHWC")
    y = jax.lax.conv_general_dilated(x, w1_hwio, (1, 1), "SAME",
                                     dimension_numbers=dn) + b1
    y = jnp.maximum(y, 0.0)
    z = jax.lax.conv_general_dilated(y, w2_hwio, (1, 1), "SAME",
                                     dimension_numbers=dn) + b2
    out = x + z * res_scale
    return jnp.transpose(out, (0, 3, 1, 2))


# ----------------------------- main --------------------------------------------


if __name__ == "__main__":
    num_feat = 4
    res_scale = 1.0
    N, C, H, W = 2, num_feat, 16, 16

    key = jax.random.PRNGKey(0)
    kx, kw1, kw2 = jax.random.split(key, 3)

    # default_init_weights: kaiming_normal_ (fan_in, gain=sqrt(2)) scaled by 0.1;
    # bias filled with 0.  (Deterministic synthetic init; no checkpoint load.)
    fan_in = C * 3 * 3
    std = (2.0 / fan_in) ** 0.5 * 0.1
    w1 = jax.random.normal(kw1, (3, 3, C, C), jnp.float32) * std   # HWIO
    w2 = jax.random.normal(kw2, (3, 3, C, C), jnp.float32) * std   # HWIO
    b1 = jnp.zeros((C,), jnp.float32)
    b2 = jnp.zeros((C,), jnp.float32)

    x = jax.random.normal(kx, (N, C, H, W), jnp.float32)           # NCHW input

    out = residual_block_no_bn(x, w1, b1, w2, b2, res_scale)
    out = jax.block_until_ready(out)

    ref = _reference(x, w1, b1, w2, b2, res_scale)
    assert out.shape == (N, C, H, W)
    assert jnp.allclose(out, ref, atol=1e-5, rtol=1e-5), "mismatch vs reference"

    print("KERNEL_OK")
</pallas_src>

<mosaic_0001>
module attributes {stable_mosaic.version = 11 : i64} {
  func.func @_fused_resblock_kernel(%arg0: i32, %arg1: memref<1xf32, #tpu.memory_space<smem>>, %arg2: memref<1x16x16x4xf32, #tpu.memory_space<vmem>>, %arg3: memref<36x4xf32, #tpu.memory_space<vmem>>, %arg4: memref<1x4xf32, #tpu.memory_space<vmem>>, %arg5: memref<36x4xf32, #tpu.memory_space<vmem>>, %arg6: memref<1x4xf32, #tpu.memory_space<vmem>>, %arg7: memref<1x16x16x4xf32, #tpu.memory_space<vmem>>, %arg8: memref<18x18x4xf32, #tpu.memory_space<vmem>>, %arg9: memref<18x18x4xf32, #tpu.memory_space<vmem>>) attributes {dimension_semantics = [#tpu.dimension_semantics<parallel>], iteration_bounds = array<i64: 2>, scalar_prefetch = 0 : i64, scratch_operands = 2 : i64, tpu.core_type = #tpu.core_type<tc>, window_params = [{transform_indices = @transform_0, window_bounds = array<i64: 1>}, {transform_indices = @transform_1, window_bounds = array<i64: 1, 16, 16, 4>}, {pipeline_mode = #tpu.pipeline_mode<synchronous>, transform_indices = @transform_2, window_bounds = array<i64: 36, 4>}, {pipeline_mode = #tpu.pipeline_mode<synchronous>, transform_indices = @transform_3, window_bounds = array<i64: 1, 4>}, {pipeline_mode = #tpu.pipeline_mode<synchronous>, transform_indices = @transform_4, window_bounds = array<i64: 36, 4>}, {pipeline_mode = #tpu.pipeline_mode<synchronous>, transform_indices = @transform_5, window_bounds = array<i64: 1, 4>}, {transform_indices = @transform_6, window_bounds = array<i64: 1, 16, 16, 4>}]} {
    %c0 = arith.constant 0 : index
    %c0_0 = arith.constant 0 : index
    %c0_1 = arith.constant 0 : index
    %c0_2 = arith.constant 0 : index
    %0 = vector.load %arg2[%c0, %c0_0, %c0_1, %c0_2] : memref<1x16x16x4xf32, #tpu.memory_space<vmem>>, vector<1x16x16x4xf32>
    %1 = vector.shape_cast %0 : vector<1x16x16x4xf32> to vector<16x16x4xf32>
    %cst = arith.constant 0.000000e+00 : f32
    %2 = vector.broadcast %cst : f32 to vector<18x18x4xf32>
    %c0_3 = arith.constant 0 : index
    %c0_4 = arith.constant 0 : index
    %c0_5 = arith.constant 0 : index
    %3 = vector.load %arg8[%c0_3, %c0_4, %c0_5] : memref<18x18x4xf32, #tpu.memory_space<vmem>>, vector<18x18x4xf32>
    tpu.vector_store %arg8[%c0_3, %c0_4, %c0_5], %2 {strides = array<i32>} : memref<18x18x4xf32, #tpu.memory_space<vmem>>, vector<18x18x4xf32>,
    %c1 = arith.constant 1 : index
    %c1_6 = arith.constant 1 : index
    %c0_7 = arith.constant 0 : index
    %4 = vector.load %arg8[%c1, %c1_6, %c0_7] : memref<18x18x4xf32, #tpu.memory_space<vmem>>, vector<16x16x4xf32>
    tpu.vector_store %arg8[%c1, %c1_6, %c0_7], %1 {strides = array<i32>} : memref<18x18x4xf32, #tpu.memory_space<vmem>>, vector<16x16x4xf32>,
    %c0_8 = arith.constant 0 : index
    %c0_9 = arith.constant 0 : index
    %c0_10 = arith.constant 0 : index
    %5 = vector.load %arg8[%c0_8, %c0_9, %c0_10] : memref<18x18x4xf32, #tpu.memory_space<vmem>>, vector<16x16x4xf32>
    %6 = vector.shape_cast %5 : vector<16x16x4xf32> to vector<256x4xf32>
    %c0_11 = arith.constant 0 : index
    %c1_12 = arith.constant 1 : index
    %c0_13 = arith.constant 0 : index
    %7 = vector.load %arg8[%c0_11, %c1_12, %c0_13] : memref<18x18x4xf32, #tpu.memory_space<vmem>>, vector<16x16x4xf32>
    %8 = vector.shape_cast %7 : vector<16x16x4xf32> to vector<256x4xf32>
    %c0_14 = arith.constant 0 : index
    %c2 = arith.constant 2 : index
    %c0_15 = arith.constant 0 : index
    %9 = vector.load %arg8[%c0_14, %c2, %c0_15] : memref<18x18x4xf32, #tpu.memory_space<vmem>>, vector<16x16x4xf32>
    %10 = vector.shape_cast %9 : vector<16x16x4xf32> to vector<256x4xf32>
    %c1_16 = arith.constant 1 : index
    %c0_17 = arith.constant 0 : index
    %c0_18 = arith.constant 0 : index
    %11 = vector.load %arg8[%c1_16, %c0_17, %c0_18] : memref<18x18x4xf32, #tpu.memory_space<vmem>>, vector<16x16x4xf32>
    %12 = vector.shape_cast %11 : vector<16x16x4xf32> to vector<256x4xf32>
    %c1_19 = arith.constant 1 : index
    %c1_20 = arith.constant 1 : index
    %c0_21 = arith.constant 0 : index
    %13 = vector.load %arg8[%c1_19, %c1_20, %c0_21] : memref<18x18x4xf32, #tpu.memory_space<vmem>>, vector<16x16x4xf32>
    %14 = vector.shape_cast %13 : vector<16x16x4xf32> to vector<256x4xf32>
    %c1_22 = arith.constant 1 : index
    %c2_23 = arith.constant 2 : index
    %c0_24 = arith.constant 0 : index
    %15 = vector.load %arg8[%c1_22, %c2_23, %c0_24] : memref<18x18x4xf32, #tpu.memory_space<vmem>>, vector<16x16x4xf32>
    %16 = vector.shape_cast %15 : vector<16x16x4xf32> to vector<256x4xf32>
    %c2_25 = arith.constant 2 : index
    %c0_26 = arith.constant 0 : index
    %c0_27 = arith.constant 0 : index
    %17 = vector.load %arg8[%c2_25, %c0_26, %c0_27] : memref<18x18x4xf32, #tpu.memory_space<vmem>>, vector<16x16x4xf32>
    %18 = vector.shape_cast %17 : vector<16x16x4xf32> to vector<256x4xf32>
    %c2_28 = arith.constant 2 : index
    %c1_29 = arith.constant 1 : index
    %c0_30 = arith.constant 0 : index
    %19 = vector.load %arg8[%c2_28, %c1_29, %c0_30] : memref<18x18x4xf32, #tpu.memory_space<vmem>>, vector<16x16x4xf32>
    %20 = vector.shape_cast %19 : vector<16x16x4xf32> to vector<256x4xf32>
    %c2_31 = arith.constant 2 : index
    %c2_32 = arith.constant 2 : index
    %c0_33 = arith.constant 0 : index
    %21 = vector.load %arg8[%c2_31, %c2_32, %c0_33] : memref<18x18x4xf32, #tpu.memory_space<vmem>>, vector<16x16x4xf32>
    %22 = vector.shape_cast %21 : vector<16x16x4xf32> to vector<256x4xf32>
    %23 = tpu.concatenate %6, %8, %10, %12, %14, %16, %18, %20, %22 in 1 : vector<256x4xf32>, vector<256x4xf32>, vector<256x4xf32>, vector<256x4xf32>, vector<256x4xf32>, vector<256x4xf32>, vector<256x4xf32>, vector<256x4xf32>, vector<256x4xf32> -> vector<256x36xf32>
    %c0_34 = arith.constant 0 : index
    %c0_35 = arith.constant 0 : index
    %24 = vector.load %arg3[%c0_34, %c0_35] : memref<36x4xf32, #tpu.memory_space<vmem>>, vector<36x4xf32>
    %cst_36 = arith.constant dense<0.000000e+00> : vector<256x4xf32>
    %25 = tpu.matmul %23, %24, %cst_36 {dimension_numbers = #tpu.dot_dimension_numbers<[1], [0], [0], [1], [0, 0, 1, 1], [], []>} : vector<256x36xf32>, vector<36x4xf32>, vector<256x4xf32> -> vector<256x4xf32>
    %c0_37 = arith.constant 0 : index
    %c0_38 = arith.constant 0 : index
    %26 = vector.load %arg4[%c0_37, %c0_38] : memref<1x4xf32, #tpu.memory_space<vmem>>, vector<1x4xf32>
    %27 = vector.broadcast %26 : vector<1x4xf32> to vector<256x4xf32>
    %28 = arith.addf %25, %27 : vector<256x4xf32>
    %cst_39 = arith.constant 0.000000e+00 : f32
    %29 = vector.broadcast %cst_39 : f32 to vector<256x4xf32>
    %30 = arith.maximumf %28, %29 : vector<256x4xf32>
    %31 = vector.shape_cast %30 : vector<256x4xf32> to vector<16x16x4xf32>
    %cst_40 = arith.constant 0.000000e+00 : f32
    %32 = vector.broadcast %cst_40 : f32 to vector<18x18x4xf32>
    %c0_41 = arith.constant 0 : index
    %c0_42 = arith.constant 0 : index
    %c0_43 = arith.constant 0 : index
    %33 = vector.load %arg9[%c0_41, %c0_42, %c0_43] : memref<18x18x4xf32, #tpu.memory_space<vmem>>, vector<18x18x4xf32>
    tpu.vector_store %arg9[%c0_41, %c0_42, %c0_43], %32 {strides = array<i32>} : memref<18x18x4xf32, #tpu.memory_space<vmem>>, vector<18x18x4xf32>,
    %c1_44 = arith.constant 1 : index
    %c1_45 = arith.constant 1 : index
    %c0_46 = arith.constant 0 : index
    %34 = vector.load %arg9[%c1_44, %c1_45, %c0_46] : memref<18x18x4xf32, #tpu.memory_space<vmem>>, vector<16x16x4xf32>
    tpu.vector_store %arg9[%c1_44, %c1_45, %c0_46], %31 {strides = array<i32>} : memref<18x18x4xf32, #tpu.memory_space<vmem>>, vector<16x16x4xf32>,
    %c0_47 = arith.constant 0 : index
    %c0_48 = arith.constant 0 : index
    %c0_49 = arith.constant 0 : index
    %35 = vector.load %arg9[%c0_47, %c0_48, %c0_49] : memref<18x18x4xf32, #tpu.memory_space<vmem>>, vector<16x16x4xf32>
    %36 = vector.shape_cast %35 : vector<16x16x4xf32> to vector<256x4xf32>
    %c0_50 = arith.constant 0 : index
    %c1_51 = arith.constant 1 : index
    %c0_52 = arith.constant 0 : index
    %37 = vector.load %arg9[%c0_50, %c1_51, %c0_52] : memref<18x18x4xf32, #tpu.memory_space<vmem>>, vector<16x16x4xf32>
    %38 = vector.shape_cast %37 : vector<16x16x4xf32> to vector<256x4xf32>
    %c0_53 = arith.constant 0 : index
    %c2_54 = arith.constant 2 : index
    %c0_55 = arith.constant 0 : index
    %39 = vector.load %arg9[%c0_53, %c2_54, %c0_55] : memref<18x18x4xf32, #tpu.memory_space<vmem>>, vector<16x16x4xf32>
    %40 = vector.shape_cast %39 : vector<16x16x4xf32> to vector<256x4xf32>
    %c1_56 = arith.constant 1 : index
    %c0_57 = arith.constant 0 : index
    %c0_58 = arith.constant 0 : index
    %41 = vector.load %arg9[%c1_56, %c0_57, %c0_58] : memref<18x18x4xf32, #tpu.memory_space<vmem>>, vector<16x16x4xf32>
    %42 = vector.shape_cast %41 : vector<16x16x4xf32> to vector<256x4xf32>
    %c1_59 = arith.constant 1 : index
    %c1_60 = arith.constant 1 : index
    %c0_61 = arith.constant 0 : index
    %43 = vector.load %arg9[%c1_59, %c1_60, %c0_61] : memref<18x18x4xf32, #tpu.memory_space<vmem>>, vector<16x16x4xf32>
    %44 = vector.shape_cast %43 : vector<16x16x4xf32> to vector<256x4xf32>
    %c1_62 = arith.constant 1 : index
    %c2_63 = arith.constant 2 : index
    %c0_64 = arith.constant 0 : index
    %45 = vector.load %arg9[%c1_62, %c2_63, %c0_64] : memref<18x18x4xf32, #tpu.memory_space<vmem>>, vector<16x16x4xf32>
    %46 = vector.shape_cast %45 : vector<16x16x4xf32> to vector<256x4xf32>
    %c2_65 = arith.constant 2 : index
    %c0_66 = arith.constant 0 : index
    %c0_67 = arith.constant 0 : index
    %47 = vector.load %arg9[%c2_65, %c0_66, %c0_67] : memref<18x18x4xf32, #tpu.memory_space<vmem>>, vector<16x16x4xf32>
    %48 = vector.shape_cast %47 : vector<16x16x4xf32> to vector<256x4xf32>
    %c2_68 = arith.constant 2 : index
    %c1_69 = arith.constant 1 : index
    %c0_70 = arith.constant 0 : index
    %49 = vector.load %arg9[%c2_68, %c1_69, %c0_70] : memref<18x18x4xf32, #tpu.memory_space<vmem>>, vector<16x16x4xf32>
    %50 = vector.shape_cast %49 : vector<16x16x4xf32> to vector<256x4xf32>
    %c2_71 = arith.constant 2 : index
    %c2_72 = arith.constant 2 : index
    %c0_73 = arith.constant 0 : index
    %51 = vector.load %arg9[%c2_71, %c2_72, %c0_73] : memref<18x18x4xf32, #tpu.memory_space<vmem>>, vector<16x16x4xf32>
    %52 = vector.shape_cast %51 : vector<16x16x4xf32> to vector<256x4xf32>
    %53 = tpu.concatenate %36, %38, %40, %42, %44, %46, %48, %50, %52 in 1 : vector<256x4xf32>, vector<256x4xf32>, vector<256x4xf32>, vector<256x4xf32>, vector<256x4xf32>, vector<256x4xf32>, vector<256x4xf32>, vector<256x4xf32>, vector<256x4xf32> -> vector<256x36xf32>
    %c0_74 = arith.constant 0 : index
    %c0_75 = arith.constant 0 : index
    %54 = vector.load %arg5[%c0_74, %c0_75] : memref<36x4xf32, #tpu.memory_space<vmem>>, vector<36x4xf32>
    %cst_76 = arith.constant dense<0.000000e+00> : vector<256x4xf32>
    %55 = tpu.matmul %53, %54, %cst_76 {dimension_numbers = #tpu.dot_dimension_numbers<[1], [0], [0], [1], [0, 0, 1, 1], [], []>} : vector<256x36xf32>, vector<36x4xf32>, vector<256x4xf32> -> vector<256x4xf32>
    %c0_77 = arith.constant 0 : index
    %c0_78 = arith.constant 0 : index
    %56 = vector.load %arg6[%c0_77, %c0_78] : memref<1x4xf32, #tpu.memory_space<vmem>>, vector<1x4xf32>
    %57 = vector.broadcast %56 : vector<1x4xf32> to vector<256x4xf32>
    %58 = arith.addf %55, %57 : vector<256x4xf32>
    %59 = vector.shape_cast %1 : vector<16x16x4xf32> to vector<256x4xf32>
    %c0_79 = arith.constant 0 : index
    %60 = memref.load %arg1[%c0_79] : memref<1xf32, #tpu.memory_space<smem>>
    %61 = vector.broadcast %60 : f32 to vector<256x4xf32>
    %62 = arith.mulf %58, %61 : vector<256x4xf32>
    %63 = arith.addf %59, %62 : vector<256x4xf32>
    %64 = vector.shape_cast %63 : vector<256x4xf32> to vector<16x16x4xf32>
    %c0_80 = arith.constant 0 : index
    %c0_81 = arith.constant 0 : index
    %c0_82 = arith.constant 0 : index
    %c0_83 = arith.constant 0 : index
    %65 = vector.load %arg7[%c0_80, %c0_81, %c0_82, %c0_83] : memref<1x16x16x4xf32, #tpu.memory_space<vmem>>, vector<1x16x16x4xf32>
    %66 = vector.shape_cast %65 : vector<1x16x16x4xf32> to vector<16x16x4xf32>
    %67 = vector.shape_cast %64 : vector<16x16x4xf32> to vector<1x16x16x4xf32>
    tpu.vector_store %arg7[%c0_80, %c0_81, %c0_82, %c0_83], %67 {strides = array<i32>} : memref<1x16x16x4xf32, #tpu.memory_space<vmem>>, vector<1x16x16x4xf32>,
    return
  }
  func.func @transform_0(%arg0: i32) -> i32 {
    %c0_i32 = arith.constant 0 : i32
    %c0_i32_0 = arith.constant 0 : i32
    return %c0_i32 : i32
  }
  func.func @transform_1(%arg0: i32) -> (i32, i32, i32, i32) {
    %c0_i32 = arith.constant 0 : i32
    %c0_i32_0 = arith.constant 0 : i32
    %c0_i32_1 = arith.constant 0 : i32
    %c0_i32_2 = arith.constant 0 : i32
    return %arg0, %c0_i32, %c0_i32_0, %c0_i32_1 : i32, i32, i32, i32
  }
  func.func @transform_2(%arg0: i32) -> (i32, i32) {
    %c0_i32 = arith.constant 0 : i32
    %c0_i32_0 = arith.constant 0 : i32
    %c0_i32_1 = arith.constant 0 : i32
    return %c0_i32, %c0_i32_0 : i32, i32
  }
  func.func @transform_3(%arg0: i32) -> (i32, i32) {
    %c0_i32 = arith.constant 0 : i32
    %c0_i32_0 = arith.constant 0 : i32
    %c0_i32_1 = arith.constant 0 : i32
    return %c0_i32, %c0_i32_0 : i32, i32
  }
  func.func @transform_4(%arg0: i32) -> (i32, i32) {
    %c0_i32 = arith.constant 0 : i32
    %c0_i32_0 = arith.constant 0 : i32
    %c0_i32_1 = arith.constant 0 : i32
    return %c0_i32, %c0_i32_0 : i32, i32
  }
  func.func @transform_5(%arg0: i32) -> (i32, i32) {
    %c0_i32 = arith.constant 0 : i32
    %c0_i32_0 = arith.constant 0 : i32
    %c0_i32_1 = arith.constant 0 : i32
    return %c0_i32, %c0_i32_0 : i32, i32
  }
  func.func @transform_6(%arg0: i32) -> (i32, i32, i32, i32) {
    %c0_i32 = arith.constant 0 : i32
    %c0_i32_0 = arith.constant 0 : i32
    %c0_i32_1 = arith.constant 0 : i32
    %c0_i32_2 = arith.constant 0 : i32
    return %arg0, %c0_i32, %c0_i32_0, %c0_i32_1 : i32, i32, i32, i32
  }
}

</mosaic_0001>

<bundles_post_ra>
// kernel: tpu_custom_call.1
= control target key start
LH: loop header
LB: loop body
LE: loop exit
PB: predicated region body
PF: predicated region fallthrough
CT: control target
= control target key end

     0   :  { %s4855_s23 = smov 0   ;;  %s8167_s0 = inlined_call_operand.<no memory space> [shape: f32[1], index: 0, kind: input, shape index: {}]   ;;  %s8168_s1 = inlined_call_operand.vmem [shape: f32[2,16,16,4], index: 1, kind: input, shape index: {}]   ;;  %s8169_s2 = inlined_call_operand.vmem [shape: f32[36,4], index: 2, kind: input, shape index: {}]   ;;  %s8170_s3 = inlined_call_operand.vmem [shape: f32[1,4], index: 3, kind: input, shape index: {}]   ;;  %s8171_s4 = inlined_call_operand.vmem [shape: f32[36,4], index: 4, kind: input, shape index: {}]   ;;  %s8172_s5 = inlined_call_operand.vmem [shape: f32[1,4], index: 5, kind: input, shape index: {}]   ;;  %s8173_s6 = inlined_call_operand.vmem [shape: f32[2,16,16,4], index: 6, kind: output, shape index: {}]  }
   0x1   :  { %11 = sst [smem:[#allocation4]] %s8167_s0 }
   0x2 LB: > { %s4465_s24 = sadd.s32 4294967295, %s4806_s23   ;;  %p4469_p0 = scmp.ge.s32.totalorder %s4806_s23, 1  ;;  %s4806_s23 = sphi %s4855_s23, %s17_s23  }
   0x3   : > { %p213_p1 = scmp.lt.s32.totalorder %s4806_s23, 3 }
   0x5   : > { %p214_p2 = pnand %p4469_p0, %p213_p1 }
   0x7   : > { %217 = sbr.rel (%p214_p2) target bundleno = 1666 (0x682), region = 44 }
   0xc   : > { %vm285_vm0 = vcmask 31744   ;;  %vm288_vm1 = vcmask 25600   ;;  %p4865_p3 = scmp.lt.s32.totalorder %s4465_s24, 1  ;;  %v4808_v0 = vmov 0.0   ;;  %s4809_s29 = smov 4   ;;  %vm2059_vm2 = vcmask 1043456  }
   0xd   : > { %286 = vst.msk [vmem:[#allocation2] sm:$0xff] %vm285_vm0, %v4808_v0  ;;  %287 = vst.msk [vmem:[#allocation2 + $0x8] sm:$0xff] %vm285_vm0, %v4808_v0  ;;  %s4810_s30 = smov 8   ;;  %s4811_s7 = smov 12   ;;  %vm1719_vm3 = vcmask 64512   ;;  %vm1752_vm4 = vcmask 97280  }
   0xe   : > { %290 = vst.msk [vmem:[#allocation2 + $0x18] sm:$0xff] %vm285_vm0, %v4808_v0  ;;  %291 = vst.msk [vmem:[#allocation2 + $0x20] sm:$0xff] %vm285_vm0, %v4808_v0  ;;  %s8837_s24 = smov (!%p4865_p3, %s4465_s24), 1  ;;  %s4812_s8 = smov 16   ;;  %vm1785_vm5 = vcmask 130048   ;;  %vm1818_vm6 = vcmask 162816  }
   0xf   : > { %293 = vst.msk [vmem:[#allocation2 + $0x30] sm:$0xff] %vm285_vm0, %v4808_v0  ;;  %294 = vst.msk [vmem:[#allocation2 + $0x38] sm:$0xff] %vm285_vm0, %v4808_v0  ;;  %s4544_s25 = sshll.u32 %s8837_s24, 8  ;;  %s4813_s9 = smov 20   ;;  %vm1851_vm7 = vcmask 195584   ;;  %vm1884_vm8 = vcmask 228352  }
  0x10   : > { %296 = vst.msk [vmem:[#allocation2 + $0x48] sm:$0xff] %vm285_vm0, %v4808_v0  ;;  %297 = vst.msk [vmem:[#allocation2 + $0x50] sm:$0xff] %vm285_vm0, %v4808_v0  ;;  %s5097_s28 = scalar_lea.vmem %s8168_s1, %s4544_s25  ;;  %s4814_s10 = smov 24   ;;  %vm1917_vm9 = vcmask 261120   ;;  %vm1962_vm10 = vcmask 293888  }
  0x11   : > { %299 = vst.msk [vmem:[#allocation2 + $0x60] sm:$0xff] %vm285_vm0, %v4808_v0  ;;  %300 = vst.msk [vmem:[#allocation2 + $0x68] sm:$0xff] %vm285_vm0, %v4808_v0  ;;  %v5100_v1 = vld [vmem:[%s5097_s28] sm:$0xff]  ;;  %v5103_v2 = vld [vmem:[%s5097_s28 + $0x10] sm:$0xff]  ;;  %s4815_s11 = smov 28   ;;  %s4816_s22 = smov 32  }
  0x12   : > { %302 = vst.msk [vmem:[#allocation2 + $0x78] sm:$0xff] %vm285_vm0, %v4808_v0  ;;  %303 = vst.msk [vmem:[#allocation2 + $0x80] sm:$0xff] %vm285_vm0, %v4808_v0  ;;  %v5106_v3 = vld [vmem:[%s5097_s28 + $0x8] sm:$0xff]  ;;  %v5115_v4 = vld [vmem:[%s5097_s28 + $0x20] sm:$0xff]  ;;  %s7883_s18 = scalar_lea.vmem %s8173_s6, %s4544_s25 }
  0x13   : > { %305 = vst.msk [vmem:[#allocation2 + $0x90] sm:$0xff] %vm285_vm0, %v4808_v0  ;;  %306 = vst.msk [vmem:[#allocation2 + $0x98] sm:$0xff] %vm285_vm0, %v4808_v0  ;;  %v5118_v5 = vld [vmem:[%s5097_s28 + $0x18] sm:$0xff]  ;;  %v5121_v6 = vld [vmem:[%s5097_s28 + $0x30] sm:$0xff] }
  0x14   : > { %308 = vst.msk [vmem:[#allocation2 + $0xa8] sm:$0xff] %vm285_vm0, %v4808_v0  ;;  %309 = vst.msk [vmem:[#allocation2 + $0xb0] sm:$0xff] %vm285_vm0, %v4808_v0  ;;  %v406_v7 = vld [vmem:[#allocation2 + $0x1] sm:$0xff]  ;;  %v5139_v11 = vld [vmem:[%s5097_s28 + $0x38] sm:$0xff] }
  0x15   : > { %311 = vst.msk [vmem:[#allocation2 + $0xc0] sm:$0xff] %vm285_vm0, %v4808_v0  ;;  %312 = vst.msk [vmem:[#allocation2 + $0xc8] sm:$0xff] %vm285_vm0, %v4808_v0  ;;  %v5130_v9 = vld [vmem:[%s5097_s28 + $0x28] sm:$0xff]  ;;  %695 = vrot.lane.b32.xlu0 %v406_v7, %s4809_s29  ;;  %v5136_v10 = vld [vmem:[%s5097_s28 + $0x40] sm:$0xff] }
  0x16   : > { %314 = vst.msk [vmem:[#allocation2 + $0xd8] sm:$0xff] %vm285_vm0, %v4808_v0  ;;  %315 = vst.msk [vmem:[#allocation2 + $0xe0] sm:$0xff] %vm285_vm0, %v4808_v0  ;;  %v5142_v12 = vld [vmem:[%s5097_s28 + $0x50] sm:$0xff]  ;;  %v5151_v13 = vld [vmem:[%s5097_s28 + $0x48] sm:$0xff] }
  0x17   : > { %317 = vst.msk [vmem:[#allocation2 + $0xf0] sm:$0xff] %vm285_vm0, %v4808_v0  ;;  %318 = vst.msk [vmem:[#allocation2 + $0xf8] sm:$0xff] %vm285_vm0, %v4808_v0  ;;  %v5154_v14 = vld [vmem:[%s5097_s28 + $0x60] sm:$0xff]  ;;  %v5157_v15 = vld [vmem:[%s5097_s28 + $0x58] sm:$0xff] }
  0x18   : > { %320 = vst.msk [vmem:[#allocation2 + $0x108] sm:$0xff] %vm285_vm0, %v4808_v0  ;;  %321 = vst.msk [vmem:[#allocation2 + $0x110] sm:$0xff] %vm285_vm0, %v4808_v0  ;;  %v5166_v16 = vld [vmem:[%s5097_s28 + $0x70] sm:$0xff]  ;;  %v5169_v17 = vld [vmem:[%s5097_s28 + $0x68] sm:$0xff] }
  0x19   : > { %323 = vst.msk [vmem:[#allocation2 + $0x120] sm:$0xff] %vm285_vm0, %v4808_v0  ;;  %324 = vst.msk [vmem:[#allocation2 + $0x128] sm:$0xff] %vm285_vm0, %v4808_v0  ;;  %v5172_v18 = vld [vmem:[%s5097_s28 + $0x80] sm:$0xff]  ;;  %v5181_v19 = vld [vmem:[%s5097_s28 + $0x78] sm:$0xff] }
  0x1a   : > { %326 = vst.msk [vmem:[#allocation2 + $0x138] sm:$0xff] %vm285_vm0, %v4808_v0  ;;  %327 = vst.msk [vmem:[#allocation2 + $0x140] sm:$0xff] %vm285_vm0, %v4808_v0  ;;  %v5184_v20 = vld [vmem:[%s5097_s28 + $0x90] sm:$0xff]  ;;  %v5187_v21 = vld [vmem:[%s5097_s28 + $0x88] sm:$0xff] }
  0x1b   : > { %329 = vst.msk [vmem:[#allocation2 + $0x150] sm:$0xff] %vm285_vm0, %v4808_v0  ;;  %330 = vst.msk [vmem:[#allocation2 + $0x158] sm:$0xff] %vm285_vm0, %v4808_v0  ;;  %v5197_v22 = vld [vmem:[%s5097_s28 + $0xa0] sm:$0xff]  ;;  %v5200_v23 = vld [vmem:[%s5097_s28 + $0x98] sm:$0xff] }
  0x1c   : > { %332 = vst.msk [vmem:[#allocation2 + $0x168] sm:$0xff] %vm285_vm0, %v4808_v0  ;;  %333 = vst.msk [vmem:[#allocation2 + $0x170] sm:$0xff] %vm285_vm0, %v4808_v0  ;;  %v5203_v24 = vld [vmem:[%s5097_s28 + $0xb0] sm:$0xff]  ;;  %v5220_v28 = vld [vmem:[%s5097_s28 + $0xa8] sm:$0xff] }
  0x1d   : > { %335 = vst.msk [vmem:[#allocation2 + $0x180] sm:$0xff] %vm285_vm0, %v4808_v0  ;;  %336 = vst.msk [vmem:[#allocation2 + $0x188] sm:$0xff] %vm285_vm0, %v4808_v0  ;;  %v5223_v29 = vld [vmem:[%s5097_s28 + $0xc0] sm:$0xff]  ;;  %v5242_v33 = vld [vmem:[%s5097_s28 + $0xb8] sm:$0xff] }
  0x1e   : > { %338 = vst.msk [vmem:[#allocation2 + $0x198] sm:$0xff] %vm285_vm0, %v4808_v0  ;;  %339 = vst.msk [vmem:[#allocation2 + $0x1a0] sm:$0xff] %vm285_vm0, %v4808_v0  ;;  %v5245_v34 = vld [vmem:[%s5097_s28 + $0xd0] sm:$0xff]  ;;  %v5248_v35 = vld [vmem:[%s5097_s28 + $0xc8] sm:$0xff] }
  0x1f   : > { %2320 = vst.msk [vmem:[#allocation3] sm:$0xff] %vm285_vm0, %v4808_v0  ;;  %2321 = vst.msk [vmem:[#allocation3 + $0x8] sm:$0xff] %vm285_vm0, %v4808_v0  ;;  %v5259_v36 = vld [vmem:[%s5097_s28 + $0xe0] sm:$0xff]  ;;  %v5262_v37 = vld [vmem:[%s5097_s28 + $0xd8] sm:$0xff] }
  0x20   : > { %2323 = vst.msk [vmem:[#allocation3 + $0x18] sm:$0xff] %vm285_vm0, %v4808_v0  ;;  %2324 = vst.msk [vmem:[#allocation3 + $0x20] sm:$0xff] %vm285_vm0, %v4808_v0  ;;  %v5271_v39 = vld [vmem:[%s5097_s28 + $0xe8] sm:$0xff]  ;;  %v5348_v58 = vld [vmem:[%s5097_s28 + $0xf0] sm:$0xff] }
  0x21   : > { %2326 = vst.msk [vmem:[#allocation3 + $0x30] sm:$0xff] %vm285_vm0, %v4808_v0  ;;  %2327 = vst.msk [vmem:[#allocation3 + $0x38] sm:$0xff] %vm285_vm0, %v4808_v0  ;;  %v5365_v62 = vld [vmem:[%s5097_s28 + $0xf8] sm:$0xff] }
  0x22   : > { %2329 = vst.msk [vmem:[#allocation3 + $0x48] sm:$0xff] %vm285_vm0, %v4808_v0  ;;  %2330 = vst.msk [vmem:[#allocation3 + $0x50] sm:$0xff] %vm285_vm0, %v4808_v0 }
  0x23   : > { %2332 = vst.msk [vmem:[#allocation3 + $0x60] sm:$0xff] %vm285_vm0, %v4808_v0  ;;  %2333 = vst.msk [vmem:[#allocation3 + $0x68] sm:$0xff] %vm285_vm0, %v4808_v0 }
  0x24   : > { %2335 = vst.msk [vmem:[#allocation3 + $0x78] sm:$0xff] %vm285_vm0, %v4808_v0  ;;  %2336 = vst.msk [vmem:[#allocation3 + $0x80] sm:$0xff] %vm285_vm0, %v4808_v0 }
  0x25   : > { %2338 = vst.msk [vmem:[#allocation3 + $0x90] sm:$0xff] %vm285_vm0, %v4808_v0  ;;  %2339 = vst.msk [vmem:[#allocation3 + $0x98] sm:$0xff] %vm285_vm0, %v4808_v0 }
  0x26   : > { %2341 = vst.msk [vmem:[#allocation3 + $0xa8] sm:$0xff] %vm285_vm0, %v4808_v0  ;;  %2342 = vst.msk [vmem:[#allocation3 + $0xb0] sm:$0xff] %vm285_vm0, %v4808_v0 }
  0x27   : > { %2344 = vst.msk [vmem:[#allocation3 + $0xc0] sm:$0xff] %vm285_vm0, %v4808_v0  ;;  %2345 = vst.msk [vmem:[#allocation3 + $0xc8] sm:$0xff] %vm285_vm0, %v4808_v0 }
  0x28   : > { %2347 = vst.msk [vmem:[#allocation3 + $0xd8] sm:$0xff] %vm285_vm0, %v4808_v0  ;;  %2348 = vst.msk [vmem:[#allocation3 + $0xe0] sm:$0xff] %vm285_vm0, %v4808_v0 }
  0x29   : > { %2350 = vst.msk [vmem:[#allocation3 + $0xf0] sm:$0xff] %vm285_vm0, %v4808_v0  ;;  %2351 = vst.msk [vmem:[#allocation3 + $0xf8] sm:$0xff] %vm285_vm0, %v4808_v0 }
  0x2a   : > { %2353 = vst.msk [vmem:[#allocation3 + $0x108] sm:$0xff] %vm285_vm0, %v4808_v0  ;;  %2354 = vst.msk [vmem:[#allocation3 + $0x110] sm:$0xff] %vm285_vm0, %v4808_v0 }
  0x2b   : > { %2356 = vst.msk [vmem:[#allocation3 + $0x120] sm:$0xff] %vm285_vm0, %v4808_v0  ;;  %2357 = vst.msk [vmem:[#allocation3 + $0x128] sm:$0xff] %vm285_vm0, %v4808_v0 }
  0x2c   : > { %2359 = vst.msk [vmem:[#allocation3 + $0x138] sm:$0xff] %vm285_vm0, %v4808_v0  ;;  %2360 = vst.msk [vmem:[#allocation3 + $0x140] sm:$0xff] %vm285_vm0, %v4808_v0 }
  0x2d   : > { %2362 = vst.msk [vmem:[#allocation3 + $0x150] sm:$0xff] %vm285_vm0, %v4808_v0  ;;  %2363 = vst.msk [vmem:[#allocation3 + $0x158] sm:$0xff] %vm285_vm0, %v4808_v0 }
  0x2e   : > { %2365 = vst.msk [vmem:[#allocation3 + $0x168] sm:$0xff] %vm285_vm0, %v4808_v0  ;;  %2366 = vst.msk [vmem:[#allocation3 + $0x170] sm:$0xff] %vm285_vm0, %v4808_v0 }
  0x2f   : > { %2368 = vst.msk [vmem:[#allocation3 + $0x180] sm:$0xff] %vm285_vm0, %v4808_v0  ;;  %2369 = vst.msk [vmem:[#allocation3 + $0x188] sm:$0xff] %vm285_vm0, %v4808_v0 }
  0x30   : > { %2371 = vst.msk [vmem:[#allocation3 + $0x198] sm:$0xff] %vm285_vm0, %v4808_v0  ;;  %2372 = vst.msk [vmem:[#allocation3 + $0x1a0] sm:$0xff] %vm285_vm0, %v4808_v0 }
  0x31   : > { %289 = vst.msk [vmem:[#allocation2 + $0x10] sm:$0x3] %vm288_vm1, %v4808_v0  ;;  %292 = vst.msk [vmem:[#allocation2 + $0x28] sm:$0x3] %vm288_vm1, %v4808_v0 }
  0x32   : > { %295 = vst.msk [vmem:[#allocation2 + $0x40] sm:$0x3] %vm288_vm1, %v4808_v0  ;;  %298 = vst.msk [vmem:[#allocation2 + $0x58] sm:$0x3] %vm288_vm1, %v4808_v0 }
  0x33   : > { %301 = vst.msk [vmem:[#allocation2 + $0x70] sm:$0x3] %vm288_vm1, %v4808_v0  ;;  %304 = vst.msk [vmem:[#allocation2 + $0x88] sm:$0x3] %vm288_vm1, %v4808_v0 }
  0x34   : > { %307 = vst.msk [vmem:[#allocation2 + $0xa0] sm:$0x3] %vm288_vm1, %v4808_v0  ;;  %310 = vst.msk [vmem:[#allocation2 + $0xb8] sm:$0x3] %vm288_vm1, %v4808_v0 }
  0x35   : > { %313 = vst.msk [vmem:[#allocation2 + $0xd0] sm:$0x3] %vm288_vm1, %v4808_v0  ;;  %316 = vst.msk [vmem:[#allocation2 + $0xe8] sm:$0x3] %vm288_vm1, %v4808_v0 }
  0x36   : > { %319 = vst.msk [vmem:[#allocation2 + $0x100] sm:$0x3] %vm288_vm1, %v4808_v0  ;;  %322 = vst.msk [vmem:[#allocation2 + $0x118] sm:$0x3] %vm288_vm1, %v4808_v0 }
  0x37   : > { %325 = vst.msk [vmem:[#allocation2 + $0x130] sm:$0x3] %vm288_vm1, %v4808_v0  ;;  %328 = vst.msk [vmem:[#allocation2 + $0x148] sm:$0x3] %vm288_vm1, %v4808_v0 }
  0x38   : > { %331 = vst.msk [vmem:[#allocation2 + $0x160] sm:$0x3] %vm288_vm1, %v4808_v0  ;;  %334 = vst.msk [vmem:[#allocation2 + $0x178] sm:$0x3] %vm288_vm1, %v4808_v0  ;;  %v407_v8 = vld [vmem:[#allocation2 + $0x9] sm:$0xff] }
  0x39   : > { %337 = vst.msk [vmem:[#allocation2 + $0x190] sm:$0x3] %vm288_vm1, %v4808_v0  ;;  %340 = vst.msk [vmem:[#allocation2 + $0x1a8] sm:$0x3] %vm288_vm1, %v4808_v0  ;;  %697 = vrot.lane.b32.xlu0 %v407_v8, %s4809_s29 }
  0x3a   : > { %2322 = vst.msk [vmem:[#allocation3 + $0x10] sm:$0x3] %vm288_vm1, %v4808_v0  ;;  %2325 = vst.msk [vmem:[#allocation3 + $0x28] sm:$0x3] %vm288_vm1, %v4808_v0 }
  0x3b   : > { %2328 = vst.msk [vmem:[#allocation3 + $0x40] sm:$0x3] %vm288_vm1, %v4808_v0  ;;  %2331 = vst.msk [vmem:[#allocation3 + $0x58] sm:$0x3] %vm288_vm1, %v4808_v0 }
  0x3c   : > { %2334 = vst.msk [vmem:[#allocation3 + $0x70] sm:$0x3] %vm288_vm1, %v4808_v0  ;;  %2337 = vst.msk [vmem:[#allocation3 + $0x88] sm:$0x3] %vm288_vm1, %v4808_v0 }
  0x3d   : > { %2340 = vst.msk [vmem:[#allocation3 + $0xa0] sm:$0x3] %vm288_vm1, %v4808_v0  ;;  %2343 = vst.msk [vmem:[#allocation3 + $0xb8] sm:$0x3] %vm288_vm1, %v4808_v0 }
  0x3e   : > { %2346 = vst.msk [vmem:[#allocation3 + $0xd0] sm:$0x3] %vm288_vm1, %v4808_v0  ;;  %2349 = vst.msk [vmem:[#allocation3 + $0xe8] sm:$0x3] %vm288_vm1, %v4808_v0 }
  0x3f   : > { %2352 = vst.msk [vmem:[#allocation3 + $0x100] sm:$0x3] %vm288_vm1, %v4808_v0  ;;  %2355 = vst.msk [vmem:[#allocation3 + $0x118] sm:$0x3] %vm288_vm1, %v4808_v0 }
  0x40   : > { %2358 = vst.msk [vmem:[#allocation3 + $0x130] sm:$0x3] %vm288_vm1, %v4808_v0  ;;  %2361 = vst.msk [vmem:[#allocation3 + $0x148] sm:$0x3] %vm288_vm1, %v4808_v0 }
  0x41   : > { %2364 = vst.msk [vmem:[#allocation3 + $0x160] sm:$0x3] %vm288_vm1, %v4808_v0  ;;  %2367 = vst.msk [vmem:[#allocation3 + $0x178] sm:$0x3] %vm288_vm1, %v4808_v0 }
  0x42   : > { %2370 = vst.msk [vmem:[#allocation3 + $0x190] sm:$0x3] %vm288_vm1, %v4808_v0  ;;  %2373 = vst.msk [vmem:[#allocation3 + $0x1a8] sm:$0x3] %vm288_vm1, %v4808_v0  ;;  %v438_v0 = vld [vmem:[#allocation2 + $0x2] sm:$0xff] }
  0x43   : > { %8242 = vst [vmem:[#allocation5_spill] sm:$0xff] %v5100_v1  ;;  %8243 = vst [vmem:[#allocation6_spill] sm:$0xff] %v5103_v2 }
  0x44   : > { %8244 = vst [vmem:[#allocation7_spill] sm:$0xff] %v5106_v3  ;;  %342 = vst.msk [vmem:[#allocation2 + $0x19] sm:$0xff] %vm285_vm0, %v5100_v1 }
  0x45   : > { %344 = vst.msk [vmem:[#allocation2 + $0x31] sm:$0xff] %vm285_vm0, %v5103_v2  ;;  %343 = vst.msk [vmem:[#allocation2 + $0x21] sm:$0xff] %vm285_vm0, %v5106_v3 }
  0x46   : > { %8245 = vst [vmem:[#allocation8_spill] sm:$0xff] %v5115_v4  ;;  %8246 = vst [vmem:[#allocation9_spill] sm:$0xff] %v5118_v5 }
  0x47   : > { %8247 = vst [vmem:[#allocation10_spill] sm:$0xff] %v5121_v6  ;;  %346 = vst.msk [vmem:[#allocation2 + $0x49] sm:$0xff] %vm285_vm0, %v5115_v4 }
  0x48   : > { %345 = vst.msk [vmem:[#allocation2 + $0x39] sm:$0xff] %vm285_vm0, %v5118_v5  ;;  %348 = vst.msk [vmem:[#allocation2 + $0x61] sm:$0xff] %vm285_vm0, %v5121_v6 }
  0x49   : > { %8248 = vst [vmem:[#allocation11_spill] sm:$0xff] %v5130_v9  ;;  %347 = vst.msk [vmem:[#allocation2 + $0x51] sm:$0xff] %vm285_vm0, %v5130_v9 }
  0x4a   : > { %8249 = vst [vmem:[#allocation12_spill] sm:$0xff] %v5136_v10  ;;  %8250 = vst [vmem:[#allocation13_spill] sm:$0xff] %v5139_v11 }
  0x4b   : > { %8251 = vst [vmem:[#allocation14_spill] sm:$0xff] %v5142_v12  ;;  %350 = vst.msk [vmem:[#allocation2 + $0x79] sm:$0xff] %vm285_vm0, %v5136_v10  ;;  %v5205_v25 = vld [vmem:[#allocation2 + $0x19] sm:$0xff] }
  0x4c   : > { %349 = vst.msk [vmem:[#allocation2 + $0x69] sm:$0xff] %vm285_vm0, %v5139_v11  ;;  %352 = vst.msk [vmem:[#allocation2 + $0x91] sm:$0xff] %vm285_vm0, %v5142_v12  ;;  %v5207_v26 = vld [vmem:[#allocation2 + $0x31] sm:$0xff]  ;;  %699 = vrot.lane.b32.xlu1 %v5205_v25, %s4809_s29  ;;  %v5217_v27 = vld [vmem:[#allocation2 + $0x21] sm:$0xff] }
  0x4d   : > { %8252 = vst [vmem:[#allocation15_spill] sm:$0xff] %v5151_v13  ;;  %8253 = vst [vmem:[#allocation16_spill] sm:$0xff] %v5154_v14  ;;  %703 = vrot.lane.b32.xlu0 %v5207_v26, %s4809_s29  ;;  %v5380_v8 = vld [vmem:[#allocation2 + $0x1a] sm:$0xff] }
  0x4e   : > { %8254 = vst [vmem:[#allocation17_spill] sm:$0xff] %v5157_v15  ;;  %351 = vst.msk [vmem:[#allocation2 + $0x81] sm:$0xff] %vm285_vm0, %v5151_v13  ;;  %v5231_v30 = vld [vmem:[#allocation2 + $0x49] sm:$0xff] }
  0x4f   : > { %354 = vst.msk [vmem:[#allocation2 + $0xa9] sm:$0xff] %vm285_vm0, %v5154_v14  ;;  %353 = vst.msk [vmem:[#allocation2 + $0x99] sm:$0xff] %vm285_vm0, %v5157_v15  ;;  %v5235_v31 = vld [vmem:[#allocation2 + $0x39] sm:$0xff]  ;;  %v5239_v32 = vld [vmem:[#allocation2 + $0x61] sm:$0xff] }
  0x50   : > { %8255 = vst [vmem:[#allocation18_spill] sm:$0xff] %v5166_v16  ;;  %8256 = vst [vmem:[#allocation19_spill] sm:$0xff] %v5169_v17  ;;  %701 = vrot.lane.b32.xlu1 %v5217_v27, %s4809_s29  ;;  %v5264_v38 = vld [vmem:[#allocation2 + $0x51] sm:$0xff] }
  0x51   : > { %8257 = vst [vmem:[#allocation20_spill] sm:$0xff] %v5172_v18  ;;  %356 = vst.msk [vmem:[#allocation2 + $0xc1] sm:$0xff] %vm285_vm0, %v5166_v16  ;;  %707 = vrot.lane.b32.xlu0 %v5231_v30, %s4809_s29 }
  0x52   : > { %355 = vst.msk [vmem:[#allocation2 + $0xb1] sm:$0xff] %vm285_vm0, %v5169_v17  ;;  %358 = vst.msk [vmem:[#allocation2 + $0xd9] sm:$0xff] %vm285_vm0, %v5172_v18  ;;  %v5277_v40 = vld [vmem:[#allocation2 + $0x79] sm:$0xff] }
  0x53   : > { %8258 = vst [vmem:[#allocation21_spill] sm:$0xff] %v5181_v19  ;;  %8259 = vst [vmem:[#allocation22_spill] sm:$0xff] %v5184_v20  ;;  %v5281_v41 = vld [vmem:[#allocation2 + $0x69] sm:$0xff]  ;;  %v5285_v42 = vld [vmem:[#allocation2 + $0x91] sm:$0xff] }
  0x54   : > { %8260 = vst [vmem:[#allocation23_spill] sm:$0xff] %v5187_v21  ;;  %357 = vst.msk [vmem:[#allocation2 + $0xc9] sm:$0xff] %vm285_vm0, %v5181_v19  ;;  %705 = vrot.lane.b32.xlu1 %v5235_v31, %s4809_s29 }
  0x55   : > { %360 = vst.msk [vmem:[#allocation2 + $0xf1] sm:$0xff] %vm285_vm0, %v5184_v20  ;;  %359 = vst.msk [vmem:[#allocation2 + $0xe1] sm:$0xff] %vm285_vm0, %v5187_v21  ;;  %711 = vrot.lane.b32.xlu0 %v5239_v32, %s4809_s29  ;;  %v5289_v43 = vld [vmem:[#allocation2 + $0x81] sm:$0xff] }
  0x56   : > { %8261 = vst [vmem:[#allocation24_spill] sm:$0xff] %v5197_v22  ;;  %8262 = vst [vmem:[#allocation25_spill] sm:$0xff] %v5200_v23  ;;  %v5293_v44 = vld [vmem:[#allocation2 + $0xa9] sm:$0xff]  ;;  %v5297_v45 = vld [vmem:[#allocation2 + $0x99] sm:$0xff] }
  0x57   : > { %8263 = vst [vmem:[#allocation26_spill] sm:$0xff] %v5203_v24  ;;  %362 = vst.msk [vmem:[#allocation2 + $0x109] sm:$0xff] %vm285_vm0, %v5197_v22  ;;  %v5429_v22 = vld [vmem:[#allocation2 + $0x9a] sm:$0xff] }
  0x58   : > { %361 = vst.msk [vmem:[#allocation2 + $0xf9] sm:$0xff] %vm285_vm0, %v5200_v23  ;;  %364 = vst.msk [vmem:[#allocation2 + $0x121] sm:$0xff] %vm285_vm0, %v5203_v24  ;;  %709 = vrot.lane.b32.xlu1 %v5264_v38, %s4809_s29  ;;  %v5301_v46 = vld [vmem:[#allocation2 + $0xc1] sm:$0xff] }
  0x59   : > { %8264 = vst [vmem:[#allocation27_spill] sm:$0xff] %v5220_v28  ;;  %8265 = vst [vmem:[#allocation28_spill] sm:$0xff] %v5223_v29  ;;  %715 = vrot.lane.b32.xlu0 %v5277_v40, %s4809_s29  ;;  %v5305_v47 = vld [vmem:[#allocation2 + $0xb1] sm:$0xff]  ;;  %v5309_v48 = vld [vmem:[#allocation2 + $0xd9] sm:$0xff] }
  0x5a   : > { %363 = vst.msk [vmem:[#allocation2 + $0x111] sm:$0xff] %vm285_vm0, %v5220_v28  ;;  %366 = vst.msk [vmem:[#allocation2 + $0x139] sm:$0xff] %vm285_vm0, %v5223_v29  ;;  %v5413_v29 = vld [vmem:[#allocation2 + $0x6a] sm:$0xff]  ;;  %v5421_v24 = vld [vmem:[#allocation2 + $0x82] sm:$0xff] }
  0x5b   : > { %8266 = vst [vmem:[#allocation29_spill] sm:$0xff] %v5242_v33  ;;  %8267 = vst [vmem:[#allocation30_spill] sm:$0xff] %v5245_v34  ;;  %v5313_v49 = vld [vmem:[#allocation2 + $0xc9] sm:$0xff]  ;;  %v5437_v20 = vld [vmem:[#allocation2 + $0xb2] sm:$0xff] }
  0x5c   : > { %8268 = vst [vmem:[#allocation31_spill] sm:$0xff] %v5248_v35  ;;  %365 = vst.msk [vmem:[#allocation2 + $0x129] sm:$0xff] %vm285_vm0, %v5242_v33  ;;  %713 = vrot.lane.b32.xlu1 %v5281_v41, %s4809_s29  ;;  %v5317_v50 = vld [vmem:[#allocation2 + $0xf1] sm:$0xff]  ;;  %v5321_v51 = vld [vmem:[#allocation2 + $0xe1] sm:$0xff] }
  0x5d   : > { %368 = vst.msk [vmem:[#allocation2 + $0x151] sm:$0xff] %vm285_vm0, %v5245_v34  ;;  %367 = vst.msk [vmem:[#allocation2 + $0x141] sm:$0xff] %vm285_vm0, %v5248_v35  ;;  %719 = vrot.lane.b32.xlu0 %v5285_v42, %s4809_s29  ;;  %v5401_v34 = vld [vmem:[#allocation2 + $0x62] sm:$0xff]  ;;  %v5417_v35 = vld [vmem:[#allocation2 + $0x92] sm:$0xff] }
  0x5e   : > { %8269 = vst [vmem:[#allocation32_spill] sm:$0xff] %v5259_v36  ;;  %8270 = vst [vmem:[#allocation33_spill] sm:$0xff] %v5262_v37  ;;  %v5325_v52 = vld [vmem:[#allocation2 + $0x109] sm:$0xff]  ;;  %v5441_v23 = vld [vmem:[#allocation2 + $0xda] sm:$0xff] }
  0x5f   : > { %370 = vst.msk [vmem:[#allocation2 + $0x169] sm:$0xff] %vm285_vm0, %v5259_v36  ;;  %369 = vst.msk [vmem:[#allocation2 + $0x159] sm:$0xff] %vm285_vm0, %v5262_v37  ;;  %v5329_v53 = vld [vmem:[#allocation2 + $0xf9] sm:$0xff]  ;;  %v5333_v54 = vld [vmem:[#allocation2 + $0x121] sm:$0xff] }
  0x60   : > { %8271 = vst [vmem:[#allocation34_spill] sm:$0xff] %v5271_v39  ;;  %371 = vst.msk [vmem:[#allocation2 + $0x171] sm:$0xff] %vm285_vm0, %v5271_v39  ;;  %717 = vrot.lane.b32.xlu1 %v5289_v43, %s4809_s29  ;;  %v5389_v36 = vld [vmem:[#allocation2 + $0x22] sm:$0xff]  ;;  %v5393_v39 = vld [vmem:[#allocation2 + $0x4a] sm:$0xff] }
  0x61   : > { %723 = vrot.lane.b32.xlu0 %v5293_v44, %s4809_s29  ;;  %v5337_v55 = vld [vmem:[#allocation2 + $0x111] sm:$0xff]  ;;  %v5341_v56 = vld [vmem:[#allocation2 + $0x139] sm:$0xff]  ;;  %8272 = vst [vmem:[#allocation35_spill] sm:$0xff] %v5348_v58  ;;  %372 = vst.msk [vmem:[#allocation2 + $0x181] sm:$0xff] %vm285_vm0, %v5348_v58 }
  0x62   : > { %8273 = vst [vmem:[#allocation36_spill] sm:$0xff] %v5365_v62  ;;  %373 = vst.msk [vmem:[#allocation2 + $0x189] sm:$0xff] %vm285_vm0, %v5365_v62  ;;  %v439_v58 = vld [vmem:[#allocation2 + $0xa] sm:$0xff]  ;;  %v5386_v62 = vld [vmem:[#allocation2 + $0x32] sm:$0xff] }
  0x63   : > { %v5345_v57 = vld [vmem:[#allocation2 + $0x129] sm:$0xff]  ;;  %v5409_v37 = vld [vmem:[#allocation2 + $0x7a] sm:$0xff]  ;;  %v5449_v21 = vld [vmem:[#allocation2 + $0xf2] sm:$0xff] }
  0x64   : > { %721 = vrot.lane.b32.xlu1 %v5297_v45, %s4809_s29  ;;  %v5354_v59 = vld [vmem:[#allocation2 + $0x151] sm:$0xff]  ;;  %v5358_v60 = vld [vmem:[#allocation2 + $0x141] sm:$0xff] }
  0x65   : > { %727 = vrot.lane.b32.xlu0 %v5301_v46, %s4809_s29  ;;  %v5425_v33 = vld [vmem:[#allocation2 + $0xaa] sm:$0xff]  ;;  %v5433_v28 = vld [vmem:[#allocation2 + $0xc2] sm:$0xff]  ;;  %v5461_v14 = vld [vmem:[#allocation2 + $0xfa] sm:$0xff] }
  0x66   : > { %v5362_v61 = vld [vmem:[#allocation2 + $0x169] sm:$0xff]  ;;  %v5371_v63 = vld [vmem:[#allocation2 + $0x159] sm:$0xff] }
  0x67   : > { %v5377_v7 = vld [vmem:[#allocation2 + $0x171] sm:$0xff]  ;;  %v5453_v16 = vld [vmem:[#allocation2 + $0xe2] sm:$0xff]  ;;  %v5473_v15 = vld [vmem:[#allocation2 + $0x13a] sm:$0xff] }
  0x68   : > { %725 = vrot.lane.b32.xlu1 %v5305_v47, %s4809_s29  ;;  %v5445_v18 = vld [vmem:[#allocation2 + $0xca] sm:$0xff]  ;;  %v5465_v17 = vld [vmem:[#allocation2 + $0x122] sm:$0xff]  ;;  %v5469_v12 = vld [vmem:[#allocation2 + $0x112] sm:$0xff] }
  0x69   : > { %731 = vrot.lane.b32.xlu0 %v5309_v48, %s4809_s29  ;;  %v5457_v19 = vld [vmem:[#allocation2 + $0x10a] sm:$0xff]  ;;  %v5483_v6 = vld [vmem:[#allocation2 + $0x152] sm:$0xff]  ;;  %v5489_v4 = vld [vmem:[#allocation2 + $0x142] sm:$0xff] }
  0x6a   : > { %v5479_v13 = vld [vmem:[#allocation2 + $0x12a] sm:$0xff]  ;;  %8276 = vst [vmem:[#allocation39_spill] sm:$0xff] %v5489_v4  ;;  %v5501_v1 = vld [vmem:[#allocation2 + $0x15a] sm:$0xff] }
  0x6b   : > { %v5495_v2 = vld [vmem:[#allocation2 + $0x16a] sm:$0xff]  ;;  %8280 = vst [vmem:[#allocation43_spill] sm:$0xff] %v5501_v1 }
  0x6c   : > { %729 = vrot.lane.b32.xlu1 %v5313_v49, %s4809_s29  ;;  %8278 = vst [vmem:[#allocation41_spill] sm:$0xff] %v5495_v2 }
  0x6d   : > { %735 = vrot.lane.b32.xlu0 %v5317_v50, %s4809_s29 }
  0x70   : > { %733 = vrot.lane.b32.xlu1 %v5321_v51, %s4809_s29 }
  0x71   : > { %739 = vrot.lane.b32.xlu0 %v5325_v52, %s4809_s29 }
  0x74   : > { %737 = vrot.lane.b32.xlu1 %v5329_v53, %s4809_s29 }
  0x75   : > { %743 = vrot.lane.b32.xlu0 %v5333_v54, %s4809_s29 }
  0x78   : > { %741 = vrot.lane.b32.xlu1 %v5337_v55, %s4809_s29 }
  0x79   : > { %747 = vrot.lane.b32.xlu0 %v5341_v56, %s4809_s29 }
  0x7c   : > { %745 = vrot.lane.b32.xlu1 %v5345_v57, %s4809_s29 }
  0x7d   : > { %751 = vrot.lane.b32.xlu0 %v5354_v59, %s4809_s29 }
  0x80   : > { %749 = vrot.lane.b32.xlu1 %v5358_v60, %s4809_s29 }
  0x81   : > { %755 = vrot.lane.b32.xlu0 %v5362_v61, %s4809_s29 }
  0x84   : > { %753 = vrot.lane.b32.xlu1 %v5371_v63, %s4809_s29 }
  0x85   : > { %823 = vrot.lane.b32.xlu0 %v438_v0, %s4810_s30  ;;  %v5397_v0 = vld [vmem:[#allocation2 + $0x3a] sm:$0xff] }
  0x87   : > { %v5475_v10 = vpop.permute.xlu0 %695 }
  0x88   : > { %757 = vrot.lane.b32.xlu1 %v5377_v7, %s4809_s29  ;;  %8274 = vst [vmem:[#allocation37_spill] sm:$0xff] %v5475_v10  ;;  %v5511_v10 = vld [vmem:[#allocation2 + $0x172] sm:$0xff] }
  0x89   : > { %827 = vrot.lane.b32.xlu0 %v5380_v8, %s4810_s30  ;;  %8283 = vst [vmem:[#allocation46_spill] sm:$0xff] %v5511_v10 }
  0x8c   : > { %825 = vrot.lane.b32.xlu1 %v439_v58, %s4810_s30  ;;  %v5405_v58 = vld [vmem:[#allocation2 + $0x52] sm:$0xff] }
  0x8d   : > { %831 = vrot.lane.b32.xlu0 %v5386_v62, %s4810_s30 }
  0x90   : > { %829 = vrot.lane.b32.xlu1 %v5389_v36, %s4810_s30 }
  0x91   : > { %835 = vrot.lane.b32.xlu0 %v5393_v39, %s4810_s30 }
  0x94   : > { %833 = vrot.lane.b32.xlu1 %v5397_v0, %s4810_s30 }
  0x95   : > { %839 = vrot.lane.b32.xlu0 %v5401_v34, %s4810_s30 }
  0x98   : > { %837 = vrot.lane.b32.xlu1 %v5405_v58, %s4810_s30 }
  0x99   : > { %843 = vrot.lane.b32.xlu0 %v5409_v37, %s4810_s30 }
  0x9c   : > { %841 = vrot.lane.b32.xlu1 %v5413_v29, %s4810_s30 }
  0x9d   : > { %847 = vrot.lane.b32.xlu0 %v5417_v35, %s4810_s30 }
  0xa0   : > { %845 = vrot.lane.b32.xlu1 %v5421_v24, %s4810_s30 }
  0xa1   : > { %851 = vrot.lane.b32.xlu0 %v5425_v33, %s4810_s30 }
  0xa4   : > { %849 = vrot.lane.b32.xlu1 %v5429_v22, %s4810_s30 }
  0xa5   : > { %855 = vrot.lane.b32.xlu0 %v5433_v28, %s4810_s30 }
  0xa8   : > { %853 = vrot.lane.b32.xlu1 %v5437_v20, %s4810_s30 }
  0xa9   : > { %859 = vrot.lane.b32.xlu0 %v5441_v23, %s4810_s30 }
  0xab   : > { %v5485_v11 = vpop.permute.xlu0 %697 }
  0xac   : > { %857 = vrot.lane.b32.xlu1 %v5445_v18, %s4810_s30  ;;  %8275 = vst [vmem:[#allocation38_spill] sm:$0xff] %v5485_v11 }
  0xad   : > { %863 = vrot.lane.b32.xlu0 %v5449_v21, %s4810_s30 }
  0xb0   : > { %861 = vrot.lane.b32.xlu1 %v5453_v16, %s4810_s30 }
  0xb1   : > { %867 = vrot.lane.b32.xlu0 %v5457_v19, %s4810_s30 }
  0xb4   : > { %865 = vrot.lane.b32.xlu1 %v5461_v14, %s4810_s30 }
  0xb5   : > { %871 = vrot.lane.b32.xlu0 %v5465_v17, %s4810_s30 }
  0xb8   : > { %869 = vrot.lane.b32.xlu1 %v5469_v12, %s4810_s30 }
  0xb9   : > { %875 = vrot.lane.b32.xlu0 %v5473_v15, %s4810_s30 }
  0xbc   : > { %873 = vrot.lane.b32.xlu1 %v5479_v13, %s4810_s30 }
  0xbd   : > { %879 = vrot.lane.b32.xlu0 %v5483_v6, %s4810_s30 }
  0xbe   : > { %v5493_v9 = vpop.permute.xlu1 %699 }
  0xbf   : > { %8277 = vst [vmem:[#allocation40_spill] sm:$0xff] %v5493_v9  ;;  %v5497_v5 = vpop.permute.xlu0 %703  ;;  %v376_v9 = vld [vmem:[#allocation2 + $0x18] sm:$0xff] }
  0xc0   : > { %8279 = vst [vmem:[#allocation42_spill] sm:$0xff] %v5497_v5  ;;  %877 = vrot.lane.b32.xlu1 %v5489_v4, %s4810_s30 }
  0xc1   : > { %883 = vrot.lane.b32.xlu0 %v5495_v2, %s4810_s30  ;;  %v5520_v2 = vld [vmem:[#allocation2 + $0x30] sm:$0xff] }
  0xc2   : > { %v5505_v3 = vpop.permute.xlu1 %701  ;;  %8286 = vst [vmem:[#allocation49_spill] sm:$0xff] %v5520_v2 }
  0xc3   : > { %8281 = vst [vmem:[#allocation44_spill] sm:$0xff] %v5505_v3  ;;  %v5507_v11 = vpop.permute.xlu0 %707  ;;  %v377_v3 = vld [vmem:[#allocation2 + $0x20] sm:$0xff] }
  0xc4   : > { %8282 = vst [vmem:[#allocation45_spill] sm:$0xff] %v5507_v11  ;;  %881 = vrot.lane.b32.xlu1 %v5501_v1, %s4810_s30 }
  0xc5   : > { %951 = vrot.lane.b32.xlu0 %v376_v9, %s4811_s7  ;;  %v5529_v9 = vld [vmem:[#allocation2 + $0x48] sm:$0xff] }
  0xc6   : > { %v5514_v5 = vpop.permute.xlu1 %705  ;;  %8289 = vst [vmem:[#allocation52_spill] sm:$0xff] %v5529_v9 }
  0xc7   : > { %8284 = vst [vmem:[#allocation47_spill] sm:$0xff] %v5514_v5  ;;  %v5516_v4 = vpop.permute.xlu0 %711  ;;  %v5535_v5 = vld [vmem:[#allocation2 + $0x38] sm:$0xff] }
  0xc8   : > { %8285 = vst [vmem:[#allocation48_spill] sm:$0xff] %v5516_v4  ;;  %885 = vrot.lane.b32.xlu1 %v5511_v10, %s4810_s30  ;;  %8291 = vst [vmem:[#allocation54_spill] sm:$0xff] %v5535_v5 }
  0xc9   : > { %955 = vrot.lane.b32.xlu0 %v5520_v2, %s4811_s7 }
  0xca   : > { %v5524_v11 = vpop.permute.xlu1 %709 }
  0xcb   : > { %8287 = vst [vmem:[#allocation50_spill] sm:$0xff] %v5524_v11  ;;  %v5526_v1 = vpop.permute.xlu0 %715  ;;  %v5541_v11 = vld [vmem:[#allocation2 + $0x60] sm:$0xff] }
  0xcc   : > { %8288 = vst [vmem:[#allocation51_spill] sm:$0xff] %v5526_v1  ;;  %953 = vrot.lane.b32.xlu1 %v377_v3, %s4811_s7  ;;  %8293 = vst [vmem:[#allocation56_spill] sm:$0xff] %v5541_v11  ;;  %v5547_v1 = vld [vmem:[#allocation2 + $0x50] sm:$0xff] }
  0xcd   : > { %959 = vrot.lane.b32.xlu0 %v5529_v9, %s4811_s7  ;;  %8295 = vst [vmem:[#allocation58_spill] sm:$0xff] %v5547_v1 }
  0xce   : > { %v5533_v4 = vpop.permute.xlu1 %713 }
  0xcf   : > { %8290 = vst [vmem:[#allocation53_spill] sm:$0xff] %v5533_v4  ;;  %v5537_v10 = vpop.permute.xlu0 %719  ;;  %v5553_v4 = vld [vmem:[#allocation2 + $0x78] sm:$0xff] }
  0xd0   : > { %8292 = vst [vmem:[#allocation55_spill] sm:$0xff] %v5537_v10  ;;  %957 = vrot.lane.b32.xlu1 %v5535_v5, %s4811_s7  ;;  %8297 = vst [vmem:[#allocation60_spill] sm:$0xff] %v5553_v4  ;;  %v5559_v5 = vld [vmem:[#allocation2 + $0x68] sm:$0xff] }
  0xd1   : > { %963 = vrot.lane.b32.xlu0 %v5541_v11, %s4811_s7  ;;  %8299 = vst [vmem:[#allocation62_spill] sm:$0xff] %v5559_v5 }
  0xd2   : > { %v5545_v3 = vpop.permute.xlu1 %717 }
  0xd3   : > { %8294 = vst [vmem:[#allocation57_spill] sm:$0xff] %v5545_v3  ;;  %v5549_v2 = vpop.permute.xlu0 %723  ;;  %v5565_v3 = vld [vmem:[#allocation2 + $0x90] sm:$0xff] }
  0xd4   : > { %8296 = vst [vmem:[#allocation59_spill] sm:$0xff] %v5549_v2  ;;  %961 = vrot.lane.b32.xlu1 %v5547_v1, %s4811_s7  ;;  %8301 = vst [vmem:[#allocation64_spill] sm:$0xff] %v5565_v3  ;;  %v5571_v1 = vld [vmem:[#allocation2 + $0x80] sm:$0xff] }
  0xd5   : > { %967 = vrot.lane.b32.xlu0 %v5553_v4, %s4811_s7  ;;  %8303 = vst [vmem:[#allocation66_spill] sm:$0xff] %v5571_v1 }
  0xd6   : > { %v5557_v10 = vpop.permute.xlu1 %721 }
  0xd7   : > { %8298 = vst [vmem:[#allocation61_spill] sm:$0xff] %v5557_v10  ;;  %v5561_v9 = vpop.permute.xlu0 %727  ;;  %v5577_v10 = vld [vmem:[#allocation2 + $0xa8] sm:$0xff] }
  0xd8   : > { %8300 = vst [vmem:[#allocation63_spill] sm:$0xff] %v5561_v9  ;;  %965 = vrot.lane.b32.xlu1 %v5559_v5, %s4811_s7  ;;  %8305 = vst [vmem:[#allocation68_spill] sm:$0xff] %v5577_v10  ;;  %v5583_v5 = vld [vmem:[#allocation2 + $0x98] sm:$0xff] }
  0xd9   : > { %971 = vrot.lane.b32.xlu0 %v5565_v3, %s4811_s7  ;;  %8307 = vst [vmem:[#allocation70_spill] sm:$0xff] %v5583_v5 }
  0xda   : > { %v5569_v2 = vpop.permute.xlu1 %725 }
  0xdb   : > { %8302 = vst [vmem:[#allocation65_spill] sm:$0xff] %v5569_v2  ;;  %v5573_v11 = vpop.permute.xlu0 %731  ;;  %v5589_v2 = vld [vmem:[#allocation2 + $0xc0] sm:$0xff] }
  0xdc   : > { %8304 = vst [vmem:[#allocation67_spill] sm:$0xff] %v5573_v11  ;;  %969 = vrot.lane.b32.xlu1 %v5571_v1, %s4811_s7  ;;  %8309 = vst [vmem:[#allocation72_spill] sm:$0xff] %v5589_v2  ;;  %v5595_v1 = vld [vmem:[#allocation2 + $0xb0] sm:$0xff] }
  0xdd   : > { %975 = vrot.lane.b32.xlu0 %v5577_v10, %s4811_s7  ;;  %8311 = vst [vmem:[#allocation74_spill] sm:$0xff] %v5595_v1 }
  0xde   : > { %v5581_v9 = vpop.permute.xlu1 %729 }
  0xdf   : > { %8306 = vst [vmem:[#allocation69_spill] sm:$0xff] %v5581_v9  ;;  %v5585_v4 = vpop.permute.xlu0 %735  ;;  %v5601_v9 = vld [vmem:[#allocation2 + $0xd8] sm:$0xff] }
  0xe0   : > { %8308 = vst [vmem:[#allocation71_spill] sm:$0xff] %v5585_v4  ;;  %973 = vrot.lane.b32.xlu1 %v5583_v5, %s4811_s7  ;;  %8313 = vst [vmem:[#allocation76_spill] sm:$0xff] %v5601_v9  ;;  %v5607_v5 = vld [vmem:[#allocation2 + $0xc8] sm:$0xff] }
  0xe1   : > { %979 = vrot.lane.b32.xlu0 %v5589_v2, %s4811_s7  ;;  %8315 = vst [vmem:[#allocation78_spill] sm:$0xff] %v5607_v5 }
  0xe2   : > { %v5593_v11 = vpop.permute.xlu1 %733 }
  0xe3   : > { %8310 = vst [vmem:[#allocation73_spill] sm:$0xff] %v5593_v11  ;;  %v5597_v3 = vpop.permute.xlu0 %739  ;;  %v5613_v11 = vld [vmem:[#allocation2 + $0xf0] sm:$0xff] }
  0xe4   : > { %8312 = vst [vmem:[#allocation75_spill] sm:$0xff] %v5597_v3  ;;  %977 = vrot.lane.b32.xlu1 %v5595_v1, %s4811_s7  ;;  %8317 = vst [vmem:[#allocation80_spill] sm:$0xff] %v5613_v11  ;;  %v5619_v1 = vld [vmem:[#allocation2 + $0xe0] sm:$0xff] }
  0xe5   : > { %983 = vrot.lane.b32.xlu0 %v5601_v9, %s4811_s7  ;;  %8319 = vst [vmem:[#allocation82_spill] sm:$0xff] %v5619_v1 }
  0xe6   : > { %v5605_v4 = vpop.permute.xlu1 %737 }
  0xe7   : > { %8314 = vst [vmem:[#allocation77_spill] sm:$0xff] %v5605_v4  ;;  %v5609_v10 = vpop.permute.xlu0 %743  ;;  %v5625_v4 = vld [vmem:[#allocation2 + $0x108] sm:$0xff] }
  0xe8   : > { %8316 = vst [vmem:[#allocation79_spill] sm:$0xff] %v5609_v10  ;;  %981 = vrot.lane.b32.xlu1 %v5607_v5, %s4811_s7  ;;  %8321 = vst [vmem:[#allocation84_spill] sm:$0xff] %v5625_v4  ;;  %v5631_v5 = vld [vmem:[#allocation2 + $0xf8] sm:$0xff] }
  0xe9   : > { %987 = vrot.lane.b32.xlu0 %v5613_v11, %s4811_s7  ;;  %8323 = vst [vmem:[#allocation86_spill] sm:$0xff] %v5631_v5 }
  0xea   : > { %v5617_v3 = vpop.permute.xlu1 %741 }
  0xeb   : > { %8318 = vst [vmem:[#allocation81_spill] sm:$0xff] %v5617_v3  ;;  %v5621_v2 = vpop.permute.xlu0 %747  ;;  %v5637_v3 = vld [vmem:[#allocation2 + $0x120] sm:$0xff] }
  0xec   : > { %8320 = vst [vmem:[#allocation83_spill] sm:$0xff] %v5621_v2  ;;  %985 = vrot.lane.b32.xlu1 %v5619_v1, %s4811_s7  ;;  %8325 = vst [vmem:[#allocation88_spill] sm:$0xff] %v5637_v3  ;;  %v5643_v1 = vld [vmem:[#allocation2 + $0x110] sm:$0xff] }
  0xed   : > { %991 = vrot.lane.b32.xlu0 %v5625_v4, %s4811_s7  ;;  %8327 = vst [vmem:[#allocation90_spill] sm:$0xff] %v5643_v1 }
  0xee   : > { %v5629_v10 = vpop.permute.xlu1 %745 }
  0xef   : > { %8322 = vst [vmem:[#allocation85_spill] sm:$0xff] %v5629_v10  ;;  %v5633_v9 = vpop.permute.xlu0 %751  ;;  %v5649_v10 = vld [vmem:[#allocation2 + $0x138] sm:$0xff] }
  0xf0   : > { %8324 = vst [vmem:[#allocation87_spill] sm:$0xff] %v5633_v9  ;;  %989 = vrot.lane.b32.xlu1 %v5631_v5, %s4811_s7  ;;  %8329 = vst [vmem:[#allocation92_spill] sm:$0xff] %v5649_v10  ;;  %v5655_v5 = vld [vmem:[#allocation2 + $0x128] sm:$0xff] }
  0xf1   : > { %995 = vrot.lane.b32.xlu0 %v5637_v3, %s4811_s7  ;;  %8331 = vst [vmem:[#allocation94_spill] sm:$0xff] %v5655_v5 }
  0xf2   : > { %v5641_v2 = vpop.permute.xlu1 %749 }
  0xf3   : > { %8326 = vst [vmem:[#allocation89_spill] sm:$0xff] %v5641_v2  ;;  %v5645_v11 = vpop.permute.xlu0 %755  ;;  %v5661_v2 = vld [vmem:[#allocation2 + $0x150] sm:$0xff] }
  0xf4   : > { %8328 = vst [vmem:[#allocation91_spill] sm:$0xff] %v5645_v11  ;;  %993 = vrot.lane.b32.xlu1 %v5643_v1, %s4811_s7  ;;  %8333 = vst [vmem:[#allocation96_spill] sm:$0xff] %v5661_v2  ;;  %v5667_v1 = vld [vmem:[#allocation2 + $0x140] sm:$0xff] }
  0xf5   : > { %999 = vrot.lane.b32.xlu0 %v5649_v10, %s4811_s7  ;;  %8335 = vst [vmem:[#allocation98_spill] sm:$0xff] %v5667_v1  ;;  %v5681_v10 = vld [vmem:[#allocation2 + $0x180] sm:$0xff] }
  0xf6   : > { %v5653_v9 = vpop.permute.xlu1 %753 }
  0xf7   : > { %8330 = vst [vmem:[#allocation93_spill] sm:$0xff] %v5653_v9  ;;  %v5657_v4 = vpop.permute.xlu0 %823  ;;  %v5673_v9 = vld [vmem:[#allocation2 + $0x168] sm:$0xff] }
  0xf8   : > { %8332 = vst [vmem:[#allocation95_spill] sm:$0xff] %v5657_v4  ;;  %997 = vrot.lane.b32.xlu1 %v5655_v5, %s4811_s7  ;;  %v5679_v5 = vld [vmem:[#allocation2 + $0x158] sm:$0xff] }
  0xf9   : > { %1003 = vrot.lane.b32.xlu0 %v5661_v2, %s4811_s7  ;;  %8338 = vst [vmem:[#allocation101_spill] sm:$0xff] %v5679_v5 }
  0xfa   : > { %v5665_v11 = vpop.permute.xlu1 %757 }
  0xfb   : > { %8334 = vst [vmem:[#allocation97_spill] sm:$0xff] %v5665_v11  ;;  %v5669_v3 = vpop.permute.xlu0 %827 }
  0xfc   : > { %8336 = vst [vmem:[#allocation99_spill] sm:$0xff] %v5669_v3  ;;  %1001 = vrot.lane.b32.xlu1 %v5667_v1, %s4811_s7  ;;  %v5691_v3 = vld [vmem:[#allocation2 + $0x170] sm:$0xff] }
  0xfd   : > { %1007 = vrot.lane.b32.xlu0 %v5673_v9, %s4811_s7 }
  0xfe   : > { %v5677_v4 = vpop.permute.xlu1 %825 }
  0xff   : > { %8337 = vst [vmem:[#allocation100_spill] sm:$0xff] %v5677_v4  ;;  %v5683_v2 = vpop.permute.xlu0 %831  ;;  %v5697_v4 = vld [vmem:[#allocation2 + $0x188] sm:$0xff] }
 0x100   : > { %8339 = vst [vmem:[#allocation102_spill] sm:$0xff] %v5683_v2  ;;  %1005 = vrot.lane.b32.xlu1 %v5679_v5, %s4811_s7 }
 0x101   : > { %1011 = vrot.lane.b32.xlu0 %v5681_v10, %s4811_s7 }
 0x102   : > { %v5689_v11 = vpop.permute.xlu1 %829 }
 0x103   : > { %8340 = vst [vmem:[#allocation103_spill] sm:$0xff] %v5689_v11  ;;  %v5693_v1 = vpop.permute.xlu0 %835 }
 0x104   : > { %8341 = vst [vmem:[#allocation104_spill] sm:$0xff] %v5693_v1  ;;  %1009 = vrot.lane.b32.xlu1 %v5691_v3, %s4811_s7 }
 0x105   : > { %1079 = vrot.lane.b32.xlu0 %v5205_v25, %s4812_s8 }
 0x106   : > { %v5701_v2 = vpop.permute.xlu1 %833 }
 0x107   : > { %8342 = vst [vmem:[#allocation105_spill] sm:$0xff] %v5701_v2  ;;  %v5703_v5 = vpop.permute.xlu0 %839 }
 0x108   : > { %8343 = vst [vmem:[#allocation106_spill] sm:$0xff] %v5703_v5  ;;  %1013 = vrot.lane.b32.xlu1 %v5697_v4, %s4811_s7 }
 0x109   : > { %1083 = vrot.lane.b32.xlu0 %v5207_v26, %s4812_s8 }
 0x10a   : > { %v5709_v1 = vpop.permute.xlu1 %837 }
 0x10b   : > { %v5711_v11 = vpop.permute.xlu0 %843 }
 0x10c   : > { %1081 = vrot.lane.b32.xlu1 %v5217_v27, %s4812_s8 }
 0x10d   : > { %1087 = vrot.lane.b32.xlu0 %v5231_v30, %s4812_s8 }
 0x10e   : > { %v5717_v25 = vpop.permute.xlu1 %841 }
 0x10f   : > { %v5719_v2 = vpop.permute.xlu0 %847 }
 0x110   : > { %8344 = vst [vmem:[#allocation107_spill] sm:$0xff] %v5719_v2  ;;  %1085 = vrot.lane.b32.xlu1 %v5235_v31, %s4812_s8 }
 0x111   : > { %1091 = vrot.lane.b32.xlu0 %v5239_v32, %s4812_s8 }
 0x112   : > { %v5725_v26 = vpop.permute.xlu1 %845 }
 0x113   : > { %8345 = vst [vmem:[#allocation108_spill] sm:$0xff] %v5725_v26  ;;  %v5727_v5 = vpop.permute.xlu0 %851  ;;  %v4754_v26 = vld [vmem:[#allocation2 + $0x30] sm:$0xff] }
 0x114   : > { %8346 = vst [vmem:[#allocation109_spill] sm:$0xff] %v5727_v5  ;;  %1089 = vrot.lane.b32.xlu1 %v5264_v38, %s4812_s8  ;;  %v642_v5 = vld [vmem:[#allocation2 + $0xb2] sm:$0xff] }
 0x115   : > { %1095 = vrot.lane.b32.xlu0 %v5277_v40, %s4812_s8 }
 0x116   : > { %v5733_v27 = vpop.permute.xlu1 %849 }
 0x117   : > { %8347 = vst [vmem:[#allocation110_spill] sm:$0xff] %v5733_v27  ;;  %v5735_v30 = vpop.permute.xlu0 %855  ;;  %v648_v27 = vld [vmem:[#allocation2 + $0xfa] sm:$0xff] }
 0x118   : > { %8348 = vst [vmem:[#allocation111_spill] sm:$0xff] %v5735_v30  ;;  %1093 = vrot.lane.b32.xlu1 %v5281_v41, %s4812_s8 }
 0x119   : > { %1099 = vrot.lane.b32.xlu0 %v5285_v42, %s4812_s8 }
 0x11a   : > { %v5741_v31 = vpop.permute.xlu1 %853 }
 0x11b   : > { %8349 = vst [vmem:[#allocation112_spill] sm:$0xff] %v5741_v31  ;;  %v5743_v32 = vpop.permute.xlu0 %859 }
 0x11c   : > { %8350 = vst [vmem:[#allocation113_spill] sm:$0xff] %v5743_v32  ;;  %1097 = vrot.lane.b32.xlu1 %v5289_v43, %s4812_s8 }
 0x11d   : > { %1103 = vrot.lane.b32.xlu0 %v5293_v44, %s4812_s8 }
 0x11e   : > { %v5749_v38 = vpop.permute.xlu1 %857 }
 0x11f   : > { %8351 = vst [vmem:[#allocation114_spill] sm:$0xff] %v5749_v38  ;;  %v5751_v40 = vpop.permute.xlu0 %863  ;;  %v607_v38 = vld [vmem:[#allocation2 + $0x91] sm:$0xff] }
 0x120   : > { %8352 = vst [vmem:[#allocation115_spill] sm:$0xff] %v5751_v40  ;;  %1101 = vrot.lane.b32.xlu1 %v5297_v45, %s4812_s8 }
 0x121   : > { %1107 = vrot.lane.b32.xlu0 %v5301_v46, %s4812_s8 }
 0x122   : > { %v5757_v41 = vpop.permute.xlu1 %861 }
 0x123   : > { %8353 = vst [vmem:[#allocation116_spill] sm:$0xff] %v5757_v41  ;;  %v5759_v42 = vpop.permute.xlu0 %867 }
 0x124   : > { %8354 = vst [vmem:[#allocation117_spill] sm:$0xff] %v5759_v42  ;;  %1105 = vrot.lane.b32.xlu1 %v5305_v47, %s4812_s8  ;;  %v8409_v42 = vld [vmem:[#allocation70_spill] sm:$0xff] }
 0x125   : > { %1111 = vrot.lane.b32.xlu0 %v5309_v48, %s4812_s8 }
 0x126   : > { %v5765_v43 = vpop.permute.xlu1 %865 }
 0x127   : > { %8355 = vst [vmem:[#allocation118_spill] sm:$0xff] %v5765_v43  ;;  %v5767_v44 = vpop.permute.xlu0 %871 }
 0x128   : > { %8356 = vst [vmem:[#allocation119_spill] sm:$0xff] %v5767_v44  ;;  %1109 = vrot.lane.b32.xlu1 %v5313_v49, %s4812_s8  ;;  %v8397_v44 = vld [vmem:[#allocation58_spill] sm:$0xff] }
 0x129   : > { %1115 = vrot.lane.b32.xlu0 %v5317_v50, %s4812_s8 }
 0x12a   : > { %v5773_v45 = vpop.permute.xlu1 %869 }
 0x12b   : > { %8357 = vst [vmem:[#allocation120_spill] sm:$0xff] %v5773_v45  ;;  %v5775_v46 = vpop.permute.xlu0 %875 }
 0x12c   : > { %8358 = vst [vmem:[#allocation121_spill] sm:$0xff] %v5775_v46  ;;  %1113 = vrot.lane.b32.xlu1 %v5321_v51, %s4812_s8 }
 0x12d   : > { %1119 = vrot.lane.b32.xlu0 %v5325_v52, %s4812_s8 }
 0x12e   : > { %v5781_v47 = vpop.permute.xlu1 %873 }
 0x12f   : > { %8359 = vst [vmem:[#allocation122_spill] sm:$0xff] %v5781_v47  ;;  %v5783_v48 = vpop.permute.xlu0 %879  ;;  %v8395_v47 = vld [vmem:[#allocation56_spill] sm:$0xff] }
 0x130   : > { %8360 = vst [vmem:[#allocation123_spill] sm:$0xff] %v5783_v48  ;;  %1117 = vrot.lane.b32.xlu1 %v5329_v53, %s4812_s8 }
 0x131   : > { %1123 = vrot.lane.b32.xlu0 %v5333_v54, %s4812_s8 }
 0x132   : > { %v5789_v49 = vpop.permute.xlu1 %877 }
 0x133   : > { %8361 = vst [vmem:[#allocation124_spill] sm:$0xff] %v5789_v49  ;;  %v5791_v50 = vpop.permute.xlu0 %883 }
 0x134   : > { %8362 = vst [vmem:[#allocation125_spill] sm:$0xff] %v5791_v50  ;;  %1121 = vrot.lane.b32.xlu1 %v5337_v55, %s4812_s8 }
 0x135   : > { %1127 = vrot.lane.b32.xlu0 %v5341_v56, %s4812_s8  ;;  %v5815_v56 = vld [vmem:[#allocation2 + $0x181] sm:$0xff] }
 0x136   : > { %v5797_v51 = vpop.permute.xlu1 %881 }
 0x137   : > { %8363 = vst [vmem:[#allocation126_spill] sm:$0xff] %v5797_v51  ;;  %v5799_v52 = vpop.permute.xlu0 %951 }
 0x138   : > { %1125 = vrot.lane.b32.xlu1 %v5345_v57, %s4812_s8 }
 0x139   : > { %1131 = vrot.lane.b32.xlu0 %v5354_v59, %s4812_s8 }
 0x13a   : > { %v5805_v53 = vpop.permute.xlu1 %885 }
 0x13b   : > { %8364 = vst [vmem:[#allocation127_spill] sm:$0xff] %v5805_v53  ;;  %v5807_v54 = vpop.permute.xlu0 %955 }
 0x13c   : > { %1129 = vrot.lane.b32.xlu1 %v5358_v60, %s4812_s8  ;;  %v5829_v60 = vld [vmem:[#allocation2 + $0x189] sm:$0xff] }
 0x13d   : > { %1135 = vrot.lane.b32.xlu0 %v5362_v61, %s4812_s8 }
 0x13e   : > { %v5813_v55 = vpop.permute.xlu1 %953 }
 0x13f   : > { %v5817_v50 = vpop.permute.xlu0 %959 }
 0x140   : > { %1133 = vrot.lane.b32.xlu1 %v5371_v63, %s4812_s8 }
 0x141   : > { %1139 = vrot.lane.b32.xlu0 %v5815_v56, %s4812_s8 }
 0x142   : > { %v5823_v57 = vpop.permute.xlu1 %957 }
 0x143   : > { %v5825_v59 = vpop.permute.xlu0 %963 }
 0x144   : > { %1137 = vrot.lane.b32.xlu1 %v5377_v7, %s4812_s8 }
 0x145   : > { %1207 = vrot.lane.b32.xlu0 %v5380_v8, %s4813_s9 }
 0x146   : > { %v5833_v61 = vpop.permute.xlu1 %961 }
 0x147   : > { %v5835_v53 = vpop.permute.xlu0 %967 }
 0x148   : > { %1141 = vrot.lane.b32.xlu1 %v5829_v60, %s4812_s8 }
 0x149   : > { %1211 = vrot.lane.b32.xlu0 %v5386_v62, %s4813_s9 }
 0x14a   : > { %v5841_v63 = vpop.permute.xlu1 %965 }
 0x14b   : > { %v5843_v51 = vpop.permute.xlu0 %971 }
 0x14c   : > { %8365 = vst [vmem:[#allocation128_spill] sm:$0xff] %v5843_v51  ;;  %1209 = vrot.lane.b32.xlu1 %v5389_v36, %s4813_s9 }
 0x14d   : > { %1215 = vrot.lane.b32.xlu0 %v5393_v39, %s4813_s9 }
 0x14e   : > { %v5849_v7 = vpop.permute.xlu1 %969 }
 0x14f   : > { %v5851_v8 = vpop.permute.xlu0 %975 }
 0x150   : > { %8366 = vst [vmem:[#allocation129_spill] sm:$0xff] %v5851_v8  ;;  %1213 = vrot.lane.b32.xlu1 %v5397_v0, %s4813_s9 }
 0x151   : > { %1219 = vrot.lane.b32.xlu0 %v5401_v34, %s4813_s9 }
 0x152   : > { %v5857_v62 = vpop.permute.xlu1 %973 }
 0x153   : > { %8367 = vst [vmem:[#allocation130_spill] sm:$0xff] %v5857_v62  ;;  %v5859_v48 = vpop.permute.xlu0 %979 }
 0x154   : > { %8368 = vst [vmem:[#allocation131_spill] sm:$0xff] %v5859_v48  ;;  %1217 = vrot.lane.b32.xlu1 %v5405_v58, %s4813_s9 }
 0x155   : > { %1223 = vrot.lane.b32.xlu0 %v5409_v37, %s4813_s9 }
 0x156   : > { %v5865_v36 = vpop.permute.xlu1 %977 }
 0x157   : > { %8369 = vst [vmem:[#allocation132_spill] sm:$0xff] %v5865_v36  ;;  %v5867_v39 = vpop.permute.xlu0 %983  ;;  %v646_v36 = vld [vmem:[#allocation2 + $0xe2] sm:$0xff] }
 0x158   : > { %8370 = vst [vmem:[#allocation133_spill] sm:$0xff] %v5867_v39  ;;  %1221 = vrot.lane.b32.xlu1 %v5413_v29, %s4813_s9 }
 0x159   : > { %1227 = vrot.lane.b32.xlu0 %v5417_v35, %s4813_s9 }
 0x15a   : > { %v5873_v34 = vpop.permute.xlu1 %981 }
 0x15b   : > { %8371 = vst [vmem:[#allocation134_spill] sm:$0xff] %v5873_v34  ;;  %v5875_v0 = vpop.permute.xlu0 %987  ;;  %v611_v34 = vld [vmem:[#allocation2 + $0xc1] sm:$0xff] }
 0x15c   : > { %8372 = vst [vmem:[#allocation135_spill] sm:$0xff] %v5875_v0  ;;  %1225 = vrot.lane.b32.xlu1 %v5421_v24, %s4813_s9 }
 0x15d   : > { %1231 = vrot.lane.b32.xlu0 %v5425_v33, %s4813_s9 }
 0x15e   : > { %v5881_v37 = vpop.permute.xlu1 %985 }
 0x15f   : > { %8373 = vst [vmem:[#allocation136_spill] sm:$0xff] %v5881_v37  ;;  %v5883_v58 = vpop.permute.xlu0 %991  ;;  %v605_v37 = vld [vmem:[#allocation2 + $0x79] sm:$0xff] }
 0x160   : > { %8374 = vst [vmem:[#allocation137_spill] sm:$0xff] %v5883_v58  ;;  %1229 = vrot.lane.b32.xlu1 %v5429_v22, %s4813_s9  ;;  %v8405_v58 = vld [vmem:[#allocation66_spill] sm:$0xff] }
 0x161   : > { %1235 = vrot.lane.b32.xlu0 %v5433_v28, %s4813_s9 }
 0x162   : > { %v5889_v29 = vpop.permute.xlu1 %989 }
 0x163   : > { %8375 = vst [vmem:[#allocation138_spill] sm:$0xff] %v5889_v29  ;;  %v5891_v35 = vpop.permute.xlu0 %995  ;;  %v8413_v29 = vld [vmem:[#allocation74_spill] sm:$0xff] }
 0x164   : > { %8376 = vst [vmem:[#allocation139_spill] sm:$0xff] %v5891_v35  ;;  %1233 = vrot.lane.b32.xlu1 %v5437_v20, %s4813_s9  ;;  %v8401_v35 = vld [vmem:[#allocation62_spill] sm:$0xff] }
 0x165   : > { %1239 = vrot.lane.b32.xlu0 %v5441_v23, %s4813_s9 }
 0x166   : > { %v5897_v24 = vpop.permute.xlu1 %993 }
 0x167   : > { %8377 = vst [vmem:[#allocation140_spill] sm:$0xff] %v5897_v24  ;;  %v5899_v33 = vpop.permute.xlu0 %999 }
 0x168   : > { %8378 = vst [vmem:[#allocation141_spill] sm:$0xff] %v5899_v33  ;;  %1237 = vrot.lane.b32.xlu1 %v5445_v18, %s4813_s9 }
 0x169   : > { %1243 = vrot.lane.b32.xlu0 %v5449_v21, %s4813_s9 }
 0x16a   : > { %v5905_v22 = vpop.permute.xlu1 %997 }
 0x16b   : > { %8379 = vst [vmem:[#allocation142_spill] sm:$0xff] %v5905_v22  ;;  %v5907_v28 = vpop.permute.xlu0 %1003  ;;  %v8398_v22 = vld [vmem:[#allocation60_spill] sm:$0xff] }
 0x16c   : > { %8380 = vst [vmem:[#allocation143_spill] sm:$0xff] %v5907_v28  ;;  %1241 = vrot.lane.b32.xlu1 %v5453_v16, %s4813_s9 }
 0x16d   : > { %1247 = vrot.lane.b32.xlu0 %v5457_v19, %s4813_s9 }
 0x16e   : > { %v5913_v20 = vpop.permute.xlu1 %1001 }
 0x16f   : > { %8381 = vst [vmem:[#allocation144_spill] sm:$0xff] %v5913_v20  ;;  %v5915_v23 = vpop.permute.xlu0 %1007 }
 0x170   : > { %8382 = vst [vmem:[#allocation145_spill] sm:$0xff] %v5915_v23  ;;  %1245 = vrot.lane.b32.xlu1 %v5461_v14, %s4813_s9 }
 0x171   : > { %1251 = vrot.lane.b32.xlu0 %v5465_v17, %s4813_s9 }
 0x172   : > { %v5921_v18 = vpop.permute.xlu1 %1005 }
 0x173   : > { %8383 = vst [vmem:[#allocation146_spill] sm:$0xff] %v5921_v18  ;;  %v5923_v21 = vpop.permute.xlu0 %1011  ;;  %v8391_v18 = vld [vmem:[#allocation49_spill] sm:$0xff] }
 0x174   : > { %8384 = vst [vmem:[#allocation147_spill] sm:$0xff] %v5923_v21  ;;  %1249 = vrot.lane.b32.xlu1 %v5469_v12, %s4813_s9  ;;  %v8387_v21 = vld [vmem:[#allocation39_spill] sm:$0xff]  ;;  %v8388_v12 = vld [vmem:[#allocation41_spill] sm:$0xff] }
 0x175   : > { %1255 = vrot.lane.b32.xlu0 %v5473_v15, %s4813_s9 }
 0x176   : > { %v5929_v16 = vpop.permute.xlu1 %1009 }
 0x177   : > { %8385 = vst [vmem:[#allocation148_spill] sm:$0xff] %v5929_v16  ;;  %v5931_v19 = vpop.permute.xlu0 %1079  ;;  %v5947_v16 = vld [vmem:[#allocation2 + $0x182] sm:$0xff] }
 0x178   : > { %1253 = vrot.lane.b32.xlu1 %v5479_v13, %s4813_s9  ;;  %v8389_v13 = vld [vmem:[#allocation43_spill] sm:$0xff] }
 0x179   : > { %1259 = vrot.lane.b32.xlu0 %v5483_v6, %s4813_s9 }
 0x17a   : > { %v5937_v14 = vpop.permute.xlu1 %1013 }
 0x17b   : > { %8386 = vst [vmem:[#allocation149_spill] sm:$0xff] %v5937_v14  ;;  %v5939_v17 = vpop.permute.xlu0 %1083 }
 0x17c   : > { %1257 = vrot.lane.b32.xlu1 %v8387_v21, %s4813_s9  ;;  %v8390_v21 = vld [vmem:[#allocation46_spill] sm:$0xff] }
 0x17d   : > { %1263 = vrot.lane.b32.xlu0 %v8388_v12, %s4813_s9  ;;  %v5961_v12 = vld [vmem:[#allocation2 + $0x18a] sm:$0xff] }
 0x17e   : > { %v5945_v15 = vpop.permute.xlu1 %1081 }
 0x17f   : > { %v5949_v23 = vpop.permute.xlu0 %1087 }
 0x180   : > { %1261 = vrot.lane.b32.xlu1 %v8389_v13, %s4813_s9  ;;  %v8392_v13 = vld [vmem:[#allocation52_spill] sm:$0xff] }
 0x181   : > { %1267 = vrot.lane.b32.xlu0 %v5947_v16, %s4813_s9 }
 0x182   : > { %v5955_v6 = vpop.permute.xlu1 %1085 }
 0x183   : > { %v5957_v14 = vpop.permute.xlu0 %1091 }
 0x184   : > { %1265 = vrot.lane.b32.xlu1 %v8390_v21, %s4813_s9  ;;  %v8394_v21 = vld [vmem:[#allocation54_spill] sm:$0xff] }
 0x185   : > { %1335 = vrot.lane.b32.xlu0 %v8391_v18, %s4814_s10 }
 0x186   : > { %v5965_v49 = vpop.permute.xlu1 %1089 }
 0x187   : > { %v5967_v28 = vpop.permute.xlu0 %1095 }
 0x188   : > { %1269 = vrot.lane.b32.xlu1 %v5961_v12, %s4813_s9 }
 0x189   : > { %1339 = vrot.lane.b32.xlu0 %v8392_v13, %s4814_s10 }
 0x18a   : > { %v5973_v46 = vpop.permute.xlu1 %1093 }
 0x18b   : > { %v5975_v20 = vpop.permute.xlu0 %1099 }
 0x18c   : > { %8393 = vst [vmem:[#allocation39_spill] sm:$0xff] %v5975_v20  ;;  %1337 = vrot.lane.b32.xlu1 %v8394_v21, %s4814_s10  ;;  %v8402_v21 = vld [vmem:[#allocation64_spill] sm:$0xff] }
 0x18d   : > { %1343 = vrot.lane.b32.xlu0 %v8395_v47, %s4814_s10 }
 0x18e   : > { %v5981_v18 = vpop.permute.xlu1 %1097 }
 0x18f   : > { %v5983_v33 = vpop.permute.xlu0 %1103 }
 0x190   : > { %8396 = vst [vmem:[#allocation41_spill] sm:$0xff] %v5983_v33  ;;  %1341 = vrot.lane.b32.xlu1 %v8397_v44, %s4814_s10  ;;  %v8406_v44 = vld [vmem:[#allocation68_spill] sm:$0xff] }
 0x191   : > { %1347 = vrot.lane.b32.xlu0 %v8398_v22, %s4814_s10 }
 0x192   : > { %v5989_v13 = vpop.permute.xlu1 %1101 }
 0x193   : > { %8399 = vst [vmem:[#allocation43_spill] sm:$0xff] %v5989_v13  ;;  %v5991_v45 = vpop.permute.xlu0 %1107 }
 0x194   : > { %8400 = vst [vmem:[#allocation46_spill] sm:$0xff] %v5991_v45  ;;  %1345 = vrot.lane.b32.xlu1 %v8401_v35, %s4814_s10  ;;  %v8410_v35 = vld [vmem:[#allocation72_spill] sm:$0xff] }
 0x195   : > { %1351 = vrot.lane.b32.xlu0 %v8402_v21, %s4814_s10 }
 0x196   : > { %v5997_v47 = vpop.permute.xlu1 %1105 }
 0x197   : > { %8403 = vst [vmem:[#allocation49_spill] sm:$0xff] %v5997_v47  ;;  %v5999_v24 = vpop.permute.xlu0 %1111  ;;  %v644_v47 = vld [vmem:[#allocation2 + $0xca] sm:$0xff] }
 0x198   : > { %8404 = vst [vmem:[#allocation52_spill] sm:$0xff] %v5999_v24  ;;  %1349 = vrot.lane.b32.xlu1 %v8405_v58, %s4814_s10  ;;  %v8414_v58 = vld [vmem:[#allocation76_spill] sm:$0xff] }
 0x199   : > { %1355 = vrot.lane.b32.xlu0 %v8406_v44, %s4814_s10 }
 0x19a   : > { %v6005_v22 = vpop.permute.xlu1 %1109 }
 0x19b   : > { %8407 = vst [vmem:[#allocation54_spill] sm:$0xff] %v6005_v22  ;;  %v6007_v43 = vpop.permute.xlu0 %1115  ;;  %v609_v22 = vld [vmem:[#allocation2 + $0xa9] sm:$0xff] }
 0x19c   : > { %8408 = vst [vmem:[#allocation56_spill] sm:$0xff] %v6007_v43  ;;  %1353 = vrot.lane.b32.xlu1 %v8409_v42, %s4814_s10  ;;  %v8417_v43 = vld [vmem:[#allocation78_spill] sm:$0xff]  ;;  %v8418_v42 = vld [vmem:[#allocation80_spill] sm:$0xff] }
 0x19d   : > { %1359 = vrot.lane.b32.xlu0 %v8410_v35, %s4814_s10 }
 0x19e   : > { %v6013_v21 = vpop.permute.xlu1 %1113 }
 0x19f   : > { %8411 = vst [vmem:[#allocation58_spill] sm:$0xff] %v6013_v21  ;;  %v6015_v40 = vpop.permute.xlu0 %1119  ;;  %v603_v21 = vld [vmem:[#allocation2 + $0x61] sm:$0xff] }
 0x1a0   : > { %8412 = vst [vmem:[#allocation60_spill] sm:$0xff] %v6015_v40  ;;  %1357 = vrot.lane.b32.xlu1 %v8413_v29, %s4814_s10  ;;  %v8421_v40 = vld [vmem:[#allocation82_spill] sm:$0xff]  ;;  %v8422_v29 = vld [vmem:[#allocation84_spill] sm:$0xff] }
 0x1a1   : > { %1363 = vrot.lane.b32.xlu0 %v8414_v58, %s4814_s10 }
 0x1a2   : > { %v6021_v44 = vpop.permute.xlu1 %1117 }
 0x1a3   : > { %8415 = vst [vmem:[#allocation62_spill] sm:$0xff] %v6021_v44  ;;  %v6023_v0 = vpop.permute.xlu0 %1123 }
 0x1a4   : > { %8416 = vst [vmem:[#allocation64_spill] sm:$0xff] %v6023_v0  ;;  %1361 = vrot.lane.b32.xlu1 %v8417_v43, %s4814_s10  ;;  %v8425_v0 = vld [vmem:[#allocation86_spill] sm:$0xff]  ;;  %v8426_v43 = vld [vmem:[#allocation88_spill] sm:$0xff] }
 0x1a5   : > { %1367 = vrot.lane.b32.xlu0 %v8418_v42, %s4814_s10 }
 0x1a6   : > { %v6029_v35 = vpop.permute.xlu1 %1121 }
 0x1a7   : > { %8419 = vst [vmem:[#allocation66_spill] sm:$0xff] %v6029_v35  ;;  %v6031_v41 = vpop.permute.xlu0 %1127 }
 0x1a8   : > { %8420 = vst [vmem:[#allocation68_spill] sm:$0xff] %v6031_v41  ;;  %1365 = vrot.lane.b32.xlu1 %v8421_v40, %s4814_s10  ;;  %v8429_v41 = vld [vmem:[#allocation90_spill] sm:$0xff]  ;;  %v8430_v40 = vld [vmem:[#allocation92_spill] sm:$0xff] }
 0x1a9   : > { %1371 = vrot.lane.b32.xlu0 %v8422_v29, %s4814_s10 }
 0x1aa   : > { %v6037_v58 = vpop.permute.xlu1 %1125 }
 0x1ab   : > { %8423 = vst [vmem:[#allocation70_spill] sm:$0xff] %v6037_v58  ;;  %v6039_v44 = vpop.permute.xlu0 %1131 }
 0x1ac   : > { %8424 = vst [vmem:[#allocation72_spill] sm:$0xff] %v6039_v44  ;;  %1369 = vrot.lane.b32.xlu1 %v8425_v0, %s4814_s10  ;;  %v8433_v44 = vld [vmem:[#allocation94_spill] sm:$0xff]  ;;  %v8434_v0 = vld [vmem:[#allocation96_spill] sm:$0xff] }
 0x1ad   : > { %1375 = vrot.lane.b32.xlu0 %v8426_v43, %s4814_s10 }
 0x1ae   : > { %v6045_v42 = vpop.permute.xlu1 %1129 }
 0x1af   : > { %8427 = vst [vmem:[#allocation74_spill] sm:$0xff] %v6045_v42  ;;  %v6047_v35 = vpop.permute.xlu0 %1135 }
 0x1b0   : > { %8428 = vst [vmem:[#allocation76_spill] sm:$0xff] %v6047_v35  ;;  %1373 = vrot.lane.b32.xlu1 %v8429_v41, %s4814_s10  ;;  %v8436_v35 = vld [vmem:[#allocation98_spill] sm:$0xff] }
 0x1b1   : > { %1379 = vrot.lane.b32.xlu0 %v8430_v40, %s4814_s10 }
 0x1b2   : > { %v6053_v29 = vpop.permute.xlu1 %1133 }
 0x1b3   : > { %8431 = vst [vmem:[#allocation78_spill] sm:$0xff] %v6053_v29  ;;  %v6055_v58 = vpop.permute.xlu0 %1139  ;;  %v601_v29 = vld [vmem:[#allocation2 + $0x49] sm:$0xff] }
 0x1b4   : > { %8432 = vst [vmem:[#allocation80_spill] sm:$0xff] %v6055_v58  ;;  %1377 = vrot.lane.b32.xlu1 %v8433_v44, %s4814_s10  ;;  %v8438_v58 = vld [vmem:[#allocation101_spill] sm:$0xff] }
 0x1b5   : > { %1383 = vrot.lane.b32.xlu0 %v8434_v0, %s4814_s10  ;;  %v597_v0 = vld [vmem:[#allocation2 + $0x198] sm:$0xff] }
 0x1b6   : > { %v6061_v43 = vpop.permute.xlu1 %1137 }
 0x1b7   : > { %8435 = vst [vmem:[#allocation82_spill] sm:$0xff] %v6061_v43  ;;  %v6063_v42 = vpop.permute.xlu0 %1207 }
 0x1b8   : > { %1381 = vrot.lane.b32.xlu1 %v8436_v35, %s4814_s10  ;;  %v599_v35 = vld [vmem:[#allocation2 + $0x31] sm:$0xff] }
 0x1b9   : > { %1387 = vrot.lane.b32.xlu0 %v5673_v9, %s4814_s10 }
 0x1ba   : > { %v6069_v41 = vpop.permute.xlu1 %1141 }
 0x1bb   : > { %8437 = vst [vmem:[#allocation84_spill] sm:$0xff] %v6069_v41  ;;  %v6071_v40 = vpop.permute.xlu0 %1211 }
 0x1bc   : > { %1385 = vrot.lane.b32.xlu1 %v8438_v58, %s4814_s10  ;;  %v598_v58 = vld [vmem:[#allocation2 + $0x1a0] sm:$0xff] }
 0x1bd   : > { %1391 = vrot.lane.b32.xlu0 %v5681_v10, %s4814_s10 }
 0x1be   : > { %v6077_v44 = vpop.permute.xlu1 %1209 }
 0x1bf   : > { %v6079_v43 = vpop.permute.xlu0 %1215 }
 0x1c0   : > { %1389 = vrot.lane.b32.xlu1 %v5691_v3, %s4814_s10  ;;  %v600_v3 = vld [vmem:[#allocation2 + $0x39] sm:$0xff] }
 0x1c1   : > { %1395 = vrot.lane.b32.xlu0 %v597_v0, %s4814_s10 }
 0x1c2   : > { %v6084_v9 = vpop.permute.xlu1 %1213 }
 0x1c3   : > { %v6086_v41 = vpop.permute.xlu0 %1219 }
 0x1c4   : > { %1393 = vrot.lane.b32.xlu1 %v5697_v4, %s4814_s10  ;;  %v602_v4 = vld [vmem:[#allocation2 + $0x51] sm:$0xff] }
 0x1c5   : > { %1463 = vrot.lane.b32.xlu0 %v599_v35, %s4815_s11 }
 0x1c6   : > { %v6091_v10 = vpop.permute.xlu1 %1217 }
 0x1c7   : > { %v6093_v32 = vpop.permute.xlu0 %1223 }
 0x1c8   : > { %1397 = vrot.lane.b32.xlu1 %v598_v58, %s4814_s10  ;;  %v604_v58 = vld [vmem:[#allocation2 + $0x69] sm:$0xff] }
 0x1c9   : > { %1467 = vrot.lane.b32.xlu0 %v601_v29, %s4815_s11 }
 0x1ca   : > { %v6097_v0 = vpop.permute.xlu1 %1221 }
 0x1cb   : > { %v6099_v24 = vpop.permute.xlu0 %1227 }
 0x1cc   : > { %8439 = vst [vmem:[#allocation86_spill] sm:$0xff] %v6099_v24  ;;  %1465 = vrot.lane.b32.xlu1 %v600_v3, %s4815_s11  ;;  %v606_v3 = vld [vmem:[#allocation2 + $0x81] sm:$0xff] }
 0x1cd   : > { %1471 = vrot.lane.b32.xlu0 %v603_v21, %s4815_s11 }
 0x1ce   : > { %v6103_v35 = vpop.permute.xlu1 %1225 }
 0x1cf   : > { %8440 = vst [vmem:[#allocation88_spill] sm:$0xff] %v6103_v35  ;;  %v6105_v39 = vpop.permute.xlu0 %1231  ;;  %v8505_v35 = vld [vmem:[#allocation100_spill] sm:$0xff] }
 0x1d0   : > { %8441 = vst [vmem:[#allocation90_spill] sm:$0xff] %v6105_v39  ;;  %1469 = vrot.lane.b32.xlu1 %v602_v4, %s4815_s11  ;;  %v608_v4 = vld [vmem:[#allocation2 + $0x99] sm:$0xff] }
 0x1d1   : > { %1475 = vrot.lane.b32.xlu0 %v605_v37, %s4815_s11 }
 0x1d2   : > { %v6109_v29 = vpop.permute.xlu1 %1229 }
 0x1d3   : > { %8442 = vst [vmem:[#allocation92_spill] sm:$0xff] %v6109_v29  ;;  %v6111_v30 = vpop.permute.xlu0 %1235 }
 0x1d4   : > { %8443 = vst [vmem:[#allocation94_spill] sm:$0xff] %v6111_v30  ;;  %1473 = vrot.lane.b32.xlu1 %v604_v58, %s4815_s11  ;;  %v610_v58 = vld [vmem:[#allocation2 + $0xb1] sm:$0xff]  ;;  %v613_v30 = vld [vmem:[#allocation2 + $0xd9] sm:$0xff] }
 0x1d5   : > { %1479 = vrot.lane.b32.xlu0 %v607_v38, %s4815_s11 }
 0x1d6   : > { %v6115_v21 = vpop.permute.xlu1 %1233 }
 0x1d7   : > { %8444 = vst [vmem:[#allocation96_spill] sm:$0xff] %v6115_v21  ;;  %v6117_v45 = vpop.permute.xlu0 %1239 }
 0x1d8   : > { %8445 = vst [vmem:[#allocation98_spill] sm:$0xff] %v6117_v45  ;;  %1477 = vrot.lane.b32.xlu1 %v606_v3, %s4815_s11  ;;  %v612_v3 = vld [vmem:[#allocation2 + $0xc9] sm:$0xff] }
 0x1d9   : > { %1483 = vrot.lane.b32.xlu0 %v609_v22, %s4815_s11 }
 0x1da   : > { %v6121_v37 = vpop.permute.xlu1 %1237 }
 0x1db   : > { %8446 = vst [vmem:[#allocation101_spill] sm:$0xff] %v6121_v37  ;;  %v6123_v48 = vpop.permute.xlu0 %1243  ;;  %v632_v37 = vld [vmem:[#allocation2 + $0x3a] sm:$0xff] }
 0x1dc   : > { %8447 = vst [vmem:[#allocation150_spill] sm:$0xff] %v6123_v48  ;;  %1481 = vrot.lane.b32.xlu1 %v608_v4, %s4815_s11  ;;  %v1954_v48 = vld [vmem:[%s8169_s2 + $0x20] sm:$0xf]  ;;  %v615_v4 = vld [vmem:[#allocation2 + $0xf1] sm:$0xff] }
 0x1dd   : > { %1487 = vrot.lane.b32.xlu0 %v611_v34, %s4815_s11  ;;  %4620 = vmatprep.subr.msk.mxu0 %vm2059_vm2, %v1954_v48 }
 0x1de   : > { %v6127_v38 = vpop.permute.xlu1 %1241  ;;  %4621 = vmatpush3.msk.msra.mxu0 %vm2059_vm2, %v1954_v48  ;;  %v1951_v48 = vld [vmem:[%s8169_s2 + $0x8] sm:$0xff] }
 0x1df   : > { %8448 = vst [vmem:[#allocation151_spill] sm:$0xff] %v6127_v38  ;;  %v6129_v31 = vpop.permute.xlu0 %1247  ;;  %v616_v38 = vld [vmem:[#allocation2 + $0xf9] sm:$0xff] }
 0x1e0   : > { %8449 = vst [vmem:[#allocation152_spill] sm:$0xff] %v6129_v31  ;;  %1485 = vrot.lane.b32.xlu1 %v610_v58, %s4815_s11  ;;  %v614_v58 = vld [vmem:[#allocation2 + $0xe1] sm:$0xff] }
 0x1e1   : > { %1491 = vrot.lane.b32.xlu0 %v613_v30, %s4815_s11  ;;  %v1953_v30 = vld [vmem:[%s8169_s2 + $0x18] sm:$0xff] }
 0x1e2   : > { %v6133_v22 = vpop.permute.xlu1 %1245  ;;  %4622 = vmatprep.subr.mxu0 %v1953_v30 }
 0x1e3   : > { %8450 = vst [vmem:[#allocation153_spill] sm:$0xff] %v6133_v22  ;;  %v6139_v34 = vpop.permute.xlu0 %1251  ;;  %4623 = vmatpush3.msra.mxu0 %v1953_v30  ;;  %v1952_v22 = vld [vmem:[%s8169_s2 + $0x10] sm:$0xff]  ;;  %v1950_v30 = vld [vmem:[%s8169_s2] sm:$0xff] }
 0x1e4   : > { %8451 = vst [vmem:[#allocation154_spill] sm:$0xff] %v6139_v34  ;;  %1489 = vrot.lane.b32.xlu1 %v612_v3, %s4815_s11  ;;  %v617_v34 = vld [vmem:[#allocation2 + $0x109] sm:$0xff]  ;;  %4624 = vmatprep.subr.mxu0 %v1952_v22 }
 0x1e5   : > { %1495 = vrot.lane.b32.xlu0 %v615_v4, %s4815_s11  ;;  %4625 = vmatpush3.msra.mxu0 %v1952_v22  ;;  %v618_v22 = vld [vmem:[#allocation2 + $0x111] sm:$0xff] }
 0x1e6   : > { %v6147_v31 = vpop.permute.xlu1 %1249  ;;  %4626 = vmatprep.subr.mxu0 %v1951_v48 }
 0x1e7   : > { %8452 = vst [vmem:[#allocation155_spill] sm:$0xff] %v6147_v31  ;;  %v6152_v3 = vpop.permute.xlu0 %1255  ;;  %4627 = vmatpush3.msra.mxu0 %v1951_v48  ;;  %v619_v31 = vld [vmem:[#allocation2 + $0x121] sm:$0xff]  ;;  %v620_v48 = vld [vmem:[#allocation2 + $0x129] sm:$0xff] }
 0x1e8   : > { %8453 = vst [vmem:[#allocation156_spill] sm:$0xff] %v6152_v3  ;;  %1493 = vrot.lane.b32.xlu1 %v614_v58, %s4815_s11  ;;  %4628 = vmatprep.subr.mxu0 %v1950_v30 }
 0x1e9   : > { %1499 = vrot.lane.b32.xlu0 %v617_v34, %s4815_s11  ;;  %4629 = vmatpush3.msra.mxu0 %v1950_v30  ;;  %v621_v34 = vld [vmem:[#allocation2 + $0x139] sm:$0xff] }
 0x1ea   : > { %v6159_v4 = vpop.permute.xlu1 %1253  ;;  %v634_v30 = vld [vmem:[#allocation2 + $0x52] sm:$0xff] }
 0x1eb   : > { %8454 = vst [vmem:[#allocation157_spill] sm:$0xff] %v6159_v4  ;;  %v6164_v3 = vpop.permute.xlu0 %1259 }
 0x1ec   : > { %8455 = vst [vmem:[#allocation158_spill] sm:$0xff] %v6164_v3  ;;  %1497 = vrot.lane.b32.xlu1 %v616_v38, %s4815_s11  ;;  %v631_v38 = vld [vmem:[#allocation2 + $0x32] sm:$0xff] }
 0x1ed   : > { %1503 = vrot.lane.b32.xlu0 %v619_v31, %s4815_s11 }
 0x1ee   : > { %v6168_v58 = vpop.permute.xlu1 %1257 }
 0x1ef   : > { %8456 = vst [vmem:[#allocation159_spill] sm:$0xff] %v6168_v58  ;;  %v6170_v45 = vpop.permute.xlu0 %1263 }
 0x1f0   : > { %8457 = vst [vmem:[#allocation160_spill] sm:$0xff] %v6170_v45  ;;  %1501 = vrot.lane.b32.xlu1 %v618_v22, %s4815_s11  ;;  %v633_v22 = vld [vmem:[#allocation2 + $0x4a] sm:$0xff] }
 0x1f1   : > { %1507 = vrot.lane.b32.xlu0 %v621_v34, %s4815_s11 }
 0x1f2   : > { %v6174_v4 = vpop.permute.xlu1 %1261 }
 0x1f3   : > { %8458 = vst [vmem:[#allocation161_spill] sm:$0xff] %v6174_v4  ;;  %v6176_v3 = vpop.permute.xlu0 %1267  ;;  %v636_v4 = vld [vmem:[#allocation2 + $0x6a] sm:$0xff] }
 0x1f4   : > { %8459 = vst [vmem:[#allocation162_spill] sm:$0xff] %v6176_v3  ;;  %1505 = vrot.lane.b32.xlu1 %v620_v48, %s4815_s11  ;;  %v635_v48 = vld [vmem:[#allocation2 + $0x62] sm:$0xff] }
 0x1f5   : > { %1593 = vrot.lane.b32.xlu0 %v632_v37, %s4816_s22 }
 0x1f6   : > { %v6180_v31 = vpop.permute.xlu1 %1265 }
 0x1f7   : > { %8460 = vst [vmem:[#allocation163_spill] sm:$0xff] %v6180_v31  ;;  %v6182_v45 = vpop.permute.xlu0 %1335  ;;  %v638_v31 = vld [vmem:[#allocation2 + $0x82] sm:$0xff] }
 0x1f8   : > { %1591 = vrot.lane.b32.xlu1 %v631_v38, %s4816_s22  ;;  %v637_v38 = vld [vmem:[#allocation2 + $0x7a] sm:$0xff] }
 0x1f9   : > { %1597 = vrot.lane.b32.xlu0 %v634_v30, %s4816_s22 }
 0x1fa   : > { %v6186_v34 = vpop.permute.xlu1 %1269 }
 0x1fb   : > { %8461 = vst [vmem:[#allocation164_spill] sm:$0xff] %v6186_v34  ;;  %v6188_v3 = vpop.permute.xlu0 %1339  ;;  %v640_v34 = vld [vmem:[#allocation2 + $0x9a] sm:$0xff] }
 0x1fc   : > { %1595 = vrot.lane.b32.xlu1 %v633_v22, %s4816_s22  ;;  %v639_v22 = vld [vmem:[#allocation2 + $0x92] sm:$0xff] }
 0x1fd   : > { %1601 = vrot.lane.b32.xlu0 %v636_v4, %s4816_s22 }
 0x1fe   : > { %v6192_v37 = vpop.permute.xlu1 %1337 }
 0x1ff   : > { %v6194_v58 = vpop.permute.xlu0 %1343 }
 0x200   : > { %1599 = vrot.lane.b32.xlu1 %v635_v48, %s4816_s22  ;;  %v641_v48 = vld [vmem:[#allocation2 + $0xaa] sm:$0xff] }
 0x201   : > { %1605 = vrot.lane.b32.xlu0 %v638_v31, %s4816_s22 }
 0x202   : > { %v6198_v30 = vpop.permute.xlu1 %1341 }
 0x203   : > { %v6200_v21 = vpop.permute.xlu0 %1347 }
 0x204   : > { %1603 = vrot.lane.b32.xlu1 %v637_v38, %s4816_s22  ;;  %v643_v38 = vld [vmem:[#allocation2 + $0xc2] sm:$0xff] }
 0x205   : > { %1609 = vrot.lane.b32.xlu0 %v640_v34, %s4816_s22 }
 0x206   : > { %v6204_v4 = vpop.permute.xlu1 %1345 }
 0x207   : > { %v6206_v39 = vpop.permute.xlu0 %1351 }
 0x208   : > { %8462 = vst [vmem:[#allocation165_spill] sm:$0xff] %v6206_v39  ;;  %1607 = vrot.lane.b32.xlu1 %v639_v22, %s4816_s22  ;;  %v645_v22 = vld [vmem:[#allocation2 + $0xda] sm:$0xff] }
 0x209   : > { %1613 = vrot.lane.b32.xlu0 %v642_v5, %s4816_s22 }
 0x20a   : > { %v6210_v31 = vpop.permute.xlu1 %1349 }
 0x20b   : > { %v6212_v33 = vpop.permute.xlu0 %1355 }
 0x20c   : > { %8463 = vst [vmem:[#allocation166_spill] sm:$0xff] %v6212_v33  ;;  %1611 = vrot.lane.b32.xlu1 %v641_v48, %s4816_s22  ;;  %v647_v48 = vld [vmem:[#allocation2 + $0xf2] sm:$0xff] }
 0x20d   : > { %1617 = vrot.lane.b32.xlu0 %v644_v47, %s4816_s22  ;;  %v650_v33 = vld [vmem:[#allocation2 + $0x112] sm:$0xff] }
 0x20e   : > { %v6216_v34 = vpop.permute.xlu1 %1353 }
 0x20f   : > { %8464 = vst [vmem:[#allocation167_spill] sm:$0xff] %v6216_v34  ;;  %v6218_v8 = vpop.permute.xlu0 %1359  ;;  %v8502_v34 = vld [vmem:[#allocation40_spill] sm:$0xff] }
 0x210   : > { %8465 = vst [vmem:[#allocation168_spill] sm:$0xff] %v6218_v8  ;;  %1615 = vrot.lane.b32.xlu1 %v643_v38, %s4816_s22  ;;  %v649_v38 = vld [vmem:[#allocation2 + $0x10a] sm:$0xff] }
 0x211   : > { %1621 = vrot.lane.b32.xlu0 %v646_v36, %s4816_s22  ;;  %v652_v8 = vld [vmem:[#allocation2 + $0x12a] sm:$0xff] }
 0x212   : > { %v6222_v5 = vpop.permute.xlu1 %1357 }
 0x213   : > { %8466 = vst [vmem:[#allocation169_spill] sm:$0xff] %v6222_v5  ;;  %v6224_v29 = vpop.permute.xlu0 %1363 }
 0x214   : > { %8467 = vst [vmem:[#allocation170_spill] sm:$0xff] %v6224_v29  ;;  %1619 = vrot.lane.b32.xlu1 %v645_v22, %s4816_s22  ;;  %v651_v22 = vld [vmem:[#allocation2 + $0x122] sm:$0xff]  ;;  %v653_v29 = vld [vmem:[#allocation2 + $0x13a] sm:$0xff] }
 0x215   : > { %1625 = vrot.lane.b32.xlu0 %v648_v27, %s4816_s22 }
 0x216   : > { %v6228_v47 = vpop.permute.xlu1 %1361 }
 0x217   : > { %8468 = vst [vmem:[#allocation171_spill] sm:$0xff] %v6228_v47  ;;  %v6230_v2 = vpop.permute.xlu0 %1367 }
 0x218   : > { %8469 = vst [vmem:[#allocation172_spill] sm:$0xff] %v6230_v2  ;;  %1623 = vrot.lane.b32.xlu1 %v647_v48, %s4816_s22  ;;  %v622_v48 = vld [vmem:[#allocation2 + $0x141] sm:$0xff]  ;;  %v623_v2 = vld [vmem:[#allocation2 + $0x151] sm:$0xff] }
 0x219   : > { %1629 = vrot.lane.b32.xlu0 %v650_v33, %s4816_s22 }
 0x21a   : > { %v6234_v36 = vpop.permute.xlu1 %1365 }
 0x21b   : > { %8470 = vst [vmem:[#allocation173_spill] sm:$0xff] %v6234_v36  ;;  %v6236_v5 = vpop.permute.xlu0 %1371 }
 0x21c   : > { %8471 = vst [vmem:[#allocation174_spill] sm:$0xff] %v6236_v5  ;;  %1627 = vrot.lane.b32.xlu1 %v649_v38, %s4816_s22  ;;  %v654_v38 = vld [vmem:[#allocation2 + $0x142] sm:$0xff]  ;;  %v655_v5 = vld [vmem:[#allocation2 + $0x152] sm:$0xff] }
 0x21d   : > { %1633 = vrot.lane.b32.xlu0 %v652_v8, %s4816_s22 }
 0x21e   : > { %v6240_v27 = vpop.permute.xlu1 %1369 }
 0x21f   : > { %8472 = vst [vmem:[#allocation175_spill] sm:$0xff] %v6240_v27  ;;  %v6242_v47 = vpop.permute.xlu0 %1375 }
 0x220   : > { %8473 = vst [vmem:[#allocation176_spill] sm:$0xff] %v6242_v47  ;;  %1631 = vrot.lane.b32.xlu1 %v651_v22, %s4816_s22  ;;  %v624_v22 = vld [vmem:[#allocation2 + $0x159] sm:$0xff]  ;;  %v625_v47 = vld [vmem:[#allocation2 + $0x169] sm:$0xff] }
 0x221   : > { %1635 = vrot.lane.b32.xlu0 %v653_v29, %s4816_s22 }
 0x222   : > { %v6246_v33 = vpop.permute.xlu1 %1373 }
 0x223   : > { %8474 = vst [vmem:[#allocation177_spill] sm:$0xff] %v6246_v33  ;;  %v6248_v36 = vpop.permute.xlu0 %1379 }
 0x224   : > { %8475 = vst [vmem:[#allocation178_spill] sm:$0xff] %v6248_v36  ;;  %1509 = vrot.lane.b32.xlu1 %v622_v48, %s4815_s11  ;;  %v656_v48 = vld [vmem:[#allocation2 + $0x15a] sm:$0xff]  ;;  %v657_v36 = vld [vmem:[#allocation2 + $0x16a] sm:$0xff] }
 0x225   : > { %1511 = vrot.lane.b32.xlu0 %v623_v2, %s4815_s11 }
 0x226   : > { %v6252_v8 = vpop.permute.xlu1 %1377 }
 0x227   : > { %8476 = vst [vmem:[#allocation179_spill] sm:$0xff] %v6252_v8  ;;  %v6254_v27 = vpop.permute.xlu0 %1383 }
 0x228   : > { %8477 = vst [vmem:[#allocation180_spill] sm:$0xff] %v6254_v27  ;;  %1637 = vrot.lane.b32.xlu1 %v654_v38, %s4816_s22  ;;  %v626_v38 = vld [vmem:[#allocation2 + $0x171] sm:$0xff] }
 0x229   : > { %1639 = vrot.lane.b32.xlu0 %v655_v5, %s4816_s22 }
 0x22a   : > { %v6258_v29 = vpop.permute.xlu1 %1381 }
 0x22b   : > { %8478 = vst [vmem:[#allocation181_spill] sm:$0xff] %v6258_v29  ;;  %v6260_v33 = vpop.permute.xlu0 %1387 }
 0x22c   : > { %8479 = vst [vmem:[#allocation182_spill] sm:$0xff] %v6260_v33  ;;  %1513 = vrot.lane.b32.xlu1 %v624_v22, %s4815_s11  ;;  %v658_v22 = vld [vmem:[#allocation2 + $0x172] sm:$0xff] }
 0x22d   : > { %1515 = vrot.lane.b32.xlu0 %v625_v47, %s4815_s11 }
 0x22e   : > { %v6264_v2 = vpop.permute.xlu1 %1385 }
 0x22f   : > { %8480 = vst [vmem:[#allocation183_spill] sm:$0xff] %v6264_v2  ;;  %v6266_v8 = vpop.permute.xlu0 %1391 }
 0x230   : > { %8481 = vst [vmem:[#allocation184_spill] sm:$0xff] %v6266_v8  ;;  %1641 = vrot.lane.b32.xlu1 %v656_v48, %s4816_s22  ;;  %v629_v48 = vld [vmem:[#allocation2 + $0x199] sm:$0xff] }
 0x231   : > { %1643 = vrot.lane.b32.xlu0 %v657_v36, %s4816_s22 }
 0x232   : > { %v6270_v5 = vpop.permute.xlu1 %1389 }
 0x233   : > { %8482 = vst [vmem:[#allocation185_spill] sm:$0xff] %v6270_v5  ;;  %v6272_v27 = vpop.permute.xlu0 %1395 }
 0x234   : > { %8483 = vst [vmem:[#allocation186_spill] sm:$0xff] %v6272_v27  ;;  %1517 = vrot.lane.b32.xlu1 %v626_v38, %s4815_s11  ;;  %v661_v38 = vld [vmem:[#allocation2 + $0x19a] sm:$0xff] }
 0x235   : > { %1519 = vrot.lane.b32.xlu0 %v5815_v56, %s4815_s11 }
 0x236   : > { %v6277_v47 = vpop.permute.xlu1 %1393 }
 0x237   : > { %8484 = vst [vmem:[#allocation187_spill] sm:$0xff] %v6277_v47  ;;  %v6279_v33 = vpop.permute.xlu0 %1463 }
 0x238   : > { %1645 = vrot.lane.b32.xlu1 %v658_v22, %s4816_s22  ;;  %v630_v22 = vld [vmem:[#allocation2 + $0x1a1] sm:$0xff] }
 0x239   : > { %1647 = vrot.lane.b32.xlu0 %v5947_v16, %s4816_s22 }
 0x23a   : > { %v6284_v36 = vpop.permute.xlu1 %1397 }
 0x23b   : > { %8485 = vst [vmem:[#allocation188_spill] sm:$0xff] %v6284_v36  ;;  %v6286_v8 = vpop.permute.xlu0 %1467 }
 0x23c   : > { %1521 = vrot.lane.b32.xlu1 %v5829_v60, %s4815_s11  ;;  %v662_v60 = vld [vmem:[#allocation2 + $0x1a2] sm:$0xff] }
 0x23d   : > { %1523 = vrot.lane.b32.xlu0 %v629_v48, %s4815_s11 }
 0x23e   : > { %v6291_v56 = vpop.permute.xlu1 %1465 }
 0x23f   : > { %v6293_v27 = vpop.permute.xlu0 %1471 }
 0x240   : > { %1649 = vrot.lane.b32.xlu1 %v5961_v12, %s4816_s22 }
 0x241   : > { %1651 = vrot.lane.b32.xlu0 %v661_v38, %s4816_s22 }
 0x242   : > { %v6298_v16 = vpop.permute.xlu1 %1469 }
 0x243   : > { %v6300_v36 = vpop.permute.xlu0 %1475 }
 0x244   : > { %1525 = vrot.lane.b32.xlu1 %v630_v22, %s4815_s11 }
 0x246   : > { %v6303_v47 = vpop.permute.xlu1 %1473 }
 0x247   : > { %v6305_v48 = vpop.permute.xlu0 %1479 }
 0x248   : > { %8486 = vst [vmem:[#allocation189_spill] sm:$0xff] %v6305_v48  ;;  %1653 = vrot.lane.b32.xlu1 %v662_v60, %s4816_s22 }
 0x24a   : > { %v6308_v5 = vpop.permute.xlu1 %1477 }
 0x24b   : > { %v6310_v2 = vpop.permute.xlu0 %1483 }
 0x24c   : > { %8487 = vst [vmem:[#allocation190_spill] sm:$0xff] %v6310_v2  ;;  %v374_v2 = vld [vmem:[#allocation2] sm:$0xff] }
 0x24e   : > { %v6312_v12 = vpop.permute.xlu1 %1481 }
 0x24f   : > { %8488 = vst [vmem:[#allocation191_spill] sm:$0xff] %v6312_v12  ;;  %v6314_v38 = vpop.permute.xlu0 %1487  ;;  %v375_v12 = vld [vmem:[#allocation2 + $0x8] sm:$0xff] }
 0x250   : > { %8489 = vst [vmem:[#allocation192_spill] sm:$0xff] %v6314_v38 }
 0x252   : > { %v6316_v29 = vpop.permute.xlu1 %1485 }
 0x253   : > { %8490 = vst [vmem:[#allocation193_spill] sm:$0xff] %v6316_v29  ;;  %v6318_v24 = vpop.permute.xlu0 %1491  ;;  %v8499_v29 = vld [vmem:[#allocation37_spill] sm:$0xff] }
 0x254   : > { %8491 = vst [vmem:[#allocation194_spill] sm:$0xff] %v6318_v24  ;;  %v1687_v24 = vsel %vm285_vm0, %v374_v2, %v8499_v29 }
 0x256   : > { %v6320_v22 = vpop.permute.xlu1 %1489 }
 0x257   : > { %8492 = vst [vmem:[#allocation195_spill] sm:$0xff] %v6320_v22  ;;  %v6322_v13 = vpop.permute.xlu0 %1495 }
 0x258   : > { %8493 = vst [vmem:[#allocation196_spill] sm:$0xff] %v6322_v13  ;;  %v8501_v13 = vld [vmem:[#allocation38_spill] sm:$0xff] }
 0x25a   : > { %v6324_v20 = vpop.permute.xlu1 %1493 }
 0x25b   : > { %8494 = vst [vmem:[#allocation197_spill] sm:$0xff] %v6324_v20  ;;  %v6326_v62 = vpop.permute.xlu0 %1499  ;;  %v1688_v20 = vsel %vm285_vm0, %v375_v12, %v8501_v13  ;;  %v4755_v12 = vld [vmem:[#allocation2 + $0x20] sm:$0xff] }
 0x25c   : > { %8495 = vst [vmem:[#allocation198_spill] sm:$0xff] %v6326_v62  ;;  %v4753_v62 = vld [vmem:[#allocation2 + $0x18] sm:$0xff]  ;;  %v1721_v29 = vsel %vm1719_vm3, %v1688_v20, %v8505_v35  ;;  %v8508_v35 = vld [vmem:[#allocation99_spill] sm:$0xff] }
 0x25e   : > { %v6328_v60 = vpop.permute.xlu1 %1497 }
 0x25f   : > { %8496 = vst [vmem:[#allocation199_spill] sm:$0xff] %v6328_v60  ;;  %v6330_v48 = vpop.permute.xlu0 %1503  ;;  %v1689_v60 = vsel %vm285_vm0, %v4753_v62, %v8502_v34 }
 0x260   : > { %8497 = vst [vmem:[#allocation200_spill] sm:$0xff] %v6330_v48  ;;  %v8503_v48 = vld [vmem:[#allocation95_spill] sm:$0xff] }
 0x261   : > { %v1720_v51 = vsel %vm1719_vm3, %v1687_v24, %v8503_v48  ;;  %v1754_v24 = vsel %vm1752_vm4, %v1721_v29, %v5813_v55  ;;  %v8507_v48 = vld [vmem:[#allocation45_spill] sm:$0xff]  ;;  %v8509_v29 = vld [vmem:[#allocation103_spill] sm:$0xff] }
 0x262   : > { %v6332_v38 = vpop.permute.xlu1 %1501  ;;  %v1753_v2 = vsel %vm1752_vm4, %v1720_v51, %v5799_v52  ;;  %v1722_v51 = vsel %vm1719_vm3, %v1689_v60, %v8508_v35  ;;  %v1787_v52 = vsel %vm1785_vm5, %v1754_v24, %v5945_v15  ;;  %v8511_v35 = vld [vmem:[#allocation48_spill] sm:$0xff] }
 0x263   : > { %8498 = vst [vmem:[#allocation201_spill] sm:$0xff] %v6332_v38  ;;  %v6336_v22 = vpop.permute.xlu0 %1507  ;;  %v8504_v38 = vld [vmem:[#allocation42_spill] sm:$0xff]  ;;  %v1786_v34 = vsel %vm1785_vm5, %v1753_v2, %v5931_v19  ;;  %v1820_v55 = vsel %vm1818_vm6, %v1787_v52, %v6077_v44  ;;  %v1755_v60 = vsel %vm1752_vm4, %v1722_v51, %v5807_v54  ;;  %v8510_v54 = vld [vmem:[#allocation47_spill] sm:$0xff] }
 0x264   : > { %8500 = vst [vmem:[#allocation37_spill] sm:$0xff] %v6336_v22  ;;  %v1691_v39 = vsel %vm285_vm0, %v4754_v26, %v8504_v38  ;;  %v8506_v22 = vld [vmem:[#allocation44_spill] sm:$0xff]  ;;  %v4756_v26 = vld [vmem:[#allocation2 + $0x48] sm:$0xff]  ;;  %v1819_v38 = vsel %vm1818_vm6, %v1786_v34, %v6063_v42  ;;  %v1853_v15 = vsel %vm1851_vm7, %v1820_v55, %v6192_v37 }
 0x265   : > { %v1690_v62 = vsel %vm285_vm0, %v4755_v12, %v8506_v22  ;;  %v1693_v20 = vsel %vm285_vm0, %v4756_v26, %v8507_v48  ;;  %v1852_v19 = vsel %vm1851_vm7, %v1819_v38, %v6182_v45  ;;  %v1788_v45 = vsel %vm1785_vm5, %v1755_v60, %v5939_v17  ;;  %v4757_v34 = vld [vmem:[#allocation2 + $0x38] sm:$0xff]  ;;  %v4758_v17 = vld [vmem:[#allocation2 + $0x60] sm:$0xff]  ;;  %v8512_v51 = vld [vmem:[#allocation102_spill] sm:$0xff] }
 0x266   : > { %v6350_v13 = vpop.permute.xlu1 %1505  ;;  %v1723_v2 = vsel %vm1719_vm3, %v1690_v62, %v8509_v29  ;;  %v1885_v42 = vsel %vm1884_vm8, %v1852_v19, %v6279_v33  ;;  %v1886_v24 = vsel %vm1884_vm8, %v1853_v15, %v6291_v56  ;;  %v1692_v26 = vsel %vm285_vm0, %v4757_v34, %v8510_v54  ;;  %v4759_v15 = vld [vmem:[#allocation2 + $0x50] sm:$0xff] }
 0x267   : > { %v1594_v22 = vpop.permute.xlu0 %1593  ;;  %v1756_v44 = vsel %vm1752_vm4, %v1723_v2, %v5823_v57  ;;  %v1821_v33 = vsel %vm1818_vm6, %v1788_v45, %v6071_v40  ;;  %v1695_v56 = vsel %vm285_vm0, %v4758_v17, %v8511_v35  ;;  %v1724_v52 = vsel %vm1719_vm3, %v1691_v39, %v8512_v51  ;;  %v8513_v40 = vld [vmem:[#allocation105_spill] sm:$0xff]  ;;  %v8516_v45 = vld [vmem:[#allocation104_spill] sm:$0xff]  ;;  %v8518_v17 = vld [vmem:[#allocation55_spill] sm:$0xff] }
 0x268   : > { %v1789_v37 = vsel %vm1785_vm5, %v1756_v44, %v5955_v6  ;;  %v1919_v57 = vsel %vm1917_vm9, %v1886_v24, %v1594_v22  ;;  %v1854_v6 = vsel %vm1851_vm7, %v1821_v33, %v6188_v3  ;;  %v1725_v22 = vsel %vm1719_vm3, %v1692_v26, %v8513_v40  ;;  %v8515_v44 = vld [vmem:[#allocation51_spill] sm:$0xff]  ;;  %v4761_v33 = vld [vmem:[#allocation2 + $0x68] sm:$0xff] }
 0x269   : > { %v1822_v38 = vsel %vm1818_vm6, %v1789_v37, %v6084_v9  ;;  %v1757_v55 = vsel %vm1752_vm4, %v1724_v52, %v5817_v50  ;;  %v1887_v39 = vsel %vm1884_vm8, %v1854_v6, %v6286_v8  ;;  %v1758_v9 = vsel %vm1752_vm4, %v1725_v22, %v5833_v61  ;;  %v8514_v50 = vld [vmem:[#allocation50_spill] sm:$0xff] }
 0x26a   : > { %v1592_v12 = vpop.permute.xlu1 %1591  ;;  %v1855_v19 = vsel %vm1851_vm7, %v1822_v38, %v6198_v30  ;;  %v1790_v3 = vsel %vm1785_vm5, %v1757_v55, %v5949_v23  ;;  %v1791_v30 = vsel %vm1785_vm5, %v1758_v9, %v5965_v49  ;;  %v4760_v23 = vld [vmem:[#allocation2 + $0x78] sm:$0xff]  ;;  %v1726_v24 = vsel %vm1719_vm3, %v1693_v20, %v8516_v45  ;;  %v8519_v35 = vld [vmem:[#allocation106_spill] sm:$0xff]  ;;  %v4763_v55 = vld [vmem:[#allocation2 + $0x80] sm:$0xff] }
 0x26b   : > { %v1918_v62 = vsel %vm1917_vm9, %v1885_v42, %v1592_v12  ;;  %v1598_v48 = vpop.permute.xlu0 %1597  ;;  %v1888_v2 = vsel %vm1884_vm8, %v1855_v19, %v6298_v16  ;;  %v1694_v42 = vsel %vm285_vm0, %v4759_v15, %v8514_v50  ;;  %v1823_v8 = vsel %vm1818_vm6, %v1790_v3, %v6079_v43  ;;  %v8522_v3 = vld [vmem:[#allocation88_spill] sm:$0xff] }
 0x26c   : > { %4630 = vmatprep.mubr.msk.f32.mxu0 %vm1962_vm10, %v1918_v62  ;;  %v1921_v61 = vsel %vm1917_vm9, %v1888_v2, %v1598_v48  ;;  %v1697_v16 = vsel %vm285_vm0, %v4760_v23, %v8515_v44  ;;  %v1824_v62 = vsel %vm1818_vm6, %v1791_v30, %v6091_v10  ;;  %v1856_v49 = vsel %vm1851_vm7, %v1823_v8, %v6194_v58  ;;  %v8525_v50 = vld [vmem:[#allocation128_spill] sm:$0xff]  ;;  %v8526_v30 = vld [vmem:[#allocation167_spill] sm:$0xff]  ;;  %v8528_v23 = vld [vmem:[#allocation130_spill] sm:$0xff] }
 0x26d   : > { %4631 = vmatmul.mubr.msk.f32.vlgmr.msra.gmra.mxu0 %vm1962_vm10, %v1919_v57  ;;  %v1727_v43 = vsel %vm1719_vm3, %v1694_v42, %v5709_v1  ;;  %v1759_v34 = vsel %vm1752_vm4, %v1726_v24, %v5825_v59  ;;  %v1857_v54 = vsel %vm1851_vm7, %v1824_v62, %v6204_v4  ;;  %v1889_v20 = vsel %vm1884_vm8, %v1856_v49, %v6293_v27  ;;  %v8517_v59 = vld [vmem:[#allocation53_spill] sm:$0xff]  ;;  %v8530_v24 = vld [vmem:[#allocation191_spill] sm:$0xff] }
 0x26e   : > { %v1596_v29 = vpop.permute.xlu1 %1595  ;;  %v1760_v10 = vsel %vm1752_vm4, %v1727_v43, %v5841_v63  ;;  %v1792_v58 = vsel %vm1785_vm5, %v1759_v34, %v5957_v14  ;;  %v1890_v37 = vsel %vm1884_vm8, %v1857_v54, %v6303_v47  ;;  %v1696_v57 = vsel %vm285_vm0, %v4761_v33, %v8517_v59  ;;  %v4762_v14 = vld [vmem:[#allocation2 + $0x90] sm:$0xff]  ;;  %v4765_v43 = vld [vmem:[#allocation2 + $0x98] sm:$0xff]  ;;  %v8531_v34 = vld [vmem:[#allocation61_spill] sm:$0xff] }
 0x26f   : > { %v1920_v60 = vsel %vm1917_vm9, %v1887_v39, %v1596_v29  ;;  %v1602_v12 = vpop.permute.xlu0 %1601  ;;  %v1793_v4 = vsel %vm1785_vm5, %v1760_v10, %v5973_v46  ;;  %v1825_v27 = vsel %vm1818_vm6, %v1792_v58, %v6086_v41  ;;  %v1699_v47 = vsel %vm285_vm0, %v4762_v14, %v8518_v17  ;;  %v8521_v29 = vld [vmem:[#allocation59_spill] sm:$0xff]  ;;  %v8533_v10 = vld [vmem:[#allocation86_spill] sm:$0xff]  ;;  %v4766_v33 = vld [vmem:[#allocation2 + $0xc0] sm:$0xff] }
 0x270   : > { %4633 = vmatprep.mubr.msk.f32.mxu0 %vm1962_vm10, %v1920_v60  ;;  %v1923_v63 = vsel %vm1917_vm9, %v1890_v37, %v1602_v12  ;;  %v1728_v51 = vsel %vm1719_vm3, %v1695_v56, %v8519_v35  ;;  %v1826_v52 = vsel %vm1818_vm6, %v1793_v4, %v6097_v0  ;;  %v1858_v46 = vsel %vm1851_vm7, %v1825_v27, %v6200_v21  ;;  %v8523_v60 = vld [vmem:[#allocation165_spill] sm:$0xff]  ;;  %v8534_v59 = vld [vmem:[#allocation63_spill] sm:$0xff]  ;;  %v8537_v14 = vld [vmem:[#allocation166_spill] sm:$0xff] }
 0x271   : > { %4634 = vmatmul.mubr.msk.f32.gmra.mxu0 %vm1962_vm10, %v1921_v61  ;;  %v1729_v41 = vsel %vm1719_vm3, %v1696_v57, %v5717_v25  ;;  %v1761_v38 = vsel %vm1752_vm4, %v1728_v51, %v5835_v53  ;;  %v1859_v6 = vsel %vm1851_vm7, %v1826_v52, %v6210_v31  ;;  %v1891_v56 = vsel %vm1884_vm8, %v1858_v46, %v6300_v36  ;;  %v8520_v53 = vld [vmem:[#allocation57_spill] sm:$0xff]  ;;  %v8535_v4 = vld [vmem:[#allocation107_spill] sm:$0xff]  ;;  %v8538_v35 = vld [vmem:[#allocation110_spill] sm:$0xff] }
 0x272   : > { %v1600_v26 = vpop.permute.xlu1 %1599  ;;  %v1762_v0 = vsel %vm1752_vm4, %v1729_v41, %v5849_v7  ;;  %v1794_v21 = vsel %vm1785_vm5, %v1761_v38, %v5967_v28  ;;  %v1892_v22 = vsel %vm1884_vm8, %v1859_v6, %v6308_v5  ;;  %v1698_v19 = vsel %vm285_vm0, %v4763_v55, %v8520_v53  ;;  %v4764_v28 = vld [vmem:[#allocation2 + $0xa8] sm:$0xff]  ;;  %v8527_v61 = vld [vmem:[#allocation189_spill] sm:$0xff] }
 0x273   : > { %v1922_v1 = vsel %vm1917_vm9, %v1889_v20, %v1600_v26  ;;  %v1606_v48 = vpop.permute.xlu0 %1605  ;;  %v1795_v31 = vsel %vm1785_vm5, %v1762_v0, %v5981_v18  ;;  %v1827_v36 = vsel %vm1818_vm6, %v1794_v21, %v6093_v32  ;;  %v1701_v5 = vsel %vm285_vm0, %v4764_v28, %v8521_v29  ;;  %v8524_v32 = vld [vmem:[#allocation108_spill] sm:$0xff]  ;;  %v8532_v20 = vld [vmem:[#allocation43_spill] sm:$0xff]  ;;  %v8539_v52 = vld [vmem:[#allocation129_spill] sm:$0xff] }
 0x274   : > { %4636 = vmatprep.mubr.msk.f32.mxu0 %vm1962_vm10, %v1922_v1  ;;  %v1925_v7 = vsel %vm1917_vm9, %v1892_v22, %v1606_v48  ;;  %v1730_v9 = vsel %vm1719_vm3, %v1697_v16, %v5711_v11  ;;  %v1828_v2 = vsel %vm1818_vm6, %v1795_v31, %v8522_v3  ;;  %v1860_v18 = vsel %vm1851_vm7, %v1827_v36, %v8523_v60  ;;  %v8529_v16 = vld [vmem:[#allocation39_spill] sm:$0xff]  ;;  %v8540_v41 = vld [vmem:[#allocation169_spill] sm:$0xff]  ;;  %v8541_v6 = vld [vmem:[#allocation190_spill] sm:$0xff] }
 0x275   : > { %4637 = vmatmul.mubr.msk.f32.gmra.mxu0 %vm1962_vm10, %v1923_v63  ;;  %v1731_v15 = vsel %vm1719_vm3, %v1698_v19, %v8524_v32  ;;  %v1763_v42 = vsel %vm1752_vm4, %v1730_v9, %v8525_v50  ;;  %v1861_v8 = vsel %vm1851_vm7, %v1828_v2, %v8526_v30  ;;  %v1893_v11 = vsel %vm1884_vm8, %v1860_v18, %v8527_v61  ;;  %v8536_v63 = vld [vmem:[#allocation92_spill] sm:$0xff]  ;;  %v8543_v21 = vld [vmem:[#allocation41_spill] sm:$0xff]  ;;  %v4767_v19 = vld [vmem:[#allocation2 + $0xb0] sm:$0xff] }
 0x276   : > { %v1604_v40 = vpop.permute.xlu1 %1603  ;;  %v1764_v44 = vsel %vm1752_vm4, %v1731_v15, %v8528_v23  ;;  %v1796_v45 = vsel %vm1785_vm5, %v1763_v42, %v8529_v16  ;;  %v1894_v62 = vsel %vm1884_vm8, %v1861_v8, %v8530_v24  ;;  %v1700_v54 = vsel %vm285_vm0, %v4765_v43, %v8531_v34  ;;  %v8545_v31 = vld [vmem:[#allocation65_spill] sm:$0xff]  ;;  %v8547_v28 = vld [vmem:[#allocation90_spill] sm:$0xff]  ;;  %v4768_v2 = vld [vmem:[#allocation2 + $0xd8] sm:$0xff] }
 0x277   : > { %v1924_v25 = vsel %vm1917_vm9, %v1891_v56, %v1604_v40  ;;  %v1610_v39 = vpop.permute.xlu0 %1609  ;;  %v1797_v26 = vsel %vm1785_vm5, %v1764_v44, %v8532_v20  ;;  %v1829_v58 = vsel %vm1818_vm6, %v1796_v45, %v8533_v10  ;;  %v1703_v57 = vsel %vm285_vm0, %v4766_v33, %v8534_v59  ;;  %v8542_v40 = vld [vmem:[#allocation132_spill] sm:$0xff]  ;;  %v8548_v60 = vld [vmem:[#allocation67_spill] sm:$0xff]  ;;  %v8549_v32 = vld [vmem:[#allocation109_spill] sm:$0xff] }
 0x278   : > { %4639 = vmatprep.mubr.msk.f32.mxu0 %vm1962_vm10, %v1924_v25  ;;  %v1927_v37 = vsel %vm1917_vm9, %v1894_v62, %v1610_v39  ;;  %v1732_v27 = vsel %vm1719_vm3, %v1699_v47, %v8535_v4  ;;  %v1830_v48 = vsel %vm1818_vm6, %v1797_v26, %v8536_v63  ;;  %v1862_v17 = vsel %vm1851_vm7, %v1829_v58, %v8537_v14  ;;  %v8544_v25 = vld [vmem:[#allocation193_spill] sm:$0xff]  ;;  %v8550_v50 = vld [vmem:[#allocation96_spill] sm:$0xff]  ;;  %v8554_v44 = vld [vmem:[#allocation171_spill] sm:$0xff] }
 0x279   : > { %4640 = vmatmul.mubr.msk.f32.gmra.mxu0 %vm1962_vm10, %v1925_v7  ;;  %v1733_v51 = vsel %vm1719_vm3, %v1700_v54, %v8538_v35  ;;  %v1765_v46 = vsel %vm1752_vm4, %v1732_v27, %v8539_v52  ;;  %v1863_v38 = vsel %vm1851_vm7, %v1830_v48, %v8540_v41  ;;  %v1895_v47 = vsel %vm1884_vm8, %v1862_v17, %v8541_v6  ;;  %v8546_v7 = vld [vmem:[#allocation49_spill] sm:$0xff]  ;;  %v8551_v30 = vld [vmem:[#allocation168_spill] sm:$0xff]  ;;  %v8556_v62 = vld [vmem:[#allocation134_spill] sm:$0xff] }
 0x27a   : > { %v1608_v12 = vpop.permute.xlu1 %1607  ;;  %v1766_v0 = vsel %vm1752_vm4, %v1733_v51, %v8542_v40  ;;  %v1798_v22 = vsel %vm1785_vm5, %v1765_v46, %v8543_v21  ;;  %v1896_v55 = vsel %vm1884_vm8, %v1863_v38, %v8544_v25  ;;  %v1702_v36 = vsel %vm285_vm0, %v4767_v19, %v8545_v31  ;;  %v8552_v61 = vld [vmem:[#allocation112_spill] sm:$0xff]  ;;  %v8557_v43 = vld [vmem:[#allocation46_spill] sm:$0xff]  ;;  %v8558_v54 = vld [vmem:[#allocation195_spill] sm:$0xff] }
 0x27b   : > { %v1926_v49 = vsel %vm1917_vm9, %v1893_v11, %v1608_v12  ;;  %v1614_v1 = vpop.permute.xlu0 %1613  ;;  %v1799_v39 = vsel %vm1785_vm5, %v1766_v0, %v8546_v7  ;;  %v1831_v29 = vsel %vm1818_vm6, %v1798_v22, %v8547_v28  ;;  %v1705_v18 = vsel %vm285_vm0, %v4768_v2, %v8548_v60  ;;  %v8553_v12 = vld [vmem:[#allocation131_spill] sm:$0xff]  ;;  %v8555_v45 = vld [vmem:[#allocation192_spill] sm:$0xff]  ;;  %v4769_v10 = vld [vmem:[#allocation2 + $0xc8] sm:$0xff] }
 0x27c   : > { %4642 = vmatprep.mubr.msk.f32.mxu0 %vm1962_vm10, %v1926_v49  ;;  %v1929_v9 = vsel %vm1917_vm9, %v1896_v55, %v1614_v1  ;;  %v1734_v15 = vsel %vm1719_vm3, %v1701_v5, %v8549_v32  ;;  %v1832_v42 = vsel %vm1818_vm6, %v1799_v39, %v8550_v50  ;;  %v1864_v8 = vsel %vm1851_vm7, %v1831_v29, %v8551_v30  ;;  %v8559_v58 = vld [vmem:[#allocation69_spill] sm:$0xff]  ;;  %v8560_v1 = vld [vmem:[#allocation54_spill] sm:$0xff]  ;;  %v4770_v48 = vld [vmem:[#allocation2 + $0xf0] sm:$0xff] }
 0x27d   : > { %4643 = vmatmul.mubr.msk.f32.gmra.mxu0 %vm1962_vm10, %v1927_v37  ;;  %v1735_v11 = vsel %vm1719_vm3, %v1702_v36, %v8552_v61  ;;  %v1767_v23 = vsel %vm1752_vm4, %v1734_v15, %v8553_v12  ;;  %v1865_v16 = vsel %vm1851_vm7, %v1832_v42, %v8554_v44  ;;  %v1897_v5 = vsel %vm1884_vm8, %v1864_v8, %v8555_v45  ;;  %v8561_v59 = vld [vmem:[#allocation94_spill] sm:$0xff]  ;;  %v8562_v14 = vld [vmem:[#allocation71_spill] sm:$0xff]  ;;  %v8564_v52 = vld [vmem:[#allocation101_spill] sm:$0xff] }
 0x27e   : > { %v1612_v56 = vpop.permute.xlu1 %1611  ;;  %v1768_v49 = vsel %vm1752_vm4, %v1735_v11, %v8556_v62  ;;  %v1800_v34 = vsel %vm1785_vm5, %v1767_v23, %v8557_v43  ;;  %v1898_v20 = vsel %vm1884_vm8, %v1865_v16, %v8558_v54  ;;  %v1704_v37 = vsel %vm285_vm0, %v4769_v10, %v8559_v58  ;;  %v8563_v35 = vld [vmem:[#allocation111_spill] sm:$0xff]  ;;  %v8565_v41 = vld [vmem:[#allocation170_spill] sm:$0xff]  ;;  %v8568_v0 = vld [vmem:[#allocation173_spill] sm:$0xff] }
 0x27f   : > { %v1928_v53 = vsel %vm1917_vm9, %v1895_v47, %v1612_v56  ;;  %v1618_v3 = vpop.permute.xlu0 %1617  ;;  %v1801_v33 = vsel %vm1785_vm5, %v1768_v49, %v8560_v1  ;;  %v1833_v4 = vsel %vm1818_vm6, %v1800_v34, %v8561_v59  ;;  %v1707_v17 = vsel %vm285_vm0, %v4770_v48, %v8562_v14  ;;  %v8566_v6 = vld [vmem:[#allocation114_spill] sm:$0xff]  ;;  %v8567_v56 = vld [vmem:[#allocation133_spill] sm:$0xff]  ;;  %v8570_v55 = vld [vmem:[#allocation136_spill] sm:$0xff] }
 0x280   : > { %4645 = vmatprep.mubr.msk.f32.mxu0 %vm1962_vm10, %v1928_v53  ;;  %v1931_v27 = vsel %vm1917_vm9, %v1898_v20, %v1618_v3  ;;  %v1736_v51 = vsel %vm1719_vm3, %v1703_v57, %v8563_v35  ;;  %v1834_v46 = vsel %vm1818_vm6, %v1801_v33, %v8564_v52  ;;  %v1866_v38 = vsel %vm1851_vm7, %v1833_v4, %v8565_v41  ;;  %v8569_v22 = vld [vmem:[#allocation194_spill] sm:$0xff]  ;;  %v8571_v19 = vld [vmem:[#allocation52_spill] sm:$0xff]  ;;  %v8572_v36 = vld [vmem:[#allocation197_spill] sm:$0xff] }
 0x281   : > { %4646 = vmatmul.mubr.msk.f32.gmra.mxu0 %vm1962_vm10, %v1929_v9  ;;  %v1737_v47 = vsel %vm1719_vm3, %v1704_v37, %v8566_v6  ;;  %v1769_v40 = vsel %vm1752_vm4, %v1736_v51, %v8567_v56  ;;  %v1867_v21 = vsel %vm1851_vm7, %v1834_v46, %v8568_v0  ;;  %v1899_v57 = vsel %vm1884_vm8, %v1866_v38, %v8569_v22  ;;  %v4771_v28 = vld [vmem:[#allocation2 + $0xe0] sm:$0xff]  ;;  %v8574_v3 = vld [vmem:[#allocation58_spill] sm:$0xff]  ;;  %v8576_v30 = vld [vmem:[#allocation75_spill] sm:$0xff] }
 0x282   : > { %v1616_v24 = vpop.permute.xlu1 %1615  ;;  %v1770_v53 = vsel %vm1752_vm4, %v1737_v47, %v8570_v55  ;;  %v1802_v31 = vsel %vm1785_vm5, %v1769_v40, %v8571_v19  ;;  %v1900_v7 = vsel %vm1884_vm8, %v1867_v21, %v8572_v36  ;;  %v8573_v29 = vld [vmem:[#allocation73_spill] sm:$0xff]  ;;  %v8575_v60 = vld [vmem:[#allocation98_spill] sm:$0xff]  ;;  %v8578_v12 = vld [vmem:[#allocation151_spill] sm:$0xff] }
 0x283   : > { %v1930_v26 = vsel %vm1917_vm9, %v1897_v5, %v1616_v24  ;;  %v1622_v63 = vpop.permute.xlu0 %1621  ;;  %v1706_v9 = vsel %vm285_vm0, %v4771_v28, %v8573_v29  ;;  %v1803_v2 = vsel %vm1785_vm5, %v1770_v53, %v8574_v3  ;;  %v1835_v32 = vsel %vm1818_vm6, %v1802_v31, %v8575_v60  ;;  %v4772_v42 = vld [vmem:[#allocation2 + $0x108] sm:$0xff]  ;;  %v8577_v61 = vld [vmem:[#allocation113_spill] sm:$0xff]  ;;  %v8579_v44 = vld [vmem:[#allocation172_spill] sm:$0xff] }
 0x284   : > { %4648 = vmatprep.mubr.msk.f32.mxu0 %vm1962_vm10, %v1930_v26  ;;  %v1933_v15 = vsel %vm1917_vm9, %v1900_v7, %v1622_v63  ;;  %v1709_v8 = vsel %vm285_vm0, %v4772_v42, %v8576_v30  ;;  %v1738_v11 = vsel %vm1719_vm3, %v1705_v18, %v8577_v61  ;;  %v1836_v23 = vsel %vm1818_vm6, %v1803_v2, %v8578_v12  ;;  %v8580_v45 = vld [vmem:[#allocation116_spill] sm:$0xff]  ;;  %v8581_v24 = vld [vmem:[#allocation135_spill] sm:$0xff]  ;;  %v8584_v20 = vld [vmem:[#allocation138_spill] sm:$0xff] }
 0x285   : > { %4649 = vmatmul.mubr.msk.f32.gmra.mxu0 %vm1962_vm10, %v1931_v27  ;;  %v1868_v16 = vsel %vm1851_vm7, %v1835_v32, %v8579_v44  ;;  %v1739_v5 = vsel %vm1719_vm3, %v1706_v9, %v8580_v45  ;;  %v1771_v62 = vsel %vm1752_vm4, %v1738_v11, %v8581_v24  ;;  %v8582_v49 = vld [vmem:[#allocation175_spill] sm:$0xff]  ;;  %v8583_v34 = vld [vmem:[#allocation196_spill] sm:$0xff]  ;;  %v8587_v4 = vld [vmem:[#allocation77_spill] sm:$0xff] }
 0x286   : > { %v1620_v25 = vpop.permute.xlu1 %1619  ;;  %v1869_v43 = vsel %vm1851_vm7, %v1836_v23, %v8582_v49  ;;  %v1901_v18 = vsel %vm1884_vm8, %v1868_v16, %v8583_v34  ;;  %v1772_v26 = vsel %vm1752_vm4, %v1739_v5, %v8584_v20  ;;  %v8585_v10 = vld [vmem:[#allocation56_spill] sm:$0xff]  ;;  %v8586_v37 = vld [vmem:[#allocation199_spill] sm:$0xff]  ;;  %v8588_v63 = vld [vmem:[#allocation62_spill] sm:$0xff] }
 0x287   : > { %v1932_v39 = vsel %vm1917_vm9, %v1899_v57, %v1620_v25  ;;  %v1626_v50 = vpop.permute.xlu0 %1625  ;;  %v1804_v58 = vsel %vm1785_vm5, %v1771_v62, %v8585_v10  ;;  %v1902_v1 = vsel %vm1884_vm8, %v1869_v43, %v8586_v37  ;;  %v4773_v59 = vld [vmem:[#allocation2 + $0xf8] sm:$0xff]  ;;  %v1805_v48 = vsel %vm1785_vm5, %v1772_v26, %v8588_v63  ;;  %v8589_v14 = vld [vmem:[#allocation150_spill] sm:$0xff]  ;;  %v8590_v46 = vld [vmem:[#allocation115_spill] sm:$0xff] }
 0x288   : > { %4651 = vmatprep.mubr.msk.f32.mxu0 %vm1962_vm10, %v1932_v39  ;;  %v1708_v27 = vsel %vm285_vm0, %v4773_v59, %v8587_v4  ;;  %v1837_v35 = vsel %vm1818_vm6, %v1804_v58, %v8589_v14  ;;  %v1935_v51 = vsel %vm1917_vm9, %v1902_v1, %v1626_v50  ;;  %v1740_v41 = vsel %vm1719_vm3, %v1707_v17, %v8590_v46  ;;  %v8591_v38 = vld [vmem:[#allocation117_spill] sm:$0xff]  ;;  %v8593_v40 = vld [vmem:[#allocation174_spill] sm:$0xff]  ;;  %v8598_v36 = vld [vmem:[#allocation140_spill] sm:$0xff] }
 0x289   : > { %4652 = vmatmul.mubr.msk.f32.gmra.mxu0 %vm1962_vm10, %v1933_v15  ;;  %v1742_v6 = vsel %vm1719_vm3, %v1709_v8, %v8591_v38  ;;  %v8592_v47 = vld [vmem:[#allocation153_spill] sm:$0xff]  ;;  %v1870_v0 = vsel %vm1851_vm7, %v1837_v35, %v8593_v40  ;;  %v8594_v21 = vld [vmem:[#allocation118_spill] sm:$0xff]  ;;  %v8599_v39 = vld [vmem:[#allocation60_spill] sm:$0xff] }
 0x28a   : > { %v1624_v54 = vpop.permute.xlu1 %1623  ;;  %v1838_v56 = vsel %vm1818_vm6, %v1805_v48, %v8592_v47  ;;  %v1741_v22 = vsel %vm1719_vm3, %v1708_v27, %v8594_v21  ;;  %v8595_v57 = vld [vmem:[#allocation137_spill] sm:$0xff]  ;;  %v8597_v53 = vld [vmem:[#allocation198_spill] sm:$0xff]  ;;  %v8601_v2 = vld [vmem:[#allocation139_spill] sm:$0xff] }
 0x28b   : > { %v1934_v33 = vsel %vm1917_vm9, %v1901_v18, %v1624_v54  ;;  %v1630_v52 = vpop.permute.xlu0 %1629  ;;  %v1773_v25 = vsel %vm1752_vm4, %v1740_v41, %v8595_v57  ;;  %v8596_v55 = vld [vmem:[#allocation177_spill] sm:$0xff]  ;;  %v1903_v19 = vsel %vm1884_vm8, %v1870_v0, %v8597_v53  ;;  %v1774_v7 = vsel %vm1752_vm4, %v1741_v22, %v8598_v36  ;;  %v8602_v32 = vld [vmem:[#allocation66_spill] sm:$0xff]  ;;  %v8603_v50 = vld [vmem:[#allocation152_spill] sm:$0xff] }
 0x28c   : > { %4654 = vmatprep.mubr.msk.f32.mxu0 %vm1962_vm10, %v1934_v33  ;;  %v1871_v17 = vsel %vm1851_vm7, %v1838_v56, %v8596_v55  ;;  %v1806_v28 = vsel %vm1785_vm5, %v1773_v25, %v8599_v39  ;;  %v8600_v29 = vld [vmem:[#allocation201_spill] sm:$0xff]  ;;  %v1775_v60 = vsel %vm1752_vm4, %v1742_v6, %v8601_v2  ;;  %v1807_v15 = vsel %vm1785_vm5, %v1774_v7, %v8602_v32  ;;  %v8604_v61 = vld [vmem:[#allocation64_spill] sm:$0xff]  ;;  %v8605_v12 = vld [vmem:[#allocation155_spill] sm:$0xff] }
 0x28d   : > { %4655 = vmatmul.mubr.msk.f32.gmra.mxu0 %vm1962_vm10, %v1935_v51  ;;  %v1904_v9 = vsel %vm1884_vm8, %v1871_v17, %v8600_v29  ;;  %v1839_v42 = vsel %vm1818_vm6, %v1806_v28, %v8603_v50  ;;  %v1808_v11 = vsel %vm1785_vm5, %v1775_v60, %v8604_v61  ;;  %v1840_v23 = vsel %vm1818_vm6, %v1807_v15, %v8605_v12  ;;  %v8606_v44 = vld [vmem:[#allocation176_spill] sm:$0xff]  ;;  %v8607_v45 = vld [vmem:[#allocation154_spill] sm:$0xff]  ;;  %v8608_v24 = vld [vmem:[#allocation179_spill] sm:$0xff] }
 0x28e   : > { %v1628_v31 = vpop.permute.xlu1 %1627  ;;  %v1937_v30 = vsel %vm1917_vm9, %v1904_v9, %v1630_v52  ;;  %v1872_v16 = vsel %vm1851_vm7, %v1839_v42, %v8606_v44  ;;  %v1841_v5 = vsel %vm1818_vm6, %v1808_v11, %v8607_v45  ;;  %v1873_v62 = vsel %vm1851_vm7, %v1840_v23, %v8608_v24  ;;  %v8609_v49 = vld [vmem:[#allocation200_spill] sm:$0xff]  ;;  %v8610_v18 = vld [vmem:[#allocation178_spill] sm:$0xff]  ;;  %v4774_v10 = vld [vmem:[#allocation2 + $0x110] sm:$0xff] }
 0x28f   : > { %v1936_v3 = vsel %vm1917_vm9, %v1903_v19, %v1628_v31  ;;  %v1634_v8 = vpop.permute.xlu0 %1633  ;;  %v1905_v43 = vsel %vm1884_vm8, %v1872_v16, %v8609_v49  ;;  %v1874_v54 = vsel %vm1851_vm7, %v1841_v5, %v8610_v18  ;;  %v1906_v20 = vsel %vm1884_vm8, %v1873_v62, %v6350_v13  ;;  %v8611_v58 = vld [vmem:[#allocation81_spill] sm:$0xff]  ;;  %v8613_v27 = vld [vmem:[#allocation120_spill] sm:$0xff]  ;;  %v8614_v14 = vld [vmem:[#allocation79_spill] sm:$0xff] }
 0x290   : > { %4657 = vmatprep.mubr.msk.f32.mxu0 %vm1962_vm10, %v1936_v3  ;;  %v1710_v37 = vsel %vm285_vm0, %v4774_v10, %v8611_v58  ;;  %v8612_v1 = vld [vmem:[#allocation37_spill] sm:$0xff]  ;;  %v1939_v59 = vsel %vm1917_vm9, %v1906_v20, %v1634_v8  ;;  %v8615_v51 = vld [vmem:[#allocation142_spill] sm:$0xff]  ;;  %v8616_v41 = vld [vmem:[#allocation119_spill] sm:$0xff] }
 0x291   : > { %4658 = vmatmul.mubr.msk.f32.gmra.mxu0 %vm1962_vm10, %v1937_v30  ;;  %v1907_v33 = vsel %vm1884_vm8, %v1874_v54, %v8612_v1  ;;  %v1743_v63 = vsel %vm1719_vm3, %v1710_v37, %v8613_v27  ;;  %v4775_v13 = vld [vmem:[#allocation2 + $0x120] sm:$0xff]  ;;  %v8617_v6 = vld [vmem:[#allocation70_spill] sm:$0xff]  ;;  %v8620_v57 = vld [vmem:[#allocation68_spill] sm:$0xff] }
 0x292   : > { %v1632_v34 = vpop.permute.xlu1 %1631  ;;  %v1711_v35 = vsel %vm285_vm0, %v4775_v13, %v8614_v14  ;;  %v1776_v52 = vsel %vm1752_vm4, %v1743_v63, %v8615_v51  ;;  %v8618_v56 = vld [vmem:[#allocation141_spill] sm:$0xff]  ;;  %v8622_v53 = vld [vmem:[#allocation156_spill] sm:$0xff]  ;;  %v4776_v29 = vld [vmem:[#allocation2 + $0x128] sm:$0xff] }
 0x293   : > { %v1938_v26 = vsel %vm1917_vm9, %v1905_v43, %v1632_v34  ;;  %v1636_v4 = vpop.permute.xlu0 %1635  ;;  %v1744_v38 = vsel %vm1719_vm3, %v1711_v35, %v8616_v41  ;;  %v1809_v47 = vsel %vm1785_vm5, %v1776_v52, %v8617_v6  ;;  %v8619_v0 = vld [vmem:[#allocation157_spill] sm:$0xff]  ;;  %v8623_v7 = vld [vmem:[#allocation180_spill] sm:$0xff]  ;;  %v8625_v32 = vld [vmem:[#allocation122_spill] sm:$0xff] }
 0x294   : > { %4660 = vmatprep.mubr.msk.f32.mxu0 %vm1962_vm10, %v1938_v26  ;;  %v1940_v48 = vsel %vm1917_vm9, %v1907_v33, %v1636_v4  ;;  %v1777_v40 = vsel %vm1752_vm4, %v1744_v38, %v8618_v56  ;;  %v1842_v21 = vsel %vm1818_vm6, %v1809_v47, %v8619_v0  ;;  %v8621_v55 = vld [vmem:[#allocation181_spill] sm:$0xff]  ;;  %v4777_v42 = vld [vmem:[#allocation2 + $0x138] sm:$0xff]  ;;  %v8626_v30 = vld [vmem:[#allocation83_spill] sm:$0xff] }
 0x295   : > { %4661 = vmatmul.mubr.msk.f32.gmra.mxu0 %vm1962_vm10, %v1939_v59  ;;  %v1810_v25 = vsel %vm1785_vm5, %v1777_v40, %v8620_v57  ;;  %v1875_v17 = vsel %vm1851_vm7, %v1842_v21, %v8621_v55  ;;  %v8624_v9 = vld [vmem:[#allocation85_spill] sm:$0xff]  ;;  %v1713_v8 = vsel %vm285_vm0, %v4777_v42, %v8626_v30  ;;  %v8627_v61 = vld [vmem:[#allocation144_spill] sm:$0xff]  ;;  %v8629_v16 = vld [vmem:[#allocation74_spill] sm:$0xff] }
 0x296   : > { %v1510_v46 = vpop.permute.xlu1 %1509  ;;  %4663 = vmatprep.mubr.msk.f32.mxu0 %vm1962_vm10, %v1940_v48  ;;  %v1843_v19 = vsel %vm1818_vm6, %v1810_v25, %v8622_v53  ;;  %v1712_v3 = vsel %vm285_vm0, %v4776_v29, %v8624_v9  ;;  %v8628_v23 = vld [vmem:[#allocation121_spill] sm:$0xff]  ;;  %v8630_v5 = vld [vmem:[#allocation143_spill] sm:$0xff]  ;;  %v8632_v34 = vld [vmem:[#allocation72_spill] sm:$0xff] }
 0x297   : > { %v1512_v22 = vpop.permute.xlu0 %1511  ;;  %v1908_v31 = vsel %vm1884_vm8, %v1875_v17, %v1510_v46  ;;  %v1876_v39 = vsel %vm1851_vm7, %v1843_v19, %v8623_v7  ;;  %v1745_v15 = vsel %vm1719_vm3, %v1712_v3, %v8625_v32  ;;  %v1746_v44 = vsel %vm1719_vm3, %v1713_v8, %v8628_v23  ;;  %v8631_v62 = vld [vmem:[#allocation159_spill] sm:$0xff]  ;;  %v8634_v26 = vld [vmem:[#allocation158_spill] sm:$0xff]  ;;  %v4778_v4 = vld [vmem:[#allocation2 + $0x140] sm:$0xff] }
 0x298   : > { %v1909_v2 = vsel %vm1884_vm8, %v1876_v39, %v1512_v22  ;;  %v1778_v11 = vsel %vm1752_vm4, %v1745_v15, %v8627_v61  ;;  %v1779_v24 = vsel %vm1752_vm4, %v1746_v44, %v8630_v5  ;;  %v8633_v54 = vld [vmem:[#allocation183_spill] sm:$0xff]  ;;  %v8635_v1 = vld [vmem:[#allocation182_spill] sm:$0xff]  ;;  %v8636_v27 = vld [vmem:[#allocation89_spill] sm:$0xff] }
 0x299   : > { %v1811_v45 = vsel %vm1785_vm5, %v1778_v11, %v8629_v16  ;;  %v1812_v18 = vsel %vm1785_vm5, %v1779_v24, %v8632_v34  ;;  %v1714_v63 = vsel %vm285_vm0, %v4778_v4, %v8636_v27  ;;  %v8637_v14 = vld [vmem:[#allocation124_spill] sm:$0xff]  ;;  %v4779_v52 = vld [vmem:[#allocation2 + $0x150] sm:$0xff]  ;;  %v8639_v38 = vld [vmem:[#allocation146_spill] sm:$0xff] }
 0x29a   : > { %v1638_v36 = vpop.permute.xlu1 %1637  ;;  %v1844_v49 = vsel %vm1818_vm6, %v1811_v45, %v8631_v62  ;;  %v1845_v10 = vsel %vm1818_vm6, %v1812_v18, %v8634_v26  ;;  %v1747_v35 = vsel %vm1719_vm3, %v1714_v63, %v8637_v14  ;;  %v8638_v46 = vld [vmem:[#allocation87_spill] sm:$0xff]  ;;  %v8641_v0 = vld [vmem:[#allocation78_spill] sm:$0xff]  ;;  %v8642_v22 = vld [vmem:[#allocation145_spill] sm:$0xff] }
 0x29b   : > { %v1941_v28 = vsel %vm1917_vm9, %v1908_v31, %v1638_v36  ;;  %v1640_v60 = vpop.permute.xlu0 %1639  ;;  %v1877_v20 = vsel %vm1851_vm7, %v1844_v49, %v8633_v54  ;;  %v1878_v33 = vsel %vm1851_vm7, %v1845_v10, %v8635_v1  ;;  %v1715_v41 = vsel %vm285_vm0, %v4779_v52, %v8638_v46  ;;  %v8640_v56 = vld [vmem:[#allocation123_spill] sm:$0xff]  ;;  %v8643_v25 = vld [vmem:[#allocation161_spill] sm:$0xff]  ;;  %v8644_v53 = vld [vmem:[#allocation76_spill] sm:$0xff] }
 0x29c   : > { %4664 = vmatmul.mubr.msk.f32.gmra.mxu0 %vm1962_vm10, %v1941_v28  ;;  %v1942_v50 = vsel %vm1917_vm9, %v1909_v2, %v1640_v60  ;;  %v1780_v6 = vsel %vm1752_vm4, %v1747_v35, %v8639_v38  ;;  %v1748_v40 = vsel %vm1719_vm3, %v1715_v41, %v8640_v56  ;;  %v8645_v31 = vld [vmem:[#allocation185_spill] sm:$0xff]  ;;  %v8646_v7 = vld [vmem:[#allocation160_spill] sm:$0xff]  ;;  %v8649_v30 = vld [vmem:[#allocation126_spill] sm:$0xff] }
 0x29d   : > { %4666 = vmatprep.mubr.msk.f32.mxu0 %vm1962_vm10, %v1942_v50  ;;  %v1813_v21 = vsel %vm1785_vm5, %v1780_v6, %v8641_v0  ;;  %v1781_v57 = vsel %vm1752_vm4, %v1748_v40, %v8642_v22  ;;  %v8647_v9 = vld [vmem:[#allocation184_spill] sm:$0xff]  ;;  %v8648_v32 = vld [vmem:[#allocation93_spill] sm:$0xff]  ;;  %v4781_v11 = vld [vmem:[#allocation2 + $0x168] sm:$0xff] }
 0x29e   : > { %v1514_v12 = vpop.permute.xlu1 %1513  ;;  %v1846_v55 = vsel %vm1818_vm6, %v1813_v21, %v8643_v25  ;;  %v1814_v19 = vsel %vm1785_vm5, %v1781_v57, %v8644_v53  ;;  %v4780_v60 = vld [vmem:[#allocation2 + $0x158] sm:$0xff]  ;;  %v8652_v5 = vld [vmem:[#allocation125_spill] sm:$0xff]  ;;  %v8653_v62 = vld [vmem:[#allocation82_spill] sm:$0xff] }
 0x29f   : > { %v1516_v43 = vpop.permute.xlu0 %1515  ;;  %v1910_v58 = vsel %vm1884_vm8, %v1877_v20, %v1514_v12  ;;  %v1879_v36 = vsel %vm1851_vm7, %v1846_v55, %v8645_v31  ;;  %v1847_v39 = vsel %vm1818_vm6, %v1814_v19, %v8646_v7  ;;  %v1716_v15 = vsel %vm285_vm0, %v4780_v60, %v8648_v32  ;;  %v8650_v12 = vld [vmem:[#allocation91_spill] sm:$0xff]  ;;  %v8651_v44 = vld [vmem:[#allocation148_spill] sm:$0xff]  ;;  %v8658_v1 = vld [vmem:[#allocation162_spill] sm:$0xff] }
 0x2a0   : > { %v1911_v48 = vsel %vm1884_vm8, %v1878_v33, %v1516_v43  ;;  %v1880_v3 = vsel %vm1851_vm7, %v1847_v39, %v8647_v9  ;;  %v1749_v8 = vsel %vm1719_vm3, %v1716_v15, %v8649_v30  ;;  %v1717_v23 = vsel %vm285_vm0, %v4781_v11, %v8650_v12  ;;  %v8654_v43 = vld [vmem:[#allocation147_spill] sm:$0xff]  ;;  %v8656_v26 = vld [vmem:[#allocation80_spill] sm:$0xff]  ;;  %v8659_v27 = vld [vmem:[#allocation186_spill] sm:$0xff] }
 0x2a1   : > { %v1782_v16 = vsel %vm1752_vm4, %v1749_v8, %v8651_v44  ;;  %v1750_v24 = vsel %vm1719_vm3, %v1717_v23, %v8652_v5  ;;  %v8655_v18 = vld [vmem:[#allocation163_spill] sm:$0xff]  ;;  %v8660_v14 = vld [vmem:[#allocation97_spill] sm:$0xff]  ;;  %v8663_v0 = vld [vmem:[#allocation84_spill] sm:$0xff] }
 0x2a2   : > { %v1642_v37 = vpop.permute.xlu1 %1641  ;;  %v1815_v49 = vsel %vm1785_vm5, %v1782_v16, %v8653_v62  ;;  %v1783_v34 = vsel %vm1752_vm4, %v1750_v24, %v8654_v43  ;;  %v8661_v46 = vld [vmem:[#allocation127_spill] sm:$0xff]  ;;  %v2440_v6 = vld [vmem:[#allocation3 + $0x9] sm:$0xff] }
 0x2a3   : > { %v1943_v59 = vsel %vm1917_vm9, %v1910_v58, %v1642_v37  ;;  %v1644_v13 = vpop.permute.xlu0 %1643  ;;  %v1848_v54 = vsel %vm1818_vm6, %v1815_v49, %v8655_v18  ;;  %v1816_v10 = vsel %vm1785_vm5, %v1783_v34, %v8656_v26  ;;  %v8657_v58 = vld [vmem:[#allocation187_spill] sm:$0xff]  ;;  %2730 = vrot.lane.b32.xlu1 %v2440_v6, %s4809_s29  ;;  %v8664_v57 = vld [vmem:[#allocation164_spill] sm:$0xff] }
 0x2a4   : > { %4667 = vmatmul.mubr.msk.f32.gmra.mxu0 %vm1962_vm10, %v1943_v59  ;;  %v1944_v51 = vsel %vm1917_vm9, %v1911_v48, %v1644_v13  ;;  %v1881_v37 = vsel %vm1851_vm7, %v1848_v54, %v8657_v58  ;;  %v1849_v33 = vsel %vm1818_vm6, %v1816_v10, %v8658_v1  ;;  %v4782_v13 = vld [vmem:[#allocation2 + $0x170] sm:$0xff]  ;;  %v8665_v55 = vld [vmem:[#allocation188_spill] sm:$0xff] }
 0x2a5   : > { %4669 = vmatprep.mubr.msk.f32.mxu0 %vm1962_vm10, %v1944_v51  ;;  %v1882_v63 = vsel %vm1851_vm7, %v1849_v33, %v8659_v27  ;;  %v1718_v35 = vsel %vm285_vm0, %v4782_v13, %v8660_v14  ;;  %v2439_v22 = vld [vmem:[#allocation3 + $0x1] sm:$0xff] }
 0x2a6   : > { %v1518_v47 = vpop.permute.xlu1 %1517  ;;  %v1751_v41 = vsel %vm1719_vm3, %v1718_v35, %v8661_v46  ;;  %2728 = vrot.lane.b32.xlu0 %v2439_v22, %s4809_s29 }
 0x2a7   : > { %v1520_v17 = vpop.permute.xlu0 %1519  ;;  %v1912_v28 = vsel %vm1884_vm8, %v1879_v36, %v1518_v47  ;;  %v8662_v47 = vld [vmem:[#allocation149_spill] sm:$0xff] }
 0x2a8   : > { %v1913_v50 = vsel %vm1884_vm8, %v1880_v3, %v1520_v17  ;;  %v1784_v56 = vsel %vm1752_vm4, %v1751_v41, %v8662_v47  ;;  %v6846_v36 = vld [vmem:[%s8170_s3] ss:$0 sm:$0xff] }
 0x2a9   : > { %v1817_v21 = vsel %vm1785_vm5, %v1784_v56, %v8663_v0 }
 0x2aa   : > { %v1646_v29 = vpop.permute.xlu1 %1645  ;;  %v1850_v25 = vsel %vm1818_vm6, %v1817_v21, %v8664_v57 }
 0x2ab   : > { %v1945_v2 = vsel %vm1917_vm9, %v1912_v28, %v1646_v29  ;;  %v1648_v42 = vpop.permute.xlu0 %1647  ;;  %v1883_v17 = vsel %vm1851_vm7, %v1850_v25, %v8665_v55 }
 0x2ac   : > { %4670 = vmatmul.mubr.msk.f32.gmra.mxu0 %vm1962_vm10, %v1945_v2  ;;  %v1946_v61 = vsel %vm1917_vm9, %v1913_v50, %v1648_v42 }
 0x2ad   : > { %4672 = vmatprep.mubr.msk.f32.mxu0 %vm1962_vm10, %v1946_v61 }
 0x2ae   : > { %v1522_v45 = vpop.permute.xlu1 %1521 }
 0x2af   : > { %v1524_v20 = vpop.permute.xlu0 %1523  ;;  %v1914_v59 = vsel %vm1884_vm8, %v1881_v37, %v1522_v45 }
 0x2b0   : > { %v1915_v51 = vsel %vm1884_vm8, %v1882_v63, %v1524_v20 }
 0x2b2   : > { %v1650_v4 = vpop.permute.xlu1 %1649 }
 0x2b3   : > { %v1947_v48 = vsel %vm1917_vm9, %v1914_v59, %v1650_v4  ;;  %v1652_v52 = vpop.permute.xlu0 %1651 }
 0x2b4   : > { %4673 = vmatmul.mubr.msk.f32.gmra.mxu0 %vm1962_vm10, %v1947_v48  ;;  %v1948_v38 = vsel %vm1917_vm9, %v1915_v51, %v1652_v52 }
 0x2b5   : > { %4675 = vmatprep.mubr.msk.f32.mxu0 %vm1962_vm10, %v1948_v38 }
 0x2b6   : > { %v1526_v40 = vpop.permute.xlu1 %1525 }
 0x2b7   : > { %v1916_v53 = vsel %vm1884_vm8, %v1883_v17, %v1526_v40 }
 0x2ba   : > { %v1654_v19 = vpop.permute.xlu1 %1653 }
 0x2bb   : > { %v1949_v31 = vsel %vm1917_vm9, %v1916_v53, %v1654_v19 }
 0x2bc   : > { %4676 = vmatmul.mubr.msk.f32.gmra.mxu0 %vm1962_vm10, %v1949_v31 }
 0x32d   : > { %v4632_v7 = vpop.f32.mrf.mxu0 }
 0x32e   : > { %v2135_v39 = vadd.f32 %v4632_v7, %v6846_v36 }
 0x32f   : > { %v2129_v28 = vpop.f32.mrf.mxu0 }
 0x330   : > { %v2289_v29 = vmax.f32 %v2135_v39, 0.0  ;;  %v2130_v9 = vadd.f32 %v6846_v36, %v2129_v28 }
 0x331   : > { %v4635_v3 = vpop.f32.mrf.mxu0 }
 0x332   : > { %2376 = vst.msk [vmem:[#allocation3 + $0x21] sm:$0xff] %vm285_vm0, %v2289_v29  ;;  %v2288_v2 = vmax.f32 %v2130_v9, 0.0  ;;  %v2145_v60 = vadd.f32 %v4635_v3, %v6846_v36 }
 0x333   : > { %v2139_v32 = vpop.f32.mrf.mxu0 }
 0x334   : > { %2375 = vst.msk [vmem:[#allocation3 + $0x19] sm:$0xff] %vm285_vm0, %v2288_v2  ;;  %v2291_v15 = vmax.f32 %v2145_v60, 0.0  ;;  %v2140_v50 = vadd.f32 %v6846_v36, %v2139_v32 }
 0x335   : > { %v4638_v42 = vpop.f32.mrf.mxu0 }
 0x336   : > { %2378 = vst.msk [vmem:[#allocation3 + $0x39] sm:$0xff] %vm285_vm0, %v2291_v15  ;;  %v2290_v30 = vmax.f32 %v2140_v50, 0.0  ;;  %v2155_v8 = vadd.f32 %v4638_v42, %v6846_v36 }
 0x337   : > { %v2149_v61 = vpop.f32.mrf.mxu0 }
 0x338   : > { %2377 = vst.msk [vmem:[#allocation3 + $0x31] sm:$0xff] %vm285_vm0, %v2290_v30  ;;  %v2293_v11 = vmax.f32 %v2155_v8, 0.0  ;;  %v2150_v12 = vadd.f32 %v6846_v36, %v2149_v61 }
 0x339   : > { %v4641_v23 = vpop.f32.mrf.mxu0  ;;  %v6858_v44 = vld [vmem:[#allocation3 + $0x21] sm:$0xff] }
 0x33a   : > { %2380 = vst.msk [vmem:[#allocation3 + $0x51] sm:$0xff] %vm285_vm0, %v2293_v11  ;;  %v2292_v16 = vmax.f32 %v2150_v12, 0.0  ;;  %v2165_v45 = vadd.f32 %v4641_v23, %v6846_v36  ;;  %2734 = vrot.lane.b32.xlu1 %v6858_v44, %s4809_s29 }
 0x33b   : > { %v2159_v5 = vpop.f32.mrf.mxu0  ;;  %v6864_v24 = vld [vmem:[#allocation3 + $0x19] sm:$0xff] }
 0x33c   : > { %2379 = vst.msk [vmem:[#allocation3 + $0x49] sm:$0xff] %vm285_vm0, %v2292_v16  ;;  %v2295_v62 = vmax.f32 %v2165_v45, 0.0  ;;  %v2160_v49 = vadd.f32 %v6846_v36, %v2159_v5  ;;  %2732 = vrot.lane.b32.xlu0 %v6864_v24, %s4809_s29 }
 0x33d   : > { %v4644_v43 = vpop.f32.mrf.mxu0  ;;  %v6870_v34 = vld [vmem:[#allocation3 + $0x39] sm:$0xff] }
 0x33e   : > { %2382 = vst.msk [vmem:[#allocation3 + $0x69] sm:$0xff] %vm285_vm0, %v2295_v62  ;;  %v2294_v18 = vmax.f32 %v2160_v49, 0.0  ;;  %v2175_v54 = vadd.f32 %v4644_v43, %v6846_v36  ;;  %2738 = vrot.lane.b32.xlu1 %v6870_v34, %s4809_s29 }
 0x33f   : > { %v2169_v20 = vpop.f32.mrf.mxu0  ;;  %v6876_v26 = vld [vmem:[#allocation3 + $0x31] sm:$0xff] }
 0x340   : > { %2381 = vst.msk [vmem:[#allocation3 + $0x61] sm:$0xff] %vm285_vm0, %v2294_v18  ;;  %v2297_v10 = vmax.f32 %v2175_v54, 0.0  ;;  %v2170_v58 = vadd.f32 %v6846_v36, %v2169_v20  ;;  %2736 = vrot.lane.b32.xlu0 %v6876_v26, %s4809_s29 }
 0x341   : > { %v4647_v37 = vpop.f32.mrf.mxu0  ;;  %v6882_v1 = vld [vmem:[#allocation3 + $0x51] sm:$0xff] }
 0x342   : > { %2384 = vst.msk [vmem:[#allocation3 + $0x81] sm:$0xff] %vm285_vm0, %v2297_v10  ;;  %v2296_v33 = vmax.f32 %v2170_v58, 0.0  ;;  %v2185_v59 = vadd.f32 %v4647_v37, %v6846_v36  ;;  %2742 = vrot.lane.b32.xlu1 %v6882_v1, %s4809_s29 }
 0x343   : > { %v2179_v4 = vpop.f32.mrf.mxu0  ;;  %v6888_v27 = vld [vmem:[#allocation3 + $0x49] sm:$0xff] }
 0x344   : > { %2383 = vst.msk [vmem:[#allocation3 + $0x79] sm:$0xff] %vm285_vm0, %v2296_v33  ;;  %v2299_v63 = vmax.f32 %v2185_v59, 0.0  ;;  %v2180_v48 = vadd.f32 %v6846_v36, %v2179_v4  ;;  %2740 = vrot.lane.b32.xlu0 %v6888_v27, %s4809_s29 }
 0x345   : > { %v4650_v13 = vpop.f32.mrf.mxu0  ;;  %v6894_v14 = vld [vmem:[#allocation3 + $0x69] sm:$0xff] }
 0x346   : > { %2386 = vst.msk [vmem:[#allocation3 + $0x99] sm:$0xff] %vm285_vm0, %v2299_v63  ;;  %v2298_v35 = vmax.f32 %v2180_v48, 0.0  ;;  %v2195_v51 = vadd.f32 %v4650_v13, %v6846_v36  ;;  %2746 = vrot.lane.b32.xlu1 %v6894_v14, %s4809_s29 }
 0x347   : > { %v2189_v52 = vpop.f32.mrf.mxu0  ;;  %v6900_v46 = vld [vmem:[#allocation3 + $0x61] sm:$0xff] }
 0x348   : > { %2385 = vst.msk [vmem:[#allocation3 + $0x91] sm:$0xff] %vm285_vm0, %v2298_v35  ;;  %v2301_v41 = vmax.f32 %v2195_v51, 0.0  ;;  %v2190_v38 = vadd.f32 %v6846_v36, %v2189_v52  ;;  %2744 = vrot.lane.b32.xlu0 %v6900_v46, %s4809_s29 }
 0x349   : > { %v4653_v6 = vpop.f32.mrf.mxu0  ;;  %v6906_v47 = vld [vmem:[#allocation3 + $0x81] sm:$0xff] }
 0x34a   : > { %2388 = vst.msk [vmem:[#allocation3 + $0xb1] sm:$0xff] %vm285_vm0, %v2301_v41  ;;  %v2300_v56 = vmax.f32 %v2190_v38, 0.0  ;;  %v2205_v40 = vadd.f32 %v4653_v6, %v6846_v36  ;;  %2750 = vrot.lane.b32.xlu1 %v6906_v47, %s4809_s29 }
 0x34b   : > { %v2199_v0 = vpop.f32.mrf.mxu0  ;;  %v6912_v21 = vld [vmem:[#allocation3 + $0x79] sm:$0xff] }
 0x34c   : > { %2387 = vst.msk [vmem:[#allocation3 + $0xa9] sm:$0xff] %vm285_vm0, %v2300_v56  ;;  %v2303_v22 = vmax.f32 %v2205_v40, 0.0  ;;  %v2200_v57 = vadd.f32 %v6846_v36, %v2199_v0  ;;  %2748 = vrot.lane.b32.xlu0 %v6912_v21, %s4809_s29 }
 0x34d   : > { %v4656_v25 = vpop.f32.mrf.mxu0  ;;  %v2452_v55 = vld [vmem:[#allocation3 + $0x99] sm:$0xff] }
 0x34e   : > { %2390 = vst.msk [vmem:[#allocation3 + $0xc9] sm:$0xff] %vm285_vm0, %v2303_v22  ;;  %v2302_v17 = vmax.f32 %v2200_v57, 0.0  ;;  %v2215_v53 = vadd.f32 %v4656_v25, %v6846_v36  ;;  %2754 = vrot.lane.b32.xlu1 %v2452_v55, %s4809_s29 }
 0x34f   : > { %v2209_v19 = vpop.f32.mrf.mxu0  ;;  %v6921_v31 = vld [vmem:[#allocation3 + $0x91] sm:$0xff] }
 0x350   : > { %2389 = vst.msk [vmem:[#allocation3 + $0xc1] sm:$0xff] %vm285_vm0, %v2302_v17  ;;  %v2305_v7 = vmax.f32 %v2215_v53, 0.0  ;;  %v2210_v39 = vadd.f32 %v6846_v36, %v2209_v19  ;;  %2752 = vrot.lane.b32.xlu0 %v6921_v31, %s4809_s29 }
 0x351   : > { %v4659_v28 = vpop.f32.mrf.mxu0  ;;  %v2454_v29 = vld [vmem:[#allocation3 + $0xb1] sm:$0xff] }
 0x352   : > { %2392 = vst.msk [vmem:[#allocation3 + $0xe1] sm:$0xff] %vm285_vm0, %v2305_v7  ;;  %v2304_v9 = vmax.f32 %v2210_v39, 0.0  ;;  %v2225_v3 = vadd.f32 %v4659_v28, %v6846_v36  ;;  %2758 = vrot.lane.b32.xlu1 %v2454_v29, %s4809_s29 }
 0x353   : > { %v2219_v2 = vpop.f32.mrf.mxu0  ;;  %v2453_v60 = vld [vmem:[#allocation3 + $0xa9] sm:$0xff] }
 0x354   : > { %2391 = vst.msk [vmem:[#allocation3 + $0xd9] sm:$0xff] %vm285_vm0, %v2304_v9  ;;  %v2307_v32 = vmax.f32 %v2225_v3, 0.0  ;;  %v2220_v15 = vadd.f32 %v6846_v36, %v2219_v2  ;;  %2756 = vrot.lane.b32.xlu0 %v2453_v60, %s4809_s29 }
 0x355   : > { %v4662_v50 = vpop.f32.mrf.mxu0  ;;  %v2456_v42 = vld [vmem:[#allocation3 + $0xc9] sm:$0xff] }
 0x356   : > { %2394 = vst.msk [vmem:[#allocation3 + $0xf9] sm:$0xff] %vm285_vm0, %v2307_v32  ;;  %v2306_v30 = vmax.f32 %v2220_v15, 0.0  ;;  %v2235_v8 = vadd.f32 %v4662_v50, %v6846_v36  ;;  %2762 = vrot.lane.b32.xlu1 %v2456_v42, %s4809_s29  ;;  %v2472_v42 = vld [vmem:[#allocation3 + $0xa] sm:$0xff] }
 0x357   : > { %v2229_v61 = vpop.f32.mrf.mxu0  ;;  %v2455_v11 = vld [vmem:[#allocation3 + $0xc1] sm:$0xff] }
 0x358   : > { %2393 = vst.msk [vmem:[#allocation3 + $0xf1] sm:$0xff] %vm285_vm0, %v2306_v30  ;;  %v2309_v12 = vmax.f32 %v2235_v8, 0.0  ;;  %v2230_v23 = vadd.f32 %v6846_v36, %v2229_v61  ;;  %2760 = vrot.lane.b32.xlu0 %v2455_v11, %s4809_s29  ;;  %v2471_v30 = vld [vmem:[#allocation3 + $0x2] sm:$0xff]  ;;  %v6985_v61 = vld [vmem:[#allocation3 + $0x3a] sm:$0xff]  ;;  %v6989_v11 = vld [vmem:[#allocation3 + $0x32] sm:$0xff] }
 0x359   : > { %v2458_v16 = vld [vmem:[#allocation3 + $0xe1] sm:$0xff] }
 0x35a   : > { %2396 = vst.msk [vmem:[#allocation3 + $0x111] sm:$0xff] %vm285_vm0, %v2309_v12  ;;  %v2308_v45 = vmax.f32 %v2230_v23, 0.0  ;;  %2766 = vrot.lane.b32.xlu1 %v2458_v16, %s4809_s29  ;;  %v6977_v8 = vld [vmem:[#allocation3 + $0x22] sm:$0xff]  ;;  %v6993_v12 = vld [vmem:[#allocation3 + $0x52] sm:$0xff]  ;;  %v6997_v23 = vld [vmem:[#allocation3 + $0x4a] sm:$0xff] }
 0x35b   : > { %v2457_v5 = vld [vmem:[#allocation3 + $0xd9] sm:$0xff]  ;;  %v7001_v16 = vld [vmem:[#allocation3 + $0x6a] sm:$0xff] }
 0x35c   : > { %2395 = vst.msk [vmem:[#allocation3 + $0x109] sm:$0xff] %vm285_vm0, %v2308_v45  ;;  %v4665_v62 = vpop.f32.mrf.mxu0  ;;  %2764 = vrot.lane.b32.xlu0 %v2457_v5, %s4809_s29  ;;  %v7005_v45 = vld [vmem:[#allocation3 + $0x62] sm:$0xff] }
 0x35d   : > { %v2245_v49 = vadd.f32 %v4665_v62, %v6846_v36  ;;  %v2460_v43 = vld [vmem:[#allocation3 + $0xf9] sm:$0xff]  ;;  %v7009_v5 = vld [vmem:[#allocation3 + $0x82] sm:$0xff] }
 0x35e   : > { %2770 = vrot.lane.b32.xlu1 %v2460_v43, %s4809_s29  ;;  %v2239_v18 = vpop.f32.mrf.mxu0  ;;  %v7013_v62 = vld [vmem:[#allocation3 + $0x7a] sm:$0xff]  ;;  %v7021_v43 = vld [vmem:[#allocation3 + $0x92] sm:$0xff] }
 0x35f   : > { %v2311_v54 = vmax.f32 %v2245_v49, 0.0  ;;  %v2240_v20 = vadd.f32 %v6846_v36, %v2239_v18  ;;  %v2459_v10 = vld [vmem:[#allocation3 + $0xf1] sm:$0xff]  ;;  %v7017_v49 = vld [vmem:[#allocation3 + $0x9a] sm:$0xff] }
 0x360   : > { %2768 = vrot.lane.b32.xlu0 %v2459_v10, %s4809_s29  ;;  %v7025_v18 = vld [vmem:[#allocation3 + $0xb2] sm:$0xff]  ;;  %v7037_v10 = vld [vmem:[#allocation3 + $0xc2] sm:$0xff] }
 0x361   : > { %2398 = vst.msk [vmem:[#allocation3 + $0x129] sm:$0xff] %vm285_vm0, %v2311_v54  ;;  %v2310_v58 = vmax.f32 %v2240_v20, 0.0  ;;  %v2462_v37 = vld [vmem:[#allocation3 + $0x111] sm:$0xff] }
 0x362   : > { %2774 = vrot.lane.b32.xlu1 %v2462_v37, %s4809_s29  ;;  %v7029_v54 = vld [vmem:[#allocation3 + $0xaa] sm:$0xff]  ;;  %v2490_v37 = vld [vmem:[#allocation3 + $0xe2] sm:$0xff] }
 0x363   : > { %2397 = vst.msk [vmem:[#allocation3 + $0x121] sm:$0xff] %vm285_vm0, %v2310_v58  ;;  %v2461_v33 = vld [vmem:[#allocation3 + $0x109] sm:$0xff]  ;;  %v7039_v58 = vpop.permute.xlu1 %2730 }
 0x364   : > { %v4668_v59 = vpop.f32.mrf.mxu0  ;;  %2772 = vrot.lane.b32.xlu0 %v2461_v33, %s4809_s29  ;;  %v7033_v20 = vld [vmem:[#allocation3 + $0xca] sm:$0xff]  ;;  %v7043_v33 = vpop.permute.xlu0 %2728 }
 0x365   : > { %v2255_v4 = vadd.f32 %v4668_v59, %v6846_v36  ;;  %v2489_v59 = vld [vmem:[#allocation3 + $0xda] sm:$0xff] }
 0x366   : > { %v2249_v63 = vpop.f32.mrf.mxu0 }
 0x367   : > { %v2313_v48 = vmax.f32 %v2255_v4, 0.0  ;;  %v2250_v13 = vadd.f32 %v6846_v36, %v2249_v63  ;;  %v2492_v63 = vld [vmem:[#allocation3 + $0xfa] sm:$0xff] }
 0x368   : > { %v2464_v35 = vld [vmem:[#allocation3 + $0x129] sm:$0xff] }
 0x369   : > { %2400 = vst.msk [vmem:[#allocation3 + $0x141] sm:$0xff] %vm285_vm0, %v2313_v48  ;;  %v2312_v51 = vmax.f32 %v2250_v13, 0.0  ;;  %2778 = vrot.lane.b32.xlu1 %v2464_v35, %s4809_s29  ;;  %v2491_v13 = vld [vmem:[#allocation3 + $0xf2] sm:$0xff] }
 0x36a   : > { %v2463_v52 = vld [vmem:[#allocation3 + $0x121] sm:$0xff] }
 0x36b   : > { %2399 = vst.msk [vmem:[#allocation3 + $0x139] sm:$0xff] %vm285_vm0, %v2312_v51  ;;  %2776 = vrot.lane.b32.xlu0 %v2463_v52, %s4809_s29  ;;  %v2494_v51 = vld [vmem:[#allocation3 + $0x112] sm:$0xff] }
 0x36c   : > { %v4671_v41 = vpop.f32.mrf.mxu0 }
 0x36d   : > { %v2265_v38 = vadd.f32 %v4671_v41, %v6846_v36  ;;  %v2493_v41 = vld [vmem:[#allocation3 + $0x10a] sm:$0xff] }
 0x36e   : > { %v2259_v6 = vpop.f32.mrf.mxu0 }
 0x36f   : > { %v2315_v56 = vmax.f32 %v2265_v38, 0.0  ;;  %v2260_v40 = vadd.f32 %v6846_v36, %v2259_v6  ;;  %v2496_v6 = vld [vmem:[#allocation3 + $0x12a] sm:$0xff] }
 0x370   : > { %v2466_v0 = vld [vmem:[#allocation3 + $0x141] sm:$0xff] }
 0x371   : > { %2402 = vst.msk [vmem:[#allocation3 + $0x159] sm:$0xff] %vm285_vm0, %v2315_v56  ;;  %v2314_v22 = vmax.f32 %v2260_v40, 0.0  ;;  %2782 = vrot.lane.b32.xlu1 %v2466_v0, %s4809_s29  ;;  %v2495_v40 = vld [vmem:[#allocation3 + $0x122] sm:$0xff] }
 0x372   : > { %v2465_v57 = vld [vmem:[#allocation3 + $0x139] sm:$0xff]  ;;  %v2498_v0 = vld [vmem:[#allocation3 + $0x142] sm:$0xff] }
 0x373   : > { %2401 = vst.msk [vmem:[#allocation3 + $0x151] sm:$0xff] %vm285_vm0, %v2314_v22  ;;  %2780 = vrot.lane.b32.xlu0 %v2465_v57, %s4809_s29  ;;  %v2497_v57 = vld [vmem:[#allocation3 + $0x13a] sm:$0xff] }
 0x374   : > { %v4674_v25 = vpop.f32.mrf.mxu0 }
 0x375   : > { %v2275_v55 = vadd.f32 %v4674_v25, %v6846_v36 }
 0x376   : > { %v2269_v17 = vpop.f32.mrf.mxu0 }
 0x377   : > { %v2317_v53 = vmax.f32 %v2275_v55, 0.0  ;;  %v2270_v19 = vadd.f32 %v6846_v36, %v2269_v17 }
 0x378   : > { %v2468_v7 = vld [vmem:[#allocation3 + $0x159] sm:$0xff] }
 0x379   : > { %2404 = vst.msk [vmem:[#allocation3 + $0x171] sm:$0xff] %vm285_vm0, %v2317_v53  ;;  %v2316_v39 = vmax.f32 %v2270_v19, 0.0  ;;  %2786 = vrot.lane.b32.xlu1 %v2468_v7, %s4809_s29  ;;  %v2500_v55 = vld [vmem:[#allocation3 + $0x15a] sm:$0xff] }
 0x37a   : > { %v2467_v28 = vld [vmem:[#allocation3 + $0x151] sm:$0xff] }
 0x37b   : > { %2403 = vst.msk [vmem:[#allocation3 + $0x169] sm:$0xff] %vm285_vm0, %v2316_v39  ;;  %2784 = vrot.lane.b32.xlu0 %v2467_v28, %s4809_s29  ;;  %v2499_v17 = vld [vmem:[#allocation3 + $0x152] sm:$0xff]  ;;  %v7079_v28 = vld [vmem:[#allocation3 + $0x20] sm:$0xff] }
 0x37c   : > { %v4677_v29 = vpop.f32.mrf.mxu0 }
 0x37d   : > { %v2285_v9 = vadd.f32 %v4677_v29, %v6846_v36 }
 0x37e   : > { %v2279_v3 = vpop.f32.mrf.mxu0 }
 0x37f   : > { %v2319_v2 = vmax.f32 %v2285_v9, 0.0  ;;  %v2280_v60 = vadd.f32 %v6846_v36, %v2279_v3  ;;  %v6981_v36 = vld [vmem:[#allocation3 + $0x1a] sm:$0xff] }
 0x380   : > { %v2470_v32 = vld [vmem:[#allocation3 + $0x171] sm:$0xff] }
 0x381   : > { %2406 = vst.msk [vmem:[#allocation3 + $0x189] sm:$0xff] %vm285_vm0, %v2319_v2  ;;  %v2318_v15 = vmax.f32 %v2280_v60, 0.0  ;;  %2790 = vrot.lane.b32.xlu1 %v2470_v32, %s4809_s29  ;;  %v2502_v19 = vld [vmem:[#allocation3 + $0x172] sm:$0xff] }
 0x382   : > { %v2469_v50 = vld [vmem:[#allocation3 + $0x169] sm:$0xff]  ;;  %v7085_v9 = vld [vmem:[#allocation3 + $0x18] sm:$0xff] }
 0x383   : > { %2405 = vst.msk [vmem:[#allocation3 + $0x181] sm:$0xff] %vm285_vm0, %v2318_v15  ;;  %2788 = vrot.lane.b32.xlu0 %v2469_v50, %s4809_s29  ;;  %v2501_v39 = vld [vmem:[#allocation3 + $0x16a] sm:$0xff]  ;;  %v7091_v2 = vld [vmem:[#allocation3 + $0x38] sm:$0xff] }
 0x384   : > { %v7095_v60 = vld [vmem:[#allocation3 + $0x30] sm:$0xff] }
 0x385   : > { %2858 = vrot.lane.b32.xlu1 %v2472_v42, %s4810_s30  ;;  %v7101_v15 = vld [vmem:[#allocation3 + $0x50] sm:$0xff]  ;;  %v7107_v42 = vld [vmem:[#allocation3 + $0x48] sm:$0xff] }
 0x387   : > { %2856 = vrot.lane.b32.xlu0 %v2471_v30, %s4810_s30  ;;  %v7111_v30 = vld [vmem:[#allocation3 + $0x68] sm:$0xff] }
 0x389   : > { %2862 = vrot.lane.b32.xlu1 %v6977_v8, %s4810_s30 }
 0x38b   : > { %2860 = vrot.lane.b32.xlu0 %v6981_v36, %s4810_s30 }
 0x38d   : > { %2866 = vrot.lane.b32.xlu1 %v6985_v61, %s4810_s30 }
 0x38f   : > { %2864 = vrot.lane.b32.xlu0 %v6989_v11, %s4810_s30 }
 0x391   : > { %2870 = vrot.lane.b32.xlu1 %v6993_v12, %s4810_s30 }
 0x393   : > { %2868 = vrot.lane.b32.xlu0 %v6997_v23, %s4810_s30 }
 0x395   : > { %2874 = vrot.lane.b32.xlu1 %v7001_v16, %s4810_s30 }
 0x397   : > { %2872 = vrot.lane.b32.xlu0 %v7005_v45, %s4810_s30 }
 0x399   : > { %2878 = vrot.lane.b32.xlu1 %v7009_v5, %s4810_s30 }
 0x39b   : > { %2876 = vrot.lane.b32.xlu0 %v7013_v62, %s4810_s30 }
 0x39d   : > { %2882 = vrot.lane.b32.xlu1 %v7017_v49, %s4810_s30 }
 0x39f   : > { %2880 = vrot.lane.b32.xlu0 %v7021_v43, %s4810_s30 }
 0x3a1   : > { %2886 = vrot.lane.b32.xlu1 %v7025_v18, %s4810_s30 }
 0x3a3   : > { %2884 = vrot.lane.b32.xlu0 %v7029_v54, %s4810_s30 }
 0x3a5   : > { %2890 = vrot.lane.b32.xlu1 %v7033_v20, %s4810_s30 }
 0x3a7   : > { %2888 = vrot.lane.b32.xlu0 %v7037_v10, %s4810_s30 }
 0x3a9   : > { %2894 = vrot.lane.b32.xlu1 %v2490_v37, %s4810_s30 }
 0x3ab   : > { %2892 = vrot.lane.b32.xlu0 %v2489_v59, %s4810_s30  ;;  %v7117_v59 = vld [vmem:[#allocation3 + $0x60] sm:$0xff] }
 0x3ac   : > { %v7047_v4 = vpop.permute.xlu1 %2734 }
 0x3ad   : > { %2898 = vrot.lane.b32.xlu1 %v2492_v63, %s4810_s30 }
 0x3ae   : > { %v7050_v48 = vpop.permute.xlu0 %2732 }
 0x3af   : > { %2896 = vrot.lane.b32.xlu0 %v2491_v13, %s4810_s30  ;;  %v7123_v13 = vld [vmem:[#allocation3 + $0x80] sm:$0xff] }
 0x3b0   : > { %v7053_v35 = vpop.permute.xlu1 %2738 }
 0x3b1   : > { %2902 = vrot.lane.b32.xlu1 %v2494_v51, %s4810_s30  ;;  %v7127_v51 = vld [vmem:[#allocation3 + $0x78] sm:$0xff] }
 0x3b2   : > { %v7056_v52 = vpop.permute.xlu0 %2736 }
 0x3b3   : > { %2900 = vrot.lane.b32.xlu0 %v2493_v41, %s4810_s30 }
 0x3b4   : > { %v7059_v38 = vpop.permute.xlu1 %2742 }
 0x3b5   : > { %8666 = vst [vmem:[#allocation38_spill] sm:$0xff] %v7059_v38  ;;  %2906 = vrot.lane.b32.xlu1 %v2496_v6, %s4810_s30  ;;  %v7133_v6 = vld [vmem:[#allocation3 + $0x98] sm:$0xff] }
 0x3b6   : > { %v7062_v56 = vpop.permute.xlu0 %2740 }
 0x3b7   : > { %2904 = vrot.lane.b32.xlu0 %v2495_v40, %s4810_s30 }
 0x3b8   : > { %v7065_v22 = vpop.permute.xlu1 %2746 }
 0x3b9   : > { %8667 = vst [vmem:[#allocation40_spill] sm:$0xff] %v7065_v22  ;;  %2910 = vrot.lane.b32.xlu1 %v2498_v0, %s4810_s30  ;;  %v7139_v0 = vld [vmem:[#allocation3 + $0x90] sm:$0xff]  ;;  %v2434_v22 = vld [vmem:[#allocation3 + $0x140] sm:$0xff] }
 0x3ba   : > { %v7068_v25 = vpop.permute.xlu0 %2744 }
 0x3bb   : > { %8668 = vst [vmem:[#allocation95_spill] sm:$0xff] %v7068_v25  ;;  %2908 = vrot.lane.b32.xlu0 %v2497_v57, %s4810_s30  ;;  %v7143_v57 = vld [vmem:[#allocation3 + $0xb0] sm:$0xff]  ;;  %v2433_v25 = vld [vmem:[#allocation3 + $0x138] sm:$0xff] }
 0x3bc   : > { %v7072_v53 = vpop.permute.xlu1 %2750 }
 0x3bd   : > { %2914 = vrot.lane.b32.xlu1 %v2500_v55, %s4810_s30  ;;  %8669 = vst [vmem:[#allocation42_spill] sm:$0xff] %v7072_v53  ;;  %v7201_v53 = vld [vmem:[#allocation3 + $0x128] sm:$0xff] }
 0x3be   : > { %v7075_v7 = vpop.permute.xlu0 %2748  ;;  %8691 = vst [vmem:[#allocation167_spill] sm:$0xff] %v7201_v53 }
 0x3bf   : > { %2912 = vrot.lane.b32.xlu0 %v2499_v17, %s4810_s30  ;;  %8670 = vst [vmem:[#allocation100_spill] sm:$0xff] %v7075_v7  ;;  %v7149_v17 = vld [vmem:[#allocation3 + $0xa8] sm:$0xff]  ;;  %v7207_v7 = vld [vmem:[#allocation3 + $0x120] sm:$0xff] }
 0x3c0   : > { %v7081_v29 = vpop.permute.xlu1 %2754  ;;  %8680 = vst [vmem:[#allocation51_spill] sm:$0xff] %v7149_v17  ;;  %8693 = vst [vmem:[#allocation130_spill] sm:$0xff] %v7207_v7 }
 0x3c1   : > { %2918 = vrot.lane.b32.xlu1 %v2502_v19, %s4810_s30  ;;  %8671 = vst [vmem:[#allocation44_spill] sm:$0xff] %v7081_v29  ;;  %v7189_v29 = vld [vmem:[#allocation3 + $0x110] sm:$0xff] }
 0x3c2   : > { %v7087_v3 = vpop.permute.xlu0 %2752  ;;  %8687 = vst [vmem:[#allocation88_spill] sm:$0xff] %v7189_v29 }
 0x3c3   : > { %2916 = vrot.lane.b32.xlu0 %v2501_v39, %s4810_s30  ;;  %8672 = vst [vmem:[#allocation45_spill] sm:$0xff] %v7087_v3  ;;  %v7155_v39 = vld [vmem:[#allocation3 + $0xc8] sm:$0xff] }
 0x3c4   : > { %v7097_v32 = vpop.permute.xlu1 %2758  ;;  %v7195_v3 = vld [vmem:[#allocation3 + $0x108] sm:$0xff] }
 0x3c5   : > { %2986 = vrot.lane.b32.xlu1 %v7079_v28, %s4811_s7  ;;  %8673 = vst [vmem:[#allocation99_spill] sm:$0xff] %v7097_v32  ;;  %v7177_v32 = vld [vmem:[#allocation3 + $0xf8] sm:$0xff]  ;;  %8689 = vst [vmem:[#allocation108_spill] sm:$0xff] %v7195_v3 }
 0x3c6   : > { %v7103_v50 = vpop.permute.xlu0 %2756 }
 0x3c7   : > { %2984 = vrot.lane.b32.xlu0 %v7085_v9, %s4811_s7  ;;  %8674 = vst [vmem:[#allocation103_spill] sm:$0xff] %v7103_v50  ;;  %v7183_v50 = vld [vmem:[#allocation3 + $0xf0] sm:$0xff] }
 0x3c8   : > { %v7113_v37 = vpop.permute.xlu1 %2762 }
 0x3c9   : > { %2990 = vrot.lane.b32.xlu1 %v7091_v2, %s4811_s7  ;;  %8675 = vst [vmem:[#allocation47_spill] sm:$0xff] %v7113_v37 }
 0x3ca   : > { %v7119_v63 = vpop.permute.xlu0 %2760 }
 0x3cb   : > { %2988 = vrot.lane.b32.xlu0 %v7095_v60, %s4811_s7  ;;  %8676 = vst [vmem:[#allocation48_spill] sm:$0xff] %v7119_v63 }
 0x3cc   : > { %v7129_v41 = vpop.permute.xlu1 %2766 }
 0x3cd   : > { %2994 = vrot.lane.b32.xlu1 %v7101_v15, %s4811_s7  ;;  %8677 = vst [vmem:[#allocation102_spill] sm:$0xff] %v7129_v41  ;;  %v7159_v41 = vld [vmem:[#allocation3 + $0xc0] sm:$0xff] }
 0x3ce   : > { %v7135_v40 = vpop.permute.xlu0 %2764 }
 0x3cf   : > { %2992 = vrot.lane.b32.xlu0 %v7107_v42, %s4811_s7  ;;  %8678 = vst [vmem:[#allocation105_spill] sm:$0xff] %v7135_v40 }
 0x3d0   : > { %v7145_v55 = vpop.permute.xlu1 %2770 }
 0x3d1   : > { %2998 = vrot.lane.b32.xlu1 %v7111_v30, %s4811_s7  ;;  %8679 = vst [vmem:[#allocation50_spill] sm:$0xff] %v7145_v55  ;;  %v7165_v55 = vld [vmem:[#allocation3 + $0xe0] sm:$0xff] }
 0x3d2   : > { %v7151_v19 = vpop.permute.xlu0 %2768 }
 0x3d3   : > { %2996 = vrot.lane.b32.xlu0 %v7117_v59, %s4811_s7  ;;  %8681 = vst [vmem:[#allocation104_spill] sm:$0xff] %v7151_v19  ;;  %v7171_v19 = vld [vmem:[#allocation3 + $0xd8] sm:$0xff] }
 0x3d4   : > { %v7161_v40 = vpop.permute.xlu1 %2774 }
 0x3d5   : > { %3002 = vrot.lane.b32.xlu1 %v7123_v13, %s4811_s7  ;;  %8682 = vst [vmem:[#allocation53_spill] sm:$0xff] %v7161_v40 }
 0x3d6   : > { %v7167_v37 = vpop.permute.xlu0 %2772 }
 0x3d7   : > { %3000 = vrot.lane.b32.xlu0 %v7127_v51, %s4811_s7  ;;  %8683 = vst [vmem:[#allocation55_spill] sm:$0xff] %v7167_v37 }
 0x3d9   : > { %3006 = vrot.lane.b32.xlu1 %v7133_v6, %s4811_s7 }
 0x3db   : > { %3004 = vrot.lane.b32.xlu0 %v7139_v0, %s4811_s7  ;;  %v7173_v63 = vpop.permute.xlu1 %2778 }
 0x3dc   : > { %8684 = vst [vmem:[#allocation106_spill] sm:$0xff] %v7173_v63 }
 0x3dd   : > { %3010 = vrot.lane.b32.xlu1 %v7143_v57, %s4811_s7  ;;  %v7179_v40 = vpop.permute.xlu0 %2776 }
 0x3de   : > { %8685 = vst [vmem:[#allocation57_spill] sm:$0xff] %v7179_v40 }
 0x3df   : > { %3008 = vrot.lane.b32.xlu0 %v7149_v17, %s4811_s7 }
 0x3e1   : > { %3014 = vrot.lane.b32.xlu1 %v7155_v39, %s4811_s7 }
 0x3e3   : > { %3012 = vrot.lane.b32.xlu0 %v7159_v41, %s4811_s7  ;;  %v7185_v37 = vpop.permute.xlu1 %2782 }
 0x3e4   : > { %8686 = vst [vmem:[#allocation59_spill] sm:$0xff] %v7185_v37 }
 0x3e5   : > { %3018 = vrot.lane.b32.xlu1 %v7165_v55, %s4811_s7  ;;  %v7191_v63 = vpop.permute.xlu0 %2780 }
 0x3e6   : > { %8688 = vst [vmem:[#allocation165_spill] sm:$0xff] %v7191_v63 }
 0x3e7   : > { %3016 = vrot.lane.b32.xlu0 %v7171_v19, %s4811_s7 }
 0x3e9   : > { %3022 = vrot.lane.b32.xlu1 %v7177_v32, %s4811_s7 }
 0x3eb   : > { %3020 = vrot.lane.b32.xlu0 %v7183_v50, %s4811_s7  ;;  %v7197_v40 = vpop.permute.xlu1 %2786 }
 0x3ec   : > { %8690 = vst [vmem:[#allocation128_spill] sm:$0xff] %v7197_v40 }
 0x3ed   : > { %3026 = vrot.lane.b32.xlu1 %v7189_v29, %s4811_s7  ;;  %v7203_v37 = vpop.permute.xlu0 %2784 }
 0x3ee   : > { %8692 = vst [vmem:[#allocation189_spill] sm:$0xff] %v7203_v37  ;;  %v2436_v37 = vld [vmem:[#allocation3 + $0x158] sm:$0xff] }
 0x3ef   : > { %3024 = vrot.lane.b32.xlu0 %v7195_v3, %s4811_s7  ;;  %v2435_v3 = vld [vmem:[#allocation3 + $0x150] sm:$0xff] }
 0x3f1   : > { %3030 = vrot.lane.b32.xlu1 %v7201_v53, %s4811_s7 }
 0x3f3   : > { %v7209_v63 = vpop.permute.xlu1 %2790  ;;  %3028 = vrot.lane.b32.xlu0 %v7207_v7, %s4811_s7  ;;  %v2438_v7 = vld [vmem:[#allocation3 + $0x170] sm:$0xff] }
 0x3f4   : > { %8694 = vst [vmem:[#allocation39_spill] sm:$0xff] %v7209_v63 }
 0x3f5   : > { %3034 = vrot.lane.b32.xlu1 %v2434_v22, %s4811_s7  ;;  %v7214_v40 = vpop.permute.xlu0 %2788 }
 0x3f6   : > { %8695 = vst [vmem:[#allocation191_spill] sm:$0xff] %v7214_v40  ;;  %v2437_v40 = vld [vmem:[#allocation3 + $0x168] sm:$0xff] }
 0x3f7   : > { %v7216_v38 = vpop.permute.xlu1 %2858  ;;  %3032 = vrot.lane.b32.xlu0 %v2433_v25, %s4811_s7 }
 0x3f9   : > { %3038 = vrot.lane.b32.xlu1 %v2436_v37, %s4811_s7  ;;  %v7220_v53 = vpop.permute.xlu0 %2856 }
 0x3fb   : > { %v7222_v63 = vpop.permute.xlu1 %2862  ;;  %3036 = vrot.lane.b32.xlu0 %v2435_v3, %s4811_s7 }
 0x3fd   : > { %3042 = vrot.lane.b32.xlu1 %v2438_v7, %s4811_s7  ;;  %v7226_v22 = vpop.permute.xlu0 %2860  ;;  %v3980_v7 = vld [vmem:[%s8171_s4 + $0x20] sm:$0xf] }
 0x3fe   : > { %4678 = vmatprep.subr.msk.mxu1 %vm2059_vm2, %v3980_v7 }
 0x3ff   : > { %v7228_v29 = vpop.permute.xlu1 %2866  ;;  %3040 = vrot.lane.b32.xlu0 %v2437_v40, %s4811_s7  ;;  %4679 = vmatpush3.msk.msra.mxu1 %vm2059_vm2, %v3980_v7  ;;  %v3977_v7 = vld [vmem:[%s8171_s4 + $0x8] sm:$0xff] }
 0x401   : > { %3114 = vrot.lane.b32.xlu1 %v6858_v44, %s4812_s8  ;;  %v7233_v25 = vpop.permute.xlu0 %2864  ;;  %v3979_v44 = vld [vmem:[%s8171_s4 + $0x18] sm:$0xff] }
 0x402   : > { %4680 = vmatprep.subr.mxu1 %v3979_v44 }
 0x403   : > { %v7235_v37 = vpop.permute.xlu1 %2870  ;;  %3112 = vrot.lane.b32.xlu0 %v6864_v24, %s4812_s8  ;;  %4681 = vmatpush3.msra.mxu1 %v3979_v44  ;;  %v3978_v24 = vld [vmem:[%s8171_s4 + $0x10] sm:$0xff] }
 0x404   : > { %4682 = vmatprep.subr.mxu1 %v3978_v24 }
 0x405   : > { %3242 = vrot.lane.b32.xlu1 %v6977_v8, %s4813_s9  ;;  %v7245_v3 = vpop.permute.xlu0 %2868  ;;  %4683 = vmatpush3.msra.mxu1 %v3978_v24 }
 0x406   : > { %4684 = vmatprep.subr.mxu1 %v3977_v7 }
 0x407   : > { %v7251_v40 = vpop.permute.xlu1 %2874  ;;  %3240 = vrot.lane.b32.xlu0 %v6981_v36, %s4813_s9  ;;  %4685 = vmatpush3.msra.mxu1 %v3977_v7  ;;  %v3976_v36 = vld [vmem:[%s8171_s4] sm:$0xff] }
 0x408   : > { %8696 = vst [vmem:[#allocation61_spill] sm:$0xff] %v7251_v40  ;;  %4686 = vmatprep.subr.mxu1 %v3976_v36 }
 0x409   : > { %3370 = vrot.lane.b32.xlu1 %v7091_v2, %s4814_s10  ;;  %v7260_v8 = vpop.permute.xlu0 %2872  ;;  %4687 = vmatpush3.msra.mxu1 %v3976_v36 }
 0x40b   : > { %v7265_v40 = vpop.permute.xlu1 %2878  ;;  %3368 = vrot.lane.b32.xlu0 %v7095_v60, %s4814_s10 }
 0x40c   : > { %8697 = vst [vmem:[#allocation43_spill] sm:$0xff] %v7265_v40 }
 0x40d   : > { %3116 = vrot.lane.b32.xlu1 %v6876_v26, %s4812_s8  ;;  %v7274_v44 = vpop.permute.xlu0 %2876 }
 0x40e   : > { %8698 = vst [vmem:[#allocation86_spill] sm:$0xff] %v7274_v44 }
 0x40f   : > { %v7276_v24 = vpop.permute.xlu1 %2882  ;;  %3496 = vrot.lane.b32.xlu0 %v6876_v26, %s4815_s11 }
 0x410   : > { %8699 = vst [vmem:[#allocation63_spill] sm:$0xff] %v7276_v24 }
 0x411   : > { %3624 = vrot.lane.b32.xlu1 %v6989_v11, %s4816_s22  ;;  %v7282_v7 = vpop.permute.xlu0 %2880 }
 0x413   : > { %v7284_v40 = vpop.permute.xlu1 %2886  ;;  %3498 = vrot.lane.b32.xlu0 %v6870_v34, %s4815_s11 }
 0x414   : > { %8700 = vst [vmem:[#allocation107_spill] sm:$0xff] %v7284_v40 }
 0x415   : > { %3244 = vrot.lane.b32.xlu1 %v6989_v11, %s4813_s9  ;;  %v7290_v44 = vpop.permute.xlu0 %2884 }
 0x416   : > { %8701 = vst [vmem:[#allocation92_spill] sm:$0xff] %v7290_v44 }
 0x417   : > { %v7292_v36 = vpop.permute.xlu1 %2890  ;;  %3118 = vrot.lane.b32.xlu0 %v6870_v34, %s4812_s8 }
 0x418   : > { %8702 = vst [vmem:[#allocation166_spill] sm:$0xff] %v7292_v36 }
 0x419   : > { %3246 = vrot.lane.b32.xlu1 %v6985_v61, %s4813_s9  ;;  %v7298_v26 = vpop.permute.xlu0 %2888 }
 0x41a   : > { %8703 = vst [vmem:[#allocation110_spill] sm:$0xff] %v7298_v26 }
 0x41b   : > { %v7300_v24 = vpop.permute.xlu1 %2894  ;;  %3626 = vrot.lane.b32.xlu0 %v6985_v61, %s4816_s22 }
 0x41c   : > { %8704 = vst [vmem:[#allocation129_spill] sm:$0xff] %v7300_v24 }
 0x41d   : > { %3374 = vrot.lane.b32.xlu1 %v7101_v15, %s4814_s10  ;;  %v7306_v11 = vpop.permute.xlu0 %2892 }
 0x41e   : > { %8705 = vst [vmem:[#allocation169_spill] sm:$0xff] %v7306_v11 }
 0x41f   : > { %v7308_v40 = vpop.permute.xlu1 %2898  ;;  %3372 = vrot.lane.b32.xlu0 %v7107_v42, %s4814_s10 }
 0x420   : > { %8706 = vst [vmem:[#allocation190_spill] sm:$0xff] %v7308_v40 }
 0x421   : > { %3120 = vrot.lane.b32.xlu1 %v6888_v27, %s4812_s8  ;;  %v7314_v34 = vpop.permute.xlu0 %2896 }
 0x422   : > { %8707 = vst [vmem:[#allocation132_spill] sm:$0xff] %v7314_v34 }
 0x423   : > { %v7316_v36 = vpop.permute.xlu1 %2902  ;;  %3500 = vrot.lane.b32.xlu0 %v6888_v27, %s4815_s11 }
 0x424   : > { %8708 = vst [vmem:[#allocation41_spill] sm:$0xff] %v7316_v36 }
 0x425   : > { %3628 = vrot.lane.b32.xlu1 %v6997_v23, %s4816_s22  ;;  %v7322_v61 = vpop.permute.xlu0 %2900 }
 0x426   : > { %8709 = vst [vmem:[#allocation193_spill] sm:$0xff] %v7322_v61 }
 0x427   : > { %v7324_v24 = vpop.permute.xlu1 %2906  ;;  %3502 = vrot.lane.b32.xlu0 %v6882_v1, %s4815_s11 }
 0x428   : > { %8710 = vst [vmem:[#allocation65_spill] sm:$0xff] %v7324_v24 }
 0x429   : > { %3248 = vrot.lane.b32.xlu1 %v6997_v23, %s4813_s9  ;;  %v7330_v40 = vpop.permute.xlu0 %2904 }
 0x42a   : > { %8711 = vst [vmem:[#allocation49_spill] sm:$0xff] %v7330_v40 }
 0x42b   : > { %v7332_v34 = vpop.permute.xlu1 %2910  ;;  %3122 = vrot.lane.b32.xlu0 %v6882_v1, %s4812_s8 }
 0x42c   : > { %8712 = vst [vmem:[#allocation90_spill] sm:$0xff] %v7332_v34 }
 0x42d   : > { %3250 = vrot.lane.b32.xlu1 %v6993_v12, %s4813_s9  ;;  %v7338_v27 = vpop.permute.xlu0 %2908 }
 0x42e   : > { %8713 = vst [vmem:[#allocation67_spill] sm:$0xff] %v7338_v27 }
 0x42f   : > { %v7340_v36 = vpop.permute.xlu1 %2914  ;;  %3630 = vrot.lane.b32.xlu0 %v6993_v12, %s4816_s22 }
 0x430   : > { %8714 = vst [vmem:[#allocation109_spill] sm:$0xff] %v7340_v36 }
 0x431   : > { %3378 = vrot.lane.b32.xlu1 %v7111_v30, %s4814_s10  ;;  %v7346_v23 = vpop.permute.xlu0 %2912 }
 0x432   : > { %8715 = vst [vmem:[#allocation96_spill] sm:$0xff] %v7346_v23 }
 0x433   : > { %v7348_v24 = vpop.permute.xlu1 %2918  ;;  %3376 = vrot.lane.b32.xlu0 %v7117_v59, %s4814_s10 }
 0x434   : > { %8716 = vst [vmem:[#allocation168_spill] sm:$0xff] %v7348_v24 }
 0x435   : > { %3124 = vrot.lane.b32.xlu1 %v6900_v46, %s4812_s8  ;;  %v7354_v1 = vpop.permute.xlu0 %2916 }
 0x436   : > { %8717 = vst [vmem:[#allocation112_spill] sm:$0xff] %v7354_v1 }
 0x437   : > { %v7356_v34 = vpop.permute.xlu1 %2986  ;;  %3504 = vrot.lane.b32.xlu0 %v6900_v46, %s4815_s11 }
 0x439   : > { %3632 = vrot.lane.b32.xlu1 %v7005_v45, %s4816_s22  ;;  %v7362_v12 = vpop.permute.xlu0 %2984 }
 0x43b   : > { %v7364_v36 = vpop.permute.xlu1 %2990  ;;  %3506 = vrot.lane.b32.xlu0 %v6894_v14, %s4815_s11 }
 0x43d   : > { %3252 = vrot.lane.b32.xlu1 %v7005_v45, %s4813_s9  ;;  %v7370_v24 = vpop.permute.xlu0 %2988 }
 0x43f   : > { %v7372_v1 = vpop.permute.xlu1 %2994  ;;  %3126 = vrot.lane.b32.xlu0 %v6894_v14, %s4812_s8 }
 0x441   : > { %3254 = vrot.lane.b32.xlu1 %v7001_v16, %s4813_s9  ;;  %v7378_v46 = vpop.permute.xlu0 %2992 }
 0x443   : > { %v7380_v23 = vpop.permute.xlu1 %2998  ;;  %3634 = vrot.lane.b32.xlu0 %v7001_v16, %s4816_s22 }
 0x445   : > { %3382 = vrot.lane.b32.xlu1 %v7123_v13, %s4814_s10  ;;  %v7386_v45 = vpop.permute.xlu0 %2996 }
 0x447   : > { %v7388_v27 = vpop.permute.xlu1 %3002  ;;  %3380 = vrot.lane.b32.xlu0 %v7127_v51, %s4814_s10 }
 0x449   : > { %3128 = vrot.lane.b32.xlu1 %v6912_v21, %s4812_s8  ;;  %v7394_v14 = vpop.permute.xlu0 %3000 }
 0x44b   : > { %v7396_v40 = vpop.permute.xlu1 %3006  ;;  %3508 = vrot.lane.b32.xlu0 %v6912_v21, %s4815_s11 }
 0x44d   : > { %3636 = vrot.lane.b32.xlu1 %v7013_v62, %s4816_s22  ;;  %v7402_v16 = vpop.permute.xlu0 %3004 }
 0x44f   : > { %v7404_v61 = vpop.permute.xlu1 %3010  ;;  %3510 = vrot.lane.b32.xlu0 %v6906_v47, %s4815_s11 }
 0x450   : > { %8718 = vst [vmem:[#allocation131_spill] sm:$0xff] %v7404_v61 }
 0x451   : > { %3256 = vrot.lane.b32.xlu1 %v7013_v62, %s4813_s9  ;;  %v7410_v11 = vpop.permute.xlu0 %3008 }
 0x453   : > { %v7412_v26 = vpop.permute.xlu1 %3014  ;;  %3130 = vrot.lane.b32.xlu0 %v6906_v47, %s4812_s8 }
 0x454   : > { %8719 = vst [vmem:[#allocation171_spill] sm:$0xff] %v7412_v26  ;;  %v2640_v26 = vld [vmem:[#allocation3 + $0x91] sm:$0xff] }
 0x455   : > { %3258 = vrot.lane.b32.xlu1 %v7009_v5, %s4813_s9  ;;  %v7418_v21 = vpop.permute.xlu0 %3012 }
 0x456   : > { %8720 = vst [vmem:[#allocation192_spill] sm:$0xff] %v7418_v21 }
 0x457   : > { %v7420_v44 = vpop.permute.xlu1 %3018  ;;  %3638 = vrot.lane.b32.xlu0 %v7009_v5, %s4816_s22 }
 0x458   : > { %8721 = vst [vmem:[#allocation134_spill] sm:$0xff] %v7420_v44 }
 0x459   : > { %3386 = vrot.lane.b32.xlu1 %v7133_v6, %s4814_s10  ;;  %v7426_v62 = vpop.permute.xlu0 %3016 }
 0x45a   : > { %8722 = vst [vmem:[#allocation46_spill] sm:$0xff] %v7426_v62  ;;  %v2641_v62 = vld [vmem:[#allocation3 + $0x99] sm:$0xff] }
 0x45b   : > { %v7428_v61 = vpop.permute.xlu1 %3022  ;;  %3384 = vrot.lane.b32.xlu0 %v7139_v0, %s4814_s10 }
 0x45c   : > { %8723 = vst [vmem:[#allocation195_spill] sm:$0xff] %v7428_v61 }
 0x45d   : > { %3132 = vrot.lane.b32.xlu1 %v6921_v31, %s4812_s8  ;;  %v7434_v47 = vpop.permute.xlu0 %3020 }
 0x45e   : > { %8724 = vst [vmem:[#allocation69_spill] sm:$0xff] %v7434_v47 }
 0x45f   : > { %v7436_v44 = vpop.permute.xlu1 %3026  ;;  %3512 = vrot.lane.b32.xlu0 %v2640_v26, %s4815_s11 }
 0x460   : > { %8725 = vst [vmem:[#allocation54_spill] sm:$0xff] %v7436_v44 }
 0x461   : > { %3640 = vrot.lane.b32.xlu1 %v7021_v43, %s4816_s22  ;;  %v7441_v5 = vpop.permute.xlu0 %3024 }
 0x462   : > { %8726 = vst [vmem:[#allocation94_spill] sm:$0xff] %v7441_v5 }
 0x463   : > { %v7443_v61 = vpop.permute.xlu1 %3030  ;;  %3514 = vrot.lane.b32.xlu0 %v2641_v62, %s4815_s11 }
 0x464   : > { %8727 = vst [vmem:[#allocation71_spill] sm:$0xff] %v7443_v61 }
 0x465   : > { %3260 = vrot.lane.b32.xlu1 %v7021_v43, %s4813_s9  ;;  %v7448_v31 = vpop.permute.xlu0 %3028 }
 0x466   : > { %8728 = vst [vmem:[#allocation111_spill] sm:$0xff] %v7448_v31 }
 0x467   : > { %v7450_v47 = vpop.permute.xlu1 %3034  ;;  %3134 = vrot.lane.b32.xlu0 %v2641_v62, %s4812_s8  ;;  %v2547_v62 = vld [vmem:[#allocation3 + $0xa9] sm:$0xff] }
 0x468   : > { %8729 = vst [vmem:[#allocation101_spill] sm:$0xff] %v7450_v47 }
 0x469   : > { %3262 = vrot.lane.b32.xlu1 %v7017_v49, %s4813_s9  ;;  %v7455_v26 = vpop.permute.xlu0 %3032 }
 0x46a   : > { %8730 = vst [vmem:[#allocation170_spill] sm:$0xff] %v7455_v26 }
 0x46b   : > { %v7457_v44 = vpop.permute.xlu1 %3038  ;;  %3642 = vrot.lane.b32.xlu0 %v7017_v49, %s4816_s22 }
 0x46c   : > { %8731 = vst [vmem:[#allocation114_spill] sm:$0xff] %v7457_v44 }
 0x46d   : > { %3390 = vrot.lane.b32.xlu1 %v7143_v57, %s4814_s10  ;;  %v7463_v43 = vpop.permute.xlu0 %3036  ;;  %v2643_v57 = vld [vmem:[#allocation3 + $0xb1] sm:$0xff] }
 0x46e   : > { %8732 = vst [vmem:[#allocation133_spill] sm:$0xff] %v7463_v43 }
 0x46f   : > { %v7465_v61 = vpop.permute.xlu1 %3042  ;;  %3388 = vrot.lane.b32.xlu0 %v7149_v17, %s4814_s10 }
 0x470   : > { %8733 = vst [vmem:[#allocation173_spill] sm:$0xff] %v7465_v61  ;;  %v2407_v61 = vld [vmem:[#allocation3] sm:$0xff] }
 0x471   : > { %3136 = vrot.lane.b32.xlu1 %v2547_v62, %s4812_s8  ;;  %v7470_v47 = vpop.permute.xlu0 %3040 }
 0x472   : > { %8734 = vst [vmem:[#allocation194_spill] sm:$0xff] %v7470_v47  ;;  %v3720_v47 = vsel %vm285_vm0, %v2407_v61, %v7043_v33 }
 0x473   : > { %v3115_v26 = vpop.permute.xlu1 %3114  ;;  %3516 = vrot.lane.b32.xlu0 %v2547_v62, %s4815_s11  ;;  %v3752_v62 = vsel %vm1719_vm3, %v3720_v47, %v7220_v53 }
 0x474   : > { %v3784_v21 = vsel %vm1752_vm4, %v3752_v62, %v7362_v12  ;;  %v2408_v12 = vld [vmem:[#allocation3 + $0x8] sm:$0xff] }
 0x475   : > { %3644 = vrot.lane.b32.xlu1 %v7029_v54, %s4816_s22  ;;  %v3113_v49 = vpop.permute.xlu0 %3112 }
 0x476   : > { %v3816_v17 = vsel %vm1785_vm5, %v3784_v21, %v3113_v49  ;;  %v2549_v21 = vld [vmem:[#allocation3 + $0xc1] sm:$0xff] }
 0x477   : > { %v3243_v44 = vpop.permute.xlu1 %3242  ;;  %3518 = vrot.lane.b32.xlu0 %v2643_v57, %s4815_s11 }
 0x479   : > { %3264 = vrot.lane.b32.xlu1 %v7029_v54, %s4813_s9  ;;  %v3241_v43 = vpop.permute.xlu0 %3240 }
 0x47b   : > { %v3371_v31 = vpop.permute.xlu1 %3370  ;;  %3138 = vrot.lane.b32.xlu0 %v2643_v57, %s4812_s8  ;;  %v3848_v57 = vsel %vm1818_vm6, %v3816_v17, %v3241_v43  ;;  %v3721_v17 = vsel %vm285_vm0, %v2408_v12, %v7039_v58 }
 0x47d   : > { %3266 = vrot.lane.b32.xlu1 %v7025_v18, %s4813_s9  ;;  %v3369_v5 = vpop.permute.xlu0 %3368 }
 0x47e   : > { %v3880_v33 = vsel %vm1851_vm7, %v3848_v57, %v3369_v5  ;;  %v3753_v5 = vsel %vm1719_vm3, %v3721_v17, %v7216_v38  ;;  %v2645_v57 = vld [vmem:[#allocation3 + $0xc9] sm:$0xff] }
 0x47f   : > { %v3117_v54 = vpop.permute.xlu1 %3116  ;;  %3646 = vrot.lane.b32.xlu0 %v7025_v18, %s4816_s22 }
 0x481   : > { %3394 = vrot.lane.b32.xlu1 %v7155_v39, %s4814_s10  ;;  %v3497_v53 = vpop.permute.xlu0 %3496 }
 0x482   : > { %v3912_v61 = vsel %vm1884_vm8, %v3880_v33, %v3497_v53 }
 0x483   : > { %v3625_v47 = vpop.permute.xlu1 %3624  ;;  %3392 = vrot.lane.b32.xlu0 %v7159_v41, %s4814_s10  ;;  %v3785_v41 = vsel %vm1752_vm4, %v3753_v5, %v7356_v34 }
 0x484   : > { %v3944_v49 = vsel %vm1917_vm9, %v3912_v61, %v3625_v47  ;;  %v3817_v62 = vsel %vm1785_vm5, %v3785_v41, %v3115_v26  ;;  %v2678_v41 = vld [vmem:[#allocation3 + $0xda] sm:$0xff] }
 0x485   : > { %3140 = vrot.lane.b32.xlu1 %v2549_v21, %s4812_s8  ;;  %4688 = vmatprep.mubr.msk.f32.mxu1 %vm1962_vm10, %v3944_v49  ;;  %v3499_v18 = vpop.permute.xlu0 %3498  ;;  %v3849_v33 = vsel %vm1818_vm6, %v3817_v62, %v3243_v44  ;;  %v3722_v44 = vsel %vm285_vm0, %v7085_v9, %v7050_v48 }
 0x486   : > { %v3881_v58 = vsel %vm1851_vm7, %v3849_v33, %v3371_v31  ;;  %v3754_v31 = vsel %vm1719_vm3, %v3722_v44, %v7226_v22 }
 0x487   : > { %v3245_v39 = vpop.permute.xlu1 %3244  ;;  %3520 = vrot.lane.b32.xlu0 %v2549_v21, %s4815_s11  ;;  %v3913_v61 = vsel %vm1884_vm8, %v3881_v58, %v3499_v18 }
 0x489   : > { %3648 = vrot.lane.b32.xlu1 %v7037_v10, %s4816_s22  ;;  %v3119_v43 = vpop.permute.xlu0 %3118 }
 0x48b   : > { %v3247_v53 = vpop.permute.xlu1 %3246  ;;  %3522 = vrot.lane.b32.xlu0 %v2645_v57, %s4815_s11 }
 0x48d   : > { %3268 = vrot.lane.b32.xlu1 %v7037_v10, %s4813_s9  ;;  %v3627_v38 = vpop.permute.xlu0 %3626  ;;  %v3786_v10 = vsel %vm1752_vm4, %v3754_v31, %v7370_v24 }
 0x48e   : > { %v3945_v34 = vsel %vm1917_vm9, %v3913_v61, %v3627_v38  ;;  %v3818_v12 = vsel %vm1785_vm5, %v3786_v10, %v3117_v54  ;;  %v2551_v54 = vld [vmem:[#allocation3 + $0xd9] sm:$0xff]  ;;  %v2584_v61 = vld [vmem:[#allocation3 + $0xe2] sm:$0xff] }
 0x48f   : > { %v3375_v47 = vpop.permute.xlu1 %3374  ;;  %3142 = vrot.lane.b32.xlu0 %v2645_v57, %s4812_s8  ;;  %4689 = vmatmul.mubr.msk.f32.vlgmr.msra.gmra.mxu1 %vm1962_vm10, %v3945_v34  ;;  %v3850_v49 = vsel %vm1818_vm6, %v3818_v12, %v3245_v39  ;;  %v2553_v12 = vld [vmem:[#allocation3 + $0xf1] sm:$0xff] }
 0x491   : > { %3270 = vrot.lane.b32.xlu1 %v7033_v20, %s4813_s9  ;;  %v3373_v26 = vpop.permute.xlu0 %3372 }
 0x492   : > { %v3882_v48 = vsel %vm1851_vm7, %v3850_v49, %v3373_v26 }
 0x493   : > { %v3121_v21 = vpop.permute.xlu1 %3120  ;;  %3650 = vrot.lane.b32.xlu0 %v7033_v20, %s4816_s22  ;;  %v3723_v20 = vsel %vm285_vm0, %v7079_v28, %v7047_v4  ;;  %v2647_v28 = vld [vmem:[#allocation3 + $0xe1] sm:$0xff] }
 0x495   : > { %3398 = vrot.lane.b32.xlu1 %v7165_v55, %s4814_s10  ;;  %v3501_v9 = vpop.permute.xlu0 %3500  ;;  %v3755_v55 = vsel %vm1719_vm3, %v3723_v20, %v7222_v63 }
 0x496   : > { %v3914_v22 = vsel %vm1884_vm8, %v3882_v48, %v3501_v9  ;;  %v3787_v39 = vsel %vm1752_vm4, %v3755_v55, %v7364_v36  ;;  %v3726_v55 = vsel %vm285_vm0, %v7107_v42, %v7062_v56  ;;  %v8735_v56 = vld [vmem:[#allocation88_spill] sm:$0xff] }
 0x497   : > { %v3629_v18 = vpop.permute.xlu1 %3628  ;;  %3396 = vrot.lane.b32.xlu0 %v7171_v19, %s4814_s10  ;;  %v3819_v19 = vsel %vm1785_vm5, %v3787_v39, %v3119_v43  ;;  %v2586_v39 = vld [vmem:[#allocation3 + $0xfa] sm:$0xff] }
 0x498   : > { %v3946_v24 = vsel %vm1917_vm9, %v3914_v22, %v3629_v18  ;;  %v3851_v62 = vsel %vm1818_vm6, %v3819_v19, %v3247_v53  ;;  %v3724_v53 = vsel %vm285_vm0, %v7095_v60, %v7056_v52  ;;  %v2680_v22 = vld [vmem:[#allocation3 + $0xf2] sm:$0xff] }
 0x499   : > { %3144 = vrot.lane.b32.xlu1 %v2551_v54, %s4812_s8  ;;  %4691 = vmatprep.mubr.msk.f32.mxu1 %vm1962_vm10, %v3946_v24  ;;  %v3503_v17 = vpop.permute.xlu0 %3502  ;;  %v3883_v63 = vsel %vm1851_vm7, %v3851_v62, %v3375_v47  ;;  %v3756_v38 = vsel %vm1719_vm3, %v3724_v53, %v7233_v25 }
 0x49a   : > { %v3915_v33 = vsel %vm1884_vm8, %v3883_v63, %v3503_v17  ;;  %v3788_v47 = vsel %vm1752_vm4, %v3756_v38, %v7378_v46 }
 0x49b   : > { %v3249_v5 = vpop.permute.xlu1 %3248  ;;  %3524 = vrot.lane.b32.xlu0 %v2551_v54, %s4815_s11  ;;  %v3820_v44 = vsel %vm1785_vm5, %v3788_v47, %v3121_v21  ;;  %v3725_v21 = vsel %vm285_vm0, %v7091_v2, %v7053_v35  ;;  %v2649_v2 = vld [vmem:[#allocation3 + $0xf9] sm:$0xff] }
 0x49c   : > { %v3852_v26 = vsel %vm1818_vm6, %v3820_v44, %v3249_v5  ;;  %v3758_v5 = vsel %vm1719_vm3, %v3726_v55, %v7245_v3  ;;  %v2682_v44 = vld [vmem:[#allocation3 + $0x10a] sm:$0xff] }
 0x49d   : > { %3652 = vrot.lane.b32.xlu1 %v2678_v41, %s4816_s22  ;;  %v3123_v4 = vpop.permute.xlu0 %3122 }
 0x49f   : > { %v3251_v57 = vpop.permute.xlu1 %3250  ;;  %3526 = vrot.lane.b32.xlu0 %v2647_v28, %s4815_s11 }
 0x4a1   : > { %3272 = vrot.lane.b32.xlu1 %v2678_v41, %s4813_s9  ;;  %v3631_v36 = vpop.permute.xlu0 %3630  ;;  %v3790_v41 = vsel %vm1752_vm4, %v3758_v5, %v7386_v45 }
 0x4a2   : > { %v3947_v58 = vsel %vm1917_vm9, %v3915_v33, %v3631_v36  ;;  %v8736_v33 = vld [vmem:[#allocation108_spill] sm:$0xff] }
 0x4a3   : > { %v3379_v43 = vpop.permute.xlu1 %3378  ;;  %3146 = vrot.lane.b32.xlu0 %v2647_v28, %s4812_s8  ;;  %4692 = vmatmul.mubr.msk.f32.gmra.mxu1 %vm1962_vm10, %v3947_v58  ;;  %v2555_v36 = vld [vmem:[#allocation3 + $0x109] sm:$0xff]  ;;  %v8737_v58 = vld [vmem:[#allocation38_spill] sm:$0xff] }
 0x4a5   : > { %3274 = vrot.lane.b32.xlu1 %v2584_v61, %s4813_s9  ;;  %v3377_v34 = vpop.permute.xlu0 %3376 }
 0x4a6   : > { %v3884_v10 = vsel %vm1851_vm7, %v3852_v26, %v3377_v34 }
 0x4a7   : > { %v3125_v31 = vpop.permute.xlu1 %3124  ;;  %3654 = vrot.lane.b32.xlu0 %v2584_v61, %s4816_s22 }
 0x4a9   : > { %3402 = vrot.lane.b32.xlu1 %v7177_v32, %s4814_s10  ;;  %v3505_v52 = vpop.permute.xlu0 %3504  ;;  %v3757_v32 = vsel %vm1719_vm3, %v3725_v21, %v7228_v29  ;;  %v2588_v21 = vld [vmem:[#allocation3 + $0x112] sm:$0xff] }
 0x4aa   : > { %v3916_v60 = vsel %vm1884_vm8, %v3884_v10, %v3505_v52  ;;  %v3789_v48 = vsel %vm1752_vm4, %v3757_v32, %v7372_v1 }
 0x4ab   : > { %v3633_v25 = vpop.permute.xlu1 %3632  ;;  %3400 = vrot.lane.b32.xlu0 %v7183_v50, %s4814_s10  ;;  %v3821_v50 = vsel %vm1785_vm5, %v3789_v48, %v3123_v4  ;;  %v3822_v4 = vsel %vm1785_vm5, %v3790_v41, %v3125_v31  ;;  %v2651_v31 = vld [vmem:[#allocation3 + $0x111] sm:$0xff]  ;;  %v2684_v41 = vld [vmem:[#allocation3 + $0x122] sm:$0xff] }
 0x4ac   : > { %v3948_v46 = vsel %vm1917_vm9, %v3916_v60, %v3633_v25  ;;  %v3853_v18 = vsel %vm1818_vm6, %v3821_v50, %v3251_v57 }
 0x4ad   : > { %3148 = vrot.lane.b32.xlu1 %v2553_v12, %s4812_s8  ;;  %v3507_v49 = vpop.permute.xlu0 %3506  ;;  %4694 = vmatprep.mubr.msk.f32.mxu1 %vm1962_vm10, %v3948_v46  ;;  %v3885_v29 = vsel %vm1851_vm7, %v3853_v18, %v3379_v43  ;;  %v3727_v43 = vsel %vm285_vm0, %v7101_v15, %v8737_v58  ;;  %v8738_v46 = vld [vmem:[#allocation95_spill] sm:$0xff] }
 0x4ae   : > { %v3917_v54 = vsel %vm1884_vm8, %v3885_v29, %v3507_v49  ;;  %v3759_v61 = vsel %vm1719_vm3, %v3727_v43, %v7235_v37  ;;  %v2557_v29 = vld [vmem:[#allocation3 + $0x121] sm:$0xff] }
 0x4af   : > { %v3253_v9 = vpop.permute.xlu1 %3252  ;;  %3528 = vrot.lane.b32.xlu0 %v2553_v12, %s4815_s11  ;;  %v3791_v38 = vsel %vm1752_vm4, %v3759_v61, %v7380_v23  ;;  %v3728_v12 = vsel %vm285_vm0, %v7117_v59, %v8738_v46  ;;  %v8739_v59 = vld [vmem:[#allocation167_spill] sm:$0xff] }
 0x4b0   : > { %v3854_v62 = vsel %vm1818_vm6, %v3822_v4, %v3253_v9  ;;  %v3760_v49 = vsel %vm1719_vm3, %v3728_v12, %v7260_v8  ;;  %v2653_v4 = vld [vmem:[#allocation3 + $0x129] sm:$0xff] }
 0x4b1   : > { %3656 = vrot.lane.b32.xlu1 %v2680_v22, %s4816_s22  ;;  %v3127_v35 = vpop.permute.xlu0 %3126  ;;  %v3792_v48 = vsel %vm1752_vm4, %v3760_v49, %v7394_v14  ;;  %v2686_v49 = vld [vmem:[#allocation3 + $0x13a] sm:$0xff] }
 0x4b2   : > { %v3823_v47 = vsel %vm1785_vm5, %v3791_v38, %v3127_v35 }
 0x4b3   : > { %v3255_v24 = vpop.permute.xlu1 %3254  ;;  %3530 = vrot.lane.b32.xlu0 %v2649_v2, %s4815_s11 }
 0x4b4   : > { %v3855_v26 = vsel %vm1818_vm6, %v3823_v47, %v3255_v24  ;;  %v8740_v24 = vld [vmem:[#allocation130_spill] sm:$0xff]  ;;  %v2623_v47 = vld [vmem:[#allocation3 + $0x140] sm:$0xff] }
 0x4b5   : > { %3276 = vrot.lane.b32.xlu1 %v2680_v22, %s4813_s9  ;;  %v3635_v1 = vpop.permute.xlu0 %3634 }
 0x4b6   : > { %v3949_v20 = vsel %vm1917_vm9, %v3917_v54, %v3635_v1  ;;  %v8741_v54 = vld [vmem:[#allocation40_spill] sm:$0xff] }
 0x4b7   : > { %v3383_v17 = vpop.permute.xlu1 %3382  ;;  %3150 = vrot.lane.b32.xlu0 %v2649_v2, %s4812_s8  ;;  %4695 = vmatmul.mubr.msk.f32.gmra.mxu1 %vm1962_vm10, %v3949_v20  ;;  %v3729_v1 = vsel %vm285_vm0, %v7111_v30, %v8741_v54 }
 0x4b8   : > { %v3887_v37 = vsel %vm1851_vm7, %v3855_v26, %v3383_v17  ;;  %v8742_v17 = vld [vmem:[#allocation61_spill] sm:$0xff] }
 0x4b9   : > { %3278 = vrot.lane.b32.xlu1 %v2586_v39, %s4813_s9  ;;  %v3381_v19 = vpop.permute.xlu0 %3380  ;;  %v3761_v55 = vsel %vm1719_vm3, %v3729_v1, %v8742_v17  ;;  %v2625_v17 = vld [vmem:[#allocation3 + $0x158] sm:$0xff] }
 0x4ba   : > { %v3886_v57 = vsel %vm1851_vm7, %v3854_v62, %v3381_v19 }
 0x4bb   : > { %v3129_v28 = vpop.permute.xlu1 %3128  ;;  %3658 = vrot.lane.b32.xlu0 %v2586_v39, %s4816_s22  ;;  %v3793_v39 = vsel %vm1752_vm4, %v3761_v55, %v7388_v27 }
 0x4bc   : > { %v3824_v9 = vsel %vm1785_vm5, %v3792_v48, %v3129_v28 }
 0x4bd   : > { %3406 = vrot.lane.b32.xlu1 %v8735_v56, %s4814_s10  ;;  %v3509_v42 = vpop.permute.xlu0 %3508 }
 0x4be   : > { %v3918_v3 = vsel %vm1884_vm8, %v3886_v57, %v3509_v42 }
 0x4bf   : > { %v3637_v63 = vpop.permute.xlu1 %3636  ;;  %3404 = vrot.lane.b32.xlu0 %v8736_v33, %s4814_s10 }
 0x4c0   : > { %v3950_v45 = vsel %vm1917_vm9, %v3918_v3, %v3637_v63  ;;  %v8743_v63 = vld [vmem:[#allocation100_spill] sm:$0xff] }
 0x4c1   : > { %3152 = vrot.lane.b32.xlu1 %v2555_v36, %s4812_s8  ;;  %v3511_v53 = vpop.permute.xlu0 %3510  ;;  %4697 = vmatprep.mubr.msk.f32.mxu1 %vm1962_vm10, %v3950_v45  ;;  %v3730_v33 = vsel %vm285_vm0, %v7127_v51, %v8743_v63  ;;  %v2590_v45 = vld [vmem:[#allocation3 + $0x12a] sm:$0xff]  ;;  %v2657_v63 = vld [vmem:[#allocation3 + $0x159] sm:$0xff] }
 0x4c2   : > { %v3919_v52 = vsel %vm1884_vm8, %v3887_v37, %v3511_v53  ;;  %v8745_v37 = vld [vmem:[#allocation42_spill] sm:$0xff] }
 0x4c3   : > { %v3257_v34 = vpop.permute.xlu1 %3256  ;;  %3532 = vrot.lane.b32.xlu0 %v2555_v36, %s4815_s11  ;;  %v8744_v36 = vld [vmem:[#allocation86_spill] sm:$0xff] }
 0x4c4   : > { %v3856_v22 = vsel %vm1818_vm6, %v3824_v9, %v3257_v34  ;;  %v3762_v58 = vsel %vm1719_vm3, %v3730_v33, %v8744_v36 }
 0x4c5   : > { %3660 = vrot.lane.b32.xlu1 %v2682_v44, %s4816_s22  ;;  %v3131_v15 = vpop.permute.xlu0 %3130  ;;  %v3794_v53 = vsel %vm1752_vm4, %v3762_v58, %v7402_v16 }
 0x4c6   : > { %v3825_v19 = vsel %vm1785_vm5, %v3793_v39, %v3131_v15  ;;  %v2624_v39 = vld [vmem:[#allocation3 + $0x150] sm:$0xff] }
 0x4c7   : > { %v3259_v10 = vpop.permute.xlu1 %3258  ;;  %3534 = vrot.lane.b32.xlu0 %v2651_v31, %s4815_s11 }
 0x4c8   : > { %v3857_v28 = vsel %vm1818_vm6, %v3825_v19, %v3259_v10  ;;  %v2559_v10 = vld [vmem:[#allocation3 + $0x139] sm:$0xff]  ;;  %v2561_v19 = vld [vmem:[#allocation3 + $0x151] sm:$0xff] }
 0x4c9   : > { %3280 = vrot.lane.b32.xlu1 %v2682_v44, %s4813_s9  ;;  %v3639_v23 = vpop.permute.xlu0 %3638 }
 0x4ca   : > { %v3951_v60 = vsel %vm1917_vm9, %v3919_v52, %v3639_v23  ;;  %v3731_v52 = vsel %vm285_vm0, %v7123_v13, %v8745_v37 }
 0x4cb   : > { %v3387_v25 = vpop.permute.xlu1 %3386  ;;  %3154 = vrot.lane.b32.xlu0 %v2651_v31, %s4812_s8  ;;  %4698 = vmatmul.mubr.msk.f32.gmra.mxu1 %vm1962_vm10, %v3951_v60  ;;  %v2622_v31 = vld [vmem:[#allocation3 + $0x138] sm:$0xff]  ;;  %v8746_v60 = vld [vmem:[#allocation43_spill] sm:$0xff] }
 0x4cc   : > { %v3889_v57 = vsel %vm1851_vm7, %v3857_v28, %v3387_v25  ;;  %v3763_v25 = vsel %vm1719_vm3, %v3731_v52, %v8746_v60  ;;  %v8749_v28 = vld [vmem:[#allocation63_spill] sm:$0xff] }
 0x4cd   : > { %3282 = vrot.lane.b32.xlu1 %v2588_v21, %s4813_s9  ;;  %v3385_v32 = vpop.permute.xlu0 %3384  ;;  %v3795_v46 = vsel %vm1752_vm4, %v3763_v25, %v7396_v40 }
 0x4ce   : > { %v3888_v35 = vsel %vm1851_vm7, %v3856_v22, %v3385_v32  ;;  %v2655_v32 = vld [vmem:[#allocation3 + $0x141] sm:$0xff] }
 0x4cf   : > { %v3133_v50 = vpop.permute.xlu1 %3132  ;;  %3662 = vrot.lane.b32.xlu0 %v2588_v21, %s4816_s22 }
 0x4d0   : > { %v3826_v61 = vsel %vm1785_vm5, %v3794_v53, %v3133_v50 }
 0x4d1   : > { %3410 = vrot.lane.b32.xlu1 %v8739_v59, %s4814_s10  ;;  %v3513_v2 = vpop.permute.xlu0 %3512 }
 0x4d2   : > { %v3920_v8 = vsel %vm1884_vm8, %v3888_v35, %v3513_v2  ;;  %v8747_v2 = vld [vmem:[#allocation45_spill] sm:$0xff] }
 0x4d3   : > { %v3641_v18 = vpop.permute.xlu1 %3640  ;;  %3408 = vrot.lane.b32.xlu0 %v8740_v24, %s4814_s10 }
 0x4d4   : > { %v3952_v14 = vsel %vm1917_vm9, %v3920_v8, %v3641_v18  ;;  %v3732_v8 = vsel %vm285_vm0, %v7139_v0, %v8747_v2  ;;  %v2592_v18 = vld [vmem:[#allocation3 + $0x142] sm:$0xff] }
 0x4d5   : > { %3156 = vrot.lane.b32.xlu1 %v2557_v29, %s4812_s8  ;;  %v3515_v20 = vpop.permute.xlu0 %3514  ;;  %4700 = vmatprep.mubr.msk.f32.mxu1 %vm1962_vm10, %v3952_v14  ;;  %v3764_v24 = vsel %vm1719_vm3, %v3732_v8, %v7282_v7 }
 0x4d6   : > { %v3921_v56 = vsel %vm1884_vm8, %v3889_v57, %v3515_v20  ;;  %v8750_v57 = vld [vmem:[#allocation131_spill] sm:$0xff] }
 0x4d7   : > { %v3261_v5 = vpop.permute.xlu1 %3260  ;;  %3536 = vrot.lane.b32.xlu0 %v2557_v29, %s4815_s11  ;;  %v3796_v29 = vsel %vm1752_vm4, %v3764_v24, %v7410_v11 }
 0x4d8   : > { %v3858_v34 = vsel %vm1818_vm6, %v3826_v61, %v3261_v5 }
 0x4d9   : > { %3664 = vrot.lane.b32.xlu1 %v2684_v41, %s4816_s22  ;;  %v3135_v30 = vpop.permute.xlu0 %3134 }
 0x4da   : > { %v3827_v21 = vsel %vm1785_vm5, %v3795_v46, %v3135_v30 }
 0x4db   : > { %v3263_v62 = vpop.permute.xlu1 %3262  ;;  %3538 = vrot.lane.b32.xlu0 %v2653_v4, %s4815_s11 }
 0x4dc   : > { %v3859_v48 = vsel %vm1818_vm6, %v3827_v21, %v3263_v62 }
 0x4dd   : > { %3284 = vrot.lane.b32.xlu1 %v2684_v41, %s4813_s9  ;;  %v3643_v27 = vpop.permute.xlu0 %3642  ;;  %v8748_v41 = vld [vmem:[#allocation44_spill] sm:$0xff] }
 0x4de   : > { %v3953_v42 = vsel %vm1917_vm9, %v3921_v56, %v3643_v27  ;;  %v3733_v30 = vsel %vm285_vm0, %v7133_v6, %v8748_v41 }
 0x4df   : > { %v3391_v3 = vpop.permute.xlu1 %3390  ;;  %3158 = vrot.lane.b32.xlu0 %v2653_v4, %s4812_s8  ;;  %4701 = vmatmul.mubr.msk.f32.gmra.mxu1 %vm1962_vm10, %v3953_v42  ;;  %v3765_v62 = vsel %vm1719_vm3, %v3733_v30, %v8749_v28 }
 0x4e0   : > { %v3891_v50 = vsel %vm1851_vm7, %v3859_v48, %v3391_v3  ;;  %v3797_v56 = vsel %vm1752_vm4, %v3765_v62, %v8750_v57  ;;  %v2688_v3 = vld [vmem:[#allocation3 + $0x152] sm:$0xff]  ;;  %v8755_v48 = vld [vmem:[#allocation99_spill] sm:$0xff] }
 0x4e1   : > { %3286 = vrot.lane.b32.xlu1 %v2590_v45, %s4813_s9  ;;  %v3389_v43 = vpop.permute.xlu0 %3388 }
 0x4e2   : > { %v3890_v51 = vsel %vm1851_vm7, %v3858_v34, %v3389_v43  ;;  %v8752_v34 = vld [vmem:[#allocation51_spill] sm:$0xff] }
 0x4e3   : > { %v3137_v38 = vpop.permute.xlu1 %3136  ;;  %3666 = vrot.lane.b32.xlu0 %v2590_v45, %s4816_s22 }
 0x4e4   : > { %v3828_v54 = vsel %vm1785_vm5, %v3796_v29, %v3137_v38  ;;  %v8751_v38 = vld [vmem:[#allocation103_spill] sm:$0xff] }
 0x4e5   : > { %3414 = vrot.lane.b32.xlu1 %v2623_v47, %s4814_s10  ;;  %v3517_v44 = vpop.permute.xlu0 %3516  ;;  %v3734_v47 = vsel %vm285_vm0, %v8752_v34, %v8751_v38  ;;  %v2629_v34 = vld [vmem:[#allocation3 + $0x188] sm:$0xff] }
 0x4e6   : > { %v3922_v15 = vsel %vm1884_vm8, %v3890_v51, %v3517_v44  ;;  %v2594_v51 = vld [vmem:[#allocation3 + $0x15a] sm:$0xff]  ;;  %v8753_v44 = vld [vmem:[#allocation92_spill] sm:$0xff] }
 0x4e7   : > { %v3645_v26 = vpop.permute.xlu1 %3644  ;;  %3412 = vrot.lane.b32.xlu0 %v2622_v31, %s4814_s10 }
 0x4e8   : > { %v3954_v16 = vsel %vm1917_vm9, %v3922_v15, %v3645_v26  ;;  %v3766_v15 = vsel %vm1719_vm3, %v3734_v47, %v8753_v44  ;;  %v8754_v26 = vld [vmem:[#allocation192_spill] sm:$0xff]  ;;  %v8763_v47 = vld [vmem:[#allocation134_spill] sm:$0xff] }
 0x4e9   : > { %3160 = vrot.lane.b32.xlu1 %v2559_v10, %s4812_s8  ;;  %v3519_v23 = vpop.permute.xlu0 %3518  ;;  %4703 = vmatprep.mubr.msk.f32.mxu1 %vm1962_vm10, %v3954_v16  ;;  %v3798_v16 = vsel %vm1752_vm4, %v3766_v15, %v8754_v26 }
 0x4ea   : > { %v3923_v22 = vsel %vm1884_vm8, %v3891_v50, %v3519_v23  ;;  %v2627_v23 = vld [vmem:[#allocation3 + $0x170] sm:$0xff] }
 0x4eb   : > { %v3265_v12 = vpop.permute.xlu1 %3264  ;;  %3540 = vrot.lane.b32.xlu0 %v2559_v10, %s4815_s11 }
 0x4ec   : > { %v3860_v20 = vsel %vm1818_vm6, %v3828_v54, %v3265_v12  ;;  %v2626_v12 = vld [vmem:[#allocation3 + $0x168] sm:$0xff] }
 0x4ed   : > { %3668 = vrot.lane.b32.xlu1 %v2686_v49, %s4816_s22  ;;  %v3139_v13 = vpop.permute.xlu0 %3138 }
 0x4ee   : > { %v3829_v42 = vsel %vm1785_vm5, %v3797_v56, %v3139_v13  ;;  %v2563_v13 = vld [vmem:[#allocation3 + $0x169] sm:$0xff] }
 0x4ef   : > { %v3267_v9 = vpop.permute.xlu1 %3266  ;;  %3542 = vrot.lane.b32.xlu0 %v2655_v32, %s4815_s11 }
 0x4f0   : > { %v3861_v33 = vsel %vm1818_vm6, %v3829_v42, %v3267_v9 }
 0x4f1   : > { %3288 = vrot.lane.b32.xlu1 %v2686_v49, %s4813_s9  ;;  %v3647_v40 = vpop.permute.xlu0 %3646 }
 0x4f2   : > { %v3955_v35 = vsel %vm1917_vm9, %v3923_v22, %v3647_v40  ;;  %v8756_v22 = vld [vmem:[#allocation107_spill] sm:$0xff] }
 0x4f3   : > { %v3395_v59 = vpop.permute.xlu1 %3394  ;;  %3162 = vrot.lane.b32.xlu0 %v2655_v32, %s4812_s8  ;;  %4704 = vmatmul.mubr.msk.f32.gmra.mxu1 %vm1962_vm10, %v3955_v35  ;;  %v4783_v32 = vld [vmem:[#allocation3 + $0xb0] sm:$0xff]  ;;  %v8757_v35 = vld [vmem:[#allocation171_spill] sm:$0xff] }
 0x4f4   : > { %v3893_v36 = vsel %vm1851_vm7, %v3861_v33, %v3395_v59  ;;  %v3735_v9 = vsel %vm285_vm0, %v4783_v32, %v8755_v48 }
 0x4f5   : > { %3290 = vrot.lane.b32.xlu1 %v2592_v18, %s4813_s9  ;;  %v3393_v14 = vpop.permute.xlu0 %3392  ;;  %v3767_v40 = vsel %vm1719_vm3, %v3735_v9, %v8756_v22  ;;  %v8766_v9 = vld [vmem:[#allocation69_spill] sm:$0xff] }
 0x4f6   : > { %v3892_v0 = vsel %vm1851_vm7, %v3860_v20, %v3393_v14  ;;  %v3799_v59 = vsel %vm1752_vm4, %v3767_v40, %v8757_v35  ;;  %v2659_v14 = vld [vmem:[#allocation3 + $0x171] sm:$0xff] }
 0x4f7   : > { %v3141_v1 = vpop.permute.xlu1 %3140  ;;  %3670 = vrot.lane.b32.xlu0 %v2592_v18, %s4816_s22  ;;  %v2690_v18 = vld [vmem:[#allocation3 + $0x16a] sm:$0xff] }
 0x4f8   : > { %v3830_v10 = vsel %vm1785_vm5, %v3798_v16, %v3141_v1 }
 0x4f9   : > { %3418 = vrot.lane.b32.xlu1 %v2625_v17, %s4814_s10  ;;  %v3521_v55 = vpop.permute.xlu0 %3520 }
 0x4fa   : > { %v3924_v7 = vsel %vm1884_vm8, %v3892_v0, %v3521_v55 }
 0x4fb   : > { %v3649_v5 = vpop.permute.xlu1 %3648  ;;  %3416 = vrot.lane.b32.xlu0 %v2624_v39, %s4814_s10  ;;  %v8758_v39 = vld [vmem:[#allocation48_spill] sm:$0xff] }
 0x4fc   : > { %v3956_v11 = vsel %vm1917_vm9, %v3924_v7, %v3649_v5  ;;  %v4784_v7 = vld [vmem:[#allocation3 + $0xc0] sm:$0xff] }
 0x4fd   : > { %3164 = vrot.lane.b32.xlu1 %v2561_v19, %s4812_s8  ;;  %v3523_v4 = vpop.permute.xlu0 %3522  ;;  %4706 = vmatprep.mubr.msk.f32.mxu1 %vm1962_vm10, %v3956_v11  ;;  %v3736_v5 = vsel %vm285_vm0, %v4784_v7, %v8758_v39  ;;  %v2596_v11 = vld [vmem:[#allocation3 + $0x172] sm:$0xff]  ;;  %v2663_v39 = vld [vmem:[#allocation3 + $0x1a1] sm:$0xff] }
 0x4fe   : > { %v3925_v58 = vsel %vm1884_vm8, %v3893_v36, %v3523_v4  ;;  %v8760_v4 = vld [vmem:[#allocation46_spill] sm:$0xff]  ;;  %v4785_v36 = vld [vmem:[#allocation3 + $0xc8] sm:$0xff] }
 0x4ff   : > { %v3269_v27 = vpop.permute.xlu1 %3268  ;;  %3544 = vrot.lane.b32.xlu0 %v2561_v19, %s4815_s11  ;;  %v8759_v19 = vld [vmem:[#allocation110_spill] sm:$0xff] }
 0x500   : > { %v3862_v52 = vsel %vm1818_vm6, %v3830_v10, %v3269_v27  ;;  %v3768_v41 = vsel %vm1719_vm3, %v3736_v5, %v8759_v19  ;;  %v2533_v27 = vld [vmem:[#allocation3 + $0x180] sm:$0xff] }
 0x501   : > { %3672 = vrot.lane.b32.xlu1 %v2688_v3, %s4816_s22  ;;  %v3143_v6 = vpop.permute.xlu0 %3142  ;;  %v3800_v28 = vsel %vm1752_vm4, %v3768_v41, %v8760_v4  ;;  %v8769_v5 = vld [vmem:[#allocation195_spill] sm:$0xff] }
 0x502   : > { %v3831_v8 = vsel %vm1785_vm5, %v3799_v59, %v3143_v6  ;;  %v2598_v59 = vld [vmem:[#allocation3 + $0x18a] sm:$0xff] }
 0x503   : > { %v3271_v45 = vpop.permute.xlu1 %3270  ;;  %3546 = vrot.lane.b32.xlu0 %v2657_v63, %s4815_s11 }
 0x504   : > { %v3863_v29 = vsel %vm1818_vm6, %v3831_v8, %v3271_v45  ;;  %v2660_v45 = vld [vmem:[#allocation3 + $0x181] sm:$0xff] }
 0x505   : > { %3292 = vrot.lane.b32.xlu1 %v2688_v3, %s4813_s9  ;;  %v3651_v43 = vpop.permute.xlu0 %3650 }
 0x506   : > { %v3957_v53 = vsel %vm1917_vm9, %v3925_v58, %v3651_v43  ;;  %v8761_v58 = vld [vmem:[#allocation47_spill] sm:$0xff] }
 0x507   : > { %v3399_v61 = vpop.permute.xlu1 %3398  ;;  %3166 = vrot.lane.b32.xlu0 %v2657_v63, %s4812_s8  ;;  %4707 = vmatmul.mubr.msk.f32.gmra.mxu1 %vm1962_vm10, %v3957_v53  ;;  %v3737_v43 = vsel %vm285_vm0, %v4785_v36, %v8761_v58  ;;  %v8771_v58 = vld [vmem:[#allocation132_spill] sm:$0xff] }
 0x508   : > { %v3895_v1 = vsel %vm1851_vm7, %v3863_v29, %v3399_v61  ;;  %v8762_v61 = vld [vmem:[#allocation166_spill] sm:$0xff] }
 0x509   : > { %3294 = vrot.lane.b32.xlu1 %v2594_v51, %s4813_s9  ;;  %v3397_v31 = vpop.permute.xlu0 %3396  ;;  %v3769_v38 = vsel %vm1719_vm3, %v3737_v43, %v8762_v61  ;;  %v8772_v61 = vld [vmem:[#allocation94_spill] sm:$0xff] }
 0x50a   : > { %v3894_v60 = vsel %vm1851_vm7, %v3862_v52, %v3397_v31 }
 0x50b   : > { %v3145_v37 = vpop.permute.xlu1 %3144  ;;  %3674 = vrot.lane.b32.xlu0 %v2594_v51, %s4816_s22  ;;  %v3801_v51 = vsel %vm1752_vm4, %v3769_v38, %v8763_v47 }
 0x50c   : > { %v3832_v62 = vsel %vm1785_vm5, %v3800_v28, %v3145_v37  ;;  %v2692_v37 = vld [vmem:[#allocation3 + $0x182] sm:$0xff] }
 0x50d   : > { %3422 = vrot.lane.b32.xlu1 %v2627_v23, %s4814_s10  ;;  %v3525_v25 = vpop.permute.xlu0 %3524  ;;  %v2695_v28 = vld [vmem:[#allocation3 + $0x1a2] sm:$0xff] }
 0x50e   : > { %v3926_v46 = vsel %vm1884_vm8, %v3894_v60, %v3525_v25  ;;  %v2661_v25 = vld [vmem:[#allocation3 + $0x189] sm:$0xff] }
 0x50f   : > { %v3653_v21 = vpop.permute.xlu1 %3652  ;;  %3420 = vrot.lane.b32.xlu0 %v2626_v12, %s4814_s10  ;;  %v4786_v12 = vld [vmem:[#allocation3 + $0xd8] sm:$0xff] }
 0x510   : > { %v3958_v49 = vsel %vm1917_vm9, %v3926_v46, %v3653_v21  ;;  %v8764_v21 = vld [vmem:[#allocation105_spill] sm:$0xff] }
 0x511   : > { %3168 = vrot.lane.b32.xlu1 %v2563_v13, %s4812_s8  ;;  %v3527_v50 = vpop.permute.xlu0 %3526  ;;  %4709 = vmatprep.mubr.msk.f32.mxu1 %vm1962_vm10, %v3958_v49  ;;  %v3738_v49 = vsel %vm285_vm0, %v4786_v12, %v8764_v21  ;;  %v8775_v12 = vld [vmem:[#allocation54_spill] sm:$0xff] }
 0x512   : > { %v3927_v20 = vsel %vm1884_vm8, %v3895_v1, %v3527_v50  ;;  %v4787_v1 = vld [vmem:[#allocation3 + $0xe0] sm:$0xff] }
 0x513   : > { %v3273_v2 = vpop.permute.xlu1 %3272  ;;  %3548 = vrot.lane.b32.xlu0 %v2563_v13, %s4815_s11  ;;  %v8765_v13 = vld [vmem:[#allocation169_spill] sm:$0xff] }
 0x514   : > { %v3864_v56 = vsel %vm1818_vm6, %v3832_v62, %v3273_v2  ;;  %v3770_v32 = vsel %vm1719_vm3, %v3738_v49, %v8765_v13 }
 0x515   : > { %3676 = vrot.lane.b32.xlu1 %v2690_v18, %s4816_s22  ;;  %v3147_v24 = vpop.permute.xlu0 %3146  ;;  %v3802_v50 = vsel %vm1752_vm4, %v3770_v32, %v8766_v9 }
 0x516   : > { %v3833_v15 = vsel %vm1785_vm5, %v3801_v51, %v3147_v24  ;;  %v2631_v24 = vld [vmem:[#allocation3 + $0x1a0] sm:$0xff] }
 0x517   : > { %v3275_v54 = vpop.permute.xlu1 %3274  ;;  %3550 = vrot.lane.b32.xlu0 %v2659_v14, %s4815_s11 }
 0x518   : > { %v3865_v26 = vsel %vm1818_vm6, %v3833_v15, %v3275_v54  ;;  %v2630_v54 = vld [vmem:[#allocation3 + $0x198] sm:$0xff] }
 0x519   : > { %3296 = vrot.lane.b32.xlu1 %v2690_v18, %s4813_s9  ;;  %v3655_v17 = vpop.permute.xlu0 %3654 }
 0x51a   : > { %v3959_v0 = vsel %vm1917_vm9, %v3927_v20, %v3655_v17  ;;  %v8767_v20 = vld [vmem:[#allocation102_spill] sm:$0xff] }
 0x51b   : > { %v3403_v55 = vpop.permute.xlu1 %3402  ;;  %3170 = vrot.lane.b32.xlu0 %v2659_v14, %s4812_s8  ;;  %4710 = vmatmul.mubr.msk.f32.gmra.mxu1 %vm1962_vm10, %v3959_v0  ;;  %v3739_v17 = vsel %vm285_vm0, %v4787_v1, %v8767_v20  ;;  %v8777_v1 = vld [vmem:[#allocation5_spill] sm:$0xff] }
 0x51c   : > { %v3897_v10 = vsel %vm1851_vm7, %v3865_v26, %v3403_v55  ;;  %v8768_v55 = vld [vmem:[#allocation129_spill] sm:$0xff] }
 0x51d   : > { %3298 = vrot.lane.b32.xlu1 %v2596_v11, %s4813_s9  ;;  %v3401_v30 = vpop.permute.xlu0 %3400  ;;  %v3771_v7 = vsel %vm1719_vm3, %v3739_v17, %v8768_v55  ;;  %v4790_v55 = vld [vmem:[#allocation3 + $0x108] sm:$0xff] }
 0x51e   : > { %v3896_v42 = vsel %vm1851_vm7, %v3864_v56, %v3401_v30  ;;  %v2662_v30 = vld [vmem:[#allocation3 + $0x199] sm:$0xff] }
 0x51f   : > { %v3149_v57 = vpop.permute.xlu1 %3148  ;;  %3678 = vrot.lane.b32.xlu0 %v2596_v11, %s4816_s22  ;;  %v3803_v11 = vsel %vm1752_vm4, %v3771_v7, %v8769_v5  ;;  %v8778_v7 = vld [vmem:[#allocation55_spill] sm:$0xff]  ;;  %v8779_v5 = vld [vmem:[#allocation193_spill] sm:$0xff] }
 0x520   : > { %v3834_v22 = vsel %vm1785_vm5, %v3802_v50, %v3149_v57 }
 0x521   : > { %3044 = vrot.lane.b32.xlu1 %v2533_v27, %s4811_s7  ;;  %v3529_v3 = vpop.permute.xlu0 %3528 }
 0x522   : > { %v3928_v6 = vsel %vm1884_vm8, %v3896_v42, %v3529_v3 }
 0x523   : > { %v3657_v63 = vpop.permute.xlu1 %3656  ;;  %3424 = vrot.lane.b32.xlu0 %v2533_v27, %s4814_s10  ;;  %v2694_v27 = vld [vmem:[#allocation3 + $0x19a] sm:$0xff] }
 0x524   : > { %v3960_v33 = vsel %vm1917_vm9, %v3928_v6, %v3657_v63 }
 0x525   : > { %3552 = vrot.lane.b32.xlu1 %v2660_v45, %s4815_s11  ;;  %v3531_v53 = vpop.permute.xlu0 %3530  ;;  %4712 = vmatprep.mubr.msk.f32.mxu1 %vm1962_vm10, %v3960_v33  ;;  %v4788_v33 = vld [vmem:[#allocation3 + $0xf0] sm:$0xff] }
 0x526   : > { %v3929_v52 = vsel %vm1884_vm8, %v3897_v10, %v3531_v53  ;;  %v4789_v10 = vld [vmem:[#allocation3 + $0xf8] sm:$0xff] }
 0x527   : > { %v3277_v44 = vpop.permute.xlu1 %3276  ;;  %3426 = vrot.lane.b32.xlu0 %v2629_v34, %s4814_s10 }
 0x528   : > { %v3866_v35 = vsel %vm1818_vm6, %v3834_v22, %v3277_v44 }
 0x529   : > { %3172 = vrot.lane.b32.xlu1 %v2660_v45, %s4812_s8  ;;  %v3151_v31 = vpop.permute.xlu0 %3150  ;;  %v8770_v45 = vld [vmem:[#allocation104_spill] sm:$0xff] }
 0x52a   : > { %v3835_v41 = vsel %vm1785_vm5, %v3803_v11, %v3151_v31  ;;  %v3740_v36 = vsel %vm285_vm0, %v4788_v33, %v8770_v45 }
 0x52b   : > { %v3279_v16 = vpop.permute.xlu1 %3278  ;;  %3046 = vrot.lane.b32.xlu0 %v2629_v34, %s4811_s7  ;;  %v3772_v43 = vsel %vm1719_vm3, %v3740_v36, %v8771_v58  ;;  %s4312_s7 = sld [smem:[#allocation4]]  ;;  %v8782_v36 = vld [vmem:[#allocation41_spill] sm:$0xff] }
 0x52c   : > { %v3867_v62 = vsel %vm1818_vm6, %v3835_v41, %v3279_v16  ;;  %v3804_v38 = vsel %vm1752_vm4, %v3772_v43, %v8772_v61  ;;  %v8780_v41 = vld [vmem:[#allocation111_spill] sm:$0xff] }
 0x52d   : > { %3680 = vrot.lane.b32.xlu1 %v2692_v37, %s4816_s22  ;;  %v3659_v23 = vpop.permute.xlu0 %3658  ;;  %v8783_v43 = vld [vmem:[#allocation71_spill] sm:$0xff] }
 0x52e   : > { %v3961_v60 = vsel %vm1917_vm9, %v3929_v52, %v3659_v23 }
 0x52f   : > { %v3407_v46 = vpop.permute.xlu1 %3406  ;;  %3554 = vrot.lane.b32.xlu0 %v2661_v25, %s4815_s11  ;;  %4713 = vmatmul.mubr.msk.f32.gmra.mxu1 %vm1962_vm10, %v3961_v60  ;;  %v7865_v60 = vld [vmem:[%s8172_s5] ss:$0 sm:$0xff] }
 0x530   : > { %v3899_v56 = vsel %vm1851_vm7, %v3867_v62, %v3407_v46 }
 0x531   : > { %3300 = vrot.lane.b32.xlu1 %v2692_v37, %s4813_s9  ;;  %v3405_v48 = vpop.permute.xlu0 %3404  ;;  %v8773_v37 = vld [vmem:[#allocation50_spill] sm:$0xff]  ;;  %v7871_v32 = vstv %s4312_s7 }
 0x532   : > { %v3898_v2 = vsel %vm1851_vm7, %v3866_v35, %v3405_v48  ;;  %v3741_v52 = vsel %vm285_vm0, %v4789_v10, %v8773_v37  ;;  %v8784_v37 = vld [vmem:[#allocation9_spill] sm:$0xff] }
 0x533   : > { %v3153_v40 = vpop.permute.xlu1 %3152  ;;  %3174 = vrot.lane.b32.xlu0 %v2661_v25, %s4812_s8  ;;  %v8774_v25 = vld [vmem:[#allocation190_spill] sm:$0xff] }
 0x534   : > { %v3836_v34 = vsel %vm1785_vm5, %v3804_v38, %v3153_v40  ;;  %v3773_v46 = vsel %vm1719_vm3, %v3741_v52, %v8774_v25 }
 0x535   : > { %3302 = vrot.lane.b32.xlu1 %v2598_v59, %s4813_s9  ;;  %v3533_v8 = vpop.permute.xlu0 %3532  ;;  %v3805_v21 = vsel %vm1752_vm4, %v3773_v46, %v8775_v12  ;;  %v8785_v12 = vld [vmem:[#allocation6_spill] sm:$0xff] }
 0x536   : > { %v3930_v18 = vsel %vm1884_vm8, %v3898_v2, %v3533_v8 }
 0x537   : > { %v3661_v14 = vpop.permute.xlu1 %3660  ;;  %3682 = vrot.lane.b32.xlu0 %v2598_v59, %s4816_s22 }
 0x538   : > { %v3962_v29 = vsel %vm1917_vm9, %v3930_v18, %v3661_v14  ;;  %v8776_v18 = vld [vmem:[#allocation7_spill] sm:$0xff] }
 0x539   : > { %3430 = vrot.lane.b32.xlu1 %v2631_v24, %s4814_s10  ;;  %v3535_v0 = vpop.permute.xlu0 %3534  ;;  %4715 = vmatprep.mubr.msk.f32.mxu1 %vm1962_vm10, %v3962_v29 }
 0x53a   : > { %v3931_v42 = vsel %vm1884_vm8, %v3899_v56, %v3535_v0 }
 0x53b   : > { %v3281_v19 = vpop.permute.xlu1 %3280  ;;  %3428 = vrot.lane.b32.xlu0 %v2630_v54, %s4814_s10 }
 0x53c   : > { %v3868_v51 = vsel %vm1818_vm6, %v3836_v34, %v3281_v19 }
 0x53d   : > { %3558 = vrot.lane.b32.xlu1 %v2663_v39, %s4815_s11  ;;  %v3155_v4 = vpop.permute.xlu0 %3154  ;;  %v3742_v39 = vsel %vm285_vm0, %v4790_v55, %v8778_v7 }
 0x53e   : > { %v3837_v48 = vsel %vm1785_vm5, %v3805_v21, %v3155_v4  ;;  %v3774_v11 = vsel %vm1719_vm3, %v3742_v39, %v8779_v5  ;;  %v8790_v39 = vld [vmem:[#allocation65_spill] sm:$0xff] }
 0x53f   : > { %v3283_v57 = vpop.permute.xlu1 %3282  ;;  %3556 = vrot.lane.b32.xlu0 %v2662_v30, %s4815_s11  ;;  %v3806_v30 = vsel %vm1752_vm4, %v3774_v11, %v8780_v41  ;;  %v8791_v11 = vld [vmem:[#allocation101_spill] sm:$0xff] }
 0x540   : > { %v3869_v59 = vsel %vm1818_vm6, %v3837_v48, %v3283_v57  ;;  %v4792_v48 = vld [vmem:[#allocation3 + $0x120] sm:$0xff] }
 0x541   : > { %3686 = vrot.lane.b32.xlu1 %v2695_v28, %s4816_s22  ;;  %v3663_v3 = vpop.permute.xlu0 %3662 }
 0x542   : > { %v3963_v6 = vsel %vm1917_vm9, %v3931_v42, %v3663_v3 }
 0x543   : > { %v3411_v63 = vpop.permute.xlu1 %3410  ;;  %3684 = vrot.lane.b32.xlu0 %v2694_v27, %s4816_s22  ;;  %4716 = vmatmul.mubr.msk.f32.gmra.mxu1 %vm1962_vm10, %v3963_v6  ;;  %v4791_v6 = vld [vmem:[#allocation3 + $0x110] sm:$0xff] }
 0x544   : > { %v3901_v8 = vsel %vm1851_vm7, %v3869_v59, %v3411_v63  ;;  %v8781_v63 = vld [vmem:[#allocation53_spill] sm:$0xff]  ;;  %v8788_v59 = vld [vmem:[#allocation170_spill] sm:$0xff] }
 0x545   : > { %v3409_v53 = vpop.permute.xlu0 %3408  ;;  %v3743_v33 = vsel %vm285_vm0, %v4791_v6, %v8781_v63  ;;  %v8792_v63 = vld [vmem:[#allocation11_spill] sm:$0xff] }
 0x546   : > { %v3900_v44 = vsel %vm1851_vm7, %v3868_v51, %v3409_v53  ;;  %v3775_v58 = vsel %vm1719_vm3, %v3743_v33, %v8782_v36 }
 0x547   : > { %v3157_v47 = vpop.permute.xlu1 %3156  ;;  %v3807_v53 = vsel %vm1752_vm4, %v3775_v58, %v8783_v43  ;;  %v8793_v43 = vld [vmem:[#allocation8_spill] sm:$0xff] }
 0x548   : > { %v3838_v4 = vsel %vm1785_vm5, %v3806_v30, %v3157_v47 }
 0x549   : > { %v3537_v15 = vpop.permute.xlu0 %3536 }
 0x54a   : > { %v3932_v31 = vsel %vm1884_vm8, %v3900_v44, %v3537_v15 }
 0x54b   : > { %v3665_v26 = vpop.permute.xlu1 %3664 }
 0x54c   : > { %v3964_v16 = vsel %vm1917_vm9, %v3932_v31, %v3665_v26 }
 0x54d   : > { %v3539_v23 = vpop.permute.xlu0 %3538  ;;  %4718 = vmatprep.mubr.msk.f32.mxu1 %vm1962_vm10, %v3964_v16 }
 0x54e   : > { %v3933_v29 = vsel %vm1884_vm8, %v3901_v8, %v3539_v23 }
 0x54f   : > { %v3285_v49 = vpop.permute.xlu1 %3284  ;;  %v4690_v13 = vpop.f32.mrf.mxu1 }
 0x550   : > { %v4159_v9 = vadd.f32 %v4690_v13, %v7865_v60  ;;  %v3870_v62 = vsel %vm1818_vm6, %v3838_v4, %v3285_v49 }
 0x551   : > { %v4153_v50 = vpop.f32.mrf.mxu1  ;;  %v3159_v22 = vpop.permute.xlu0 %3158 }
 0x552   : > { %v4315_v40 = vmul.f32 %v7871_v32, %v4159_v9  ;;  %v4154_v35 = vadd.f32 %v7865_v60, %v4153_v50  ;;  %v3839_v34 = vsel %vm1785_vm5, %v3807_v53, %v3159_v22  ;;  %v8786_v9 = vld [vmem:[#allocation57_spill] sm:$0xff] }
 0x553   : > { %v3287_v2 = vpop.permute.xlu1 %3286  ;;  %v3744_v50 = vsel %vm285_vm0, %v4792_v48, %v8786_v9  ;;  %v8787_v22 = vld [vmem:[#allocation49_spill] sm:$0xff] }
 0x554   : > { %v4347_v24 = vadd.f32 %v4315_v40, %v8776_v18  ;;  %v4314_v14 = vmul.f32 %v7871_v32, %v4154_v35  ;;  %v3871_v26 = vsel %vm1818_vm6, %v3839_v34, %v3287_v2  ;;  %v3776_v40 = vsel %vm1719_vm3, %v3744_v50, %v8787_v22  ;;  %v4794_v34 = vld [vmem:[#allocation3 + $0x138] sm:$0xff] }
 0x555   : > { %v3667_v54 = vpop.permute.xlu0 %3666  ;;  %v3808_v2 = vsel %vm1752_vm4, %v3776_v40, %v8788_v59  ;;  %v8798_v50 = vld [vmem:[#allocation90_spill] sm:$0xff] }
 0x556   : > { %4379 = vst.msk [vmem:[%s7883_s18 + $0x8] sm:$0xff] %vm285_vm0, %v4347_v24  ;;  %v4346_v20 = vadd.f32 %v4314_v14, %v8777_v1  ;;  %v3965_v17 = vsel %vm1917_vm9, %v3933_v29, %v3667_v54  ;;  %v8799_v40 = vld [vmem:[#allocation114_spill] sm:$0xff] }
 0x557   : > { %v3415_v0 = vpop.permute.xlu1 %3414  ;;  %4719 = vmatmul.mubr.msk.f32.gmra.mxu1 %vm1962_vm10, %v3965_v17  ;;  %v4793_v17 = vld [vmem:[#allocation3 + $0x128] sm:$0xff] }
 0x558   : > { %4378 = vst.msk [vmem:[%s7883_s18] sm:$0xff] %vm285_vm0, %v4346_v20  ;;  %v3903_v10 = vsel %vm1851_vm7, %v3871_v26, %v3415_v0  ;;  %v8789_v0 = vld [vmem:[#allocation106_spill] sm:$0xff]  ;;  %v8796_v26 = vld [vmem:[#allocation133_spill] sm:$0xff] }
 0x559   : > { %v3413_v19 = vpop.permute.xlu0 %3412  ;;  %v3745_v55 = vsel %vm285_vm0, %v4793_v17, %v8789_v0  ;;  %v8800_v0 = vld [vmem:[#allocation13_spill] sm:$0xff] }
 0x55a   : > { %v3902_v57 = vsel %vm1851_vm7, %v3870_v62, %v3413_v19  ;;  %v3777_v5 = vsel %vm1719_vm3, %v3745_v55, %v8790_v39 }
 0x55b   : > { %v3161_v28 = vpop.permute.xlu1 %3160  ;;  %v3809_v19 = vsel %vm1752_vm4, %v3777_v5, %v8791_v11  ;;  %v8801_v11 = vld [vmem:[#allocation10_spill] sm:$0xff] }
 0x55c   : > { %v3840_v8 = vsel %vm1785_vm5, %v3808_v2, %v3161_v28 }
 0x55d   : > { %v3541_v56 = vpop.permute.xlu0 %3540 }
 0x55e   : > { %v3934_v27 = vsel %vm1884_vm8, %v3902_v57, %v3541_v56 }
 0x55f   : > { %v3669_v42 = vpop.permute.xlu1 %3668 }
 0x560   : > { %v3966_v3 = vsel %vm1917_vm9, %v3934_v27, %v3669_v42 }
 0x561   : > { %v3543_v45 = vpop.permute.xlu0 %3542  ;;  %4721 = vmatprep.mubr.msk.f32.mxu1 %vm1962_vm10, %v3966_v3 }
 0x562   : > { %v3935_v25 = vsel %vm1884_vm8, %v3903_v10, %v3543_v45 }
 0x563   : > { %v3289_v61 = vpop.permute.xlu1 %3288  ;;  %v4693_v38 = vpop.f32.mrf.mxu1 }
 0x564   : > { %v4169_v47 = vadd.f32 %v4693_v38, %v7865_v60  ;;  %v3872_v24 = vsel %vm1818_vm6, %v3840_v8, %v3289_v61 }
 0x565   : > { %v4163_v51 = vpop.f32.mrf.mxu1  ;;  %v3163_v44 = vpop.permute.xlu0 %3162 }
 0x566   : > { %v4317_v15 = vmul.f32 %v7871_v32, %v4169_v47  ;;  %v4164_v31 = vadd.f32 %v7865_v60, %v4163_v51  ;;  %v3841_v4 = vsel %vm1785_vm5, %v3809_v19, %v3163_v44  ;;  %v8794_v47 = vld [vmem:[#allocation165_spill] sm:$0xff]  ;;  %v8795_v44 = vld [vmem:[#allocation67_spill] sm:$0xff] }
 0x567   : > { %v3291_v16 = vpop.permute.xlu1 %3290  ;;  %v3746_v51 = vsel %vm285_vm0, %v4794_v34, %v8794_v47 }
 0x568   : > { %v4349_v52 = vadd.f32 %v4317_v15, %v8784_v37  ;;  %v4316_v23 = vmul.f32 %v7871_v32, %v4164_v31  ;;  %v3873_v42 = vsel %vm1818_vm6, %v3841_v4, %v3291_v16  ;;  %v3778_v15 = vsel %vm1719_vm3, %v3746_v51, %v8795_v44  ;;  %v4797_v51 = vld [vmem:[#allocation3 + $0x158] sm:$0xff]  ;;  %v8805_v44 = vld [vmem:[#allocation128_spill] sm:$0xff] }
 0x569   : > { %v3671_v46 = vpop.permute.xlu0 %3670  ;;  %v3810_v16 = vsel %vm1752_vm4, %v3778_v15, %v8796_v26  ;;  %v3749_v15 = vsel %vm285_vm0, %v4797_v51, %v8805_v44 }
 0x56a   : > { %4381 = vst.msk [vmem:[%s7883_s18 + $0x18] sm:$0xff] %vm285_vm0, %v4349_v52  ;;  %v4348_v21 = vadd.f32 %v4316_v23, %v8785_v12  ;;  %v3967_v49 = vsel %vm1917_vm9, %v3935_v25, %v3671_v46 }
 0x56b   : > { %v3419_v13 = vpop.permute.xlu1 %3418  ;;  %4722 = vmatmul.mubr.msk.f32.gmra.mxu1 %vm1962_vm10, %v3967_v49  ;;  %v4795_v49 = vld [vmem:[#allocation3 + $0x140] sm:$0xff] }
 0x56c   : > { %4380 = vst.msk [vmem:[%s7883_s18 + $0x10] sm:$0xff] %vm285_vm0, %v4348_v21  ;;  %v3905_v6 = vsel %vm1851_vm7, %v3873_v42, %v3419_v13  ;;  %v8797_v13 = vld [vmem:[#allocation59_spill] sm:$0xff] }
 0x56d   : > { %v3417_v35 = vpop.permute.xlu0 %3416  ;;  %v3747_v48 = vsel %vm285_vm0, %v4795_v49, %v8797_v13 }
 0x56e   : > { %v3904_v14 = vsel %vm1851_vm7, %v3872_v24, %v3417_v35  ;;  %v3779_v22 = vsel %vm1719_vm3, %v3747_v48, %v8798_v50 }
 0x56f   : > { %v3165_v18 = vpop.permute.xlu1 %3164  ;;  %v3811_v35 = vsel %vm1752_vm4, %v3779_v22, %v8799_v40 }
 0x570   : > { %v3842_v10 = vsel %vm1785_vm5, %v3810_v16, %v3165_v18  ;;  %v8806_v16 = vld [vmem:[#allocation109_spill] sm:$0xff] }
 0x571   : > { %v3545_v29 = vpop.permute.xlu0 %3544 }
 0x572   : > { %v3936_v54 = vsel %vm1884_vm8, %v3904_v14, %v3545_v29 }
 0x573   : > { %v3673_v1 = vpop.permute.xlu1 %3672 }
 0x574   : > { %v3968_v20 = vsel %vm1917_vm9, %v3936_v54, %v3673_v1 }
 0x575   : > { %v3547_v7 = vpop.permute.xlu0 %3546  ;;  %4724 = vmatprep.mubr.msk.f32.mxu1 %vm1962_vm10, %v3968_v20 }
 0x576   : > { %v3937_v36 = vsel %vm1884_vm8, %v3905_v6, %v3547_v7 }
 0x577   : > { %v3293_v41 = vpop.permute.xlu1 %3292  ;;  %v4696_v30 = vpop.f32.mrf.mxu1 }
 0x578   : > { %v4179_v28 = vadd.f32 %v4696_v30, %v7865_v60  ;;  %v3874_v52 = vsel %vm1818_vm6, %v3842_v10, %v3293_v41  ;;  %v3781_v10 = vsel %vm1719_vm3, %v3749_v15, %v8806_v16 }
 0x579   : > { %v3167_v62 = vpop.permute.xlu0 %3166  ;;  %v4173_v57 = vpop.f32.mrf.mxu1 }
 0x57a   : > { %v4319_v56 = vmul.f32 %v7871_v32, %v4179_v28  ;;  %v4174_v27 = vadd.f32 %v7865_v60, %v4173_v57  ;;  %v3843_v8 = vsel %vm1785_vm5, %v3811_v35, %v3167_v62  ;;  %v4796_v28 = vld [vmem:[#allocation3 + $0x150] sm:$0xff] }
 0x57b   : > { %v3295_v3 = vpop.permute.xlu1 %3294  ;;  %v8802_v62 = vld [vmem:[#allocation189_spill] sm:$0xff] }
 0x57c   : > { %v4351_v33 = vadd.f32 %v4319_v56, %v8792_v63  ;;  %v4318_v45 = vmul.f32 %v7871_v32, %v4174_v27  ;;  %v3875_v1 = vsel %vm1818_vm6, %v3843_v8, %v3295_v3  ;;  %v3748_v57 = vsel %vm285_vm0, %v4796_v28, %v8802_v62  ;;  %v8803_v27 = vld [vmem:[#allocation96_spill] sm:$0xff]  ;;  %v8804_v3 = vld [vmem:[#allocation194_spill] sm:$0xff] }
 0x57d   : > { %v3675_v58 = vpop.permute.xlu0 %3674  ;;  %v3780_v42 = vsel %vm1719_vm3, %v3748_v57, %v8803_v27 }
 0x57e   : > { %4383 = vst.msk [vmem:[%s7883_s18 + $0x28] sm:$0xff] %vm285_vm0, %v4351_v33  ;;  %v4350_v53 = vadd.f32 %v4318_v45, %v8793_v43  ;;  %v3969_v61 = vsel %vm1917_vm9, %v3937_v36, %v3675_v58  ;;  %v3812_v6 = vsel %vm1752_vm4, %v3780_v42, %v8804_v3 }
 0x57f   : > { %v3423_v38 = vpop.permute.xlu1 %3422  ;;  %4725 = vmatmul.mubr.msk.f32.gmra.mxu1 %vm1962_vm10, %v3969_v61 }
 0x580   : > { %4382 = vst.msk [vmem:[%s7883_s18 + $0x20] sm:$0xff] %vm285_vm0, %v4350_v53  ;;  %v3907_v17 = vsel %vm1851_vm7, %v3875_v1, %v3423_v38  ;;  %v4799_v1 = vld [vmem:[#allocation3 + $0x168] sm:$0xff] }
 0x581   : > { %v3421_v31 = vpop.permute.xlu0 %3420 }
 0x582   : > { %v3906_v23 = vsel %vm1851_vm7, %v3874_v52, %v3421_v31 }
 0x583   : > { %v3169_v37 = vpop.permute.xlu1 %3168 }
 0x584   : > { %v3844_v33 = vsel %vm1785_vm5, %v3812_v6, %v3169_v37 }
 0x585   : > { %v3549_v25 = vpop.permute.xlu0 %3548 }
 0x586   : > { %v3938_v46 = vsel %vm1884_vm8, %v3906_v23, %v3549_v25  ;;  %v8807_v23 = vld [vmem:[#allocation173_spill] sm:$0xff] }
 0x587   : > { %v3677_v12 = vpop.permute.xlu1 %3676  ;;  %v3813_v25 = vsel %vm1752_vm4, %v3781_v10, %v8807_v23  ;;  %v8816_v10 = vld [vmem:[#allocation19_spill] sm:$0xff]  ;;  %v8817_v23 = vld [vmem:[#allocation16_spill] sm:$0xff] }
 0x588   : > { %v3970_v21 = vsel %vm1917_vm9, %v3938_v46, %v3677_v12 }
 0x589   : > { %v3551_v9 = vpop.permute.xlu0 %3550  ;;  %4727 = vmatprep.mubr.msk.f32.mxu1 %vm1962_vm10, %v3970_v21  ;;  %v8808_v21 = vld [vmem:[#allocation15_spill] sm:$0xff] }
 0x58a   : > { %v3939_v39 = vsel %vm1884_vm8, %v3907_v17, %v3551_v9  ;;  %v8809_v9 = vld [vmem:[#allocation12_spill] sm:$0xff] }
 0x58b   : > { %v3297_v59 = vpop.permute.xlu1 %3296  ;;  %v4699_v2 = vpop.f32.mrf.mxu1 }
 0x58c   : > { %v4189_v18 = vadd.f32 %v4699_v2, %v7865_v60  ;;  %v3876_v45 = vsel %vm1818_vm6, %v3844_v33, %v3297_v59 }
 0x58d   : > { %v3171_v24 = vpop.permute.xlu0 %3170  ;;  %v4183_v14 = vpop.f32.mrf.mxu1 }
 0x58e   : > { %v4321_v29 = vmul.f32 %v7871_v32, %v4189_v18  ;;  %v4184_v54 = vadd.f32 %v7865_v60, %v4183_v14  ;;  %v3845_v12 = vsel %vm1785_vm5, %v3813_v25, %v3171_v24  ;;  %v4798_v14 = vld [vmem:[#allocation3 + $0x170] sm:$0xff] }
 0x58f   : > { %v3299_v20 = vpop.permute.xlu1 %3298 }
 0x590   : > { %v4353_v55 = vadd.f32 %v4321_v29, %v8800_v0  ;;  %v4320_v7 = vmul.f32 %v7871_v32, %v4184_v54  ;;  %v3877_v22 = vsel %vm1818_vm6, %v3845_v12, %v3299_v20  ;;  %v8810_v29 = vld [vmem:[#allocation39_spill] sm:$0xff]  ;;  %v8812_v0 = vld [vmem:[#allocation168_spill] sm:$0xff] }
 0x591   : > { %v3679_v5 = vpop.permute.xlu0 %3678  ;;  %v3751_v54 = vsel %vm285_vm0, %v4798_v14, %v8810_v29  ;;  %v8811_v20 = vld [vmem:[#allocation191_spill] sm:$0xff] }
 0x592   : > { %4385 = vst.msk [vmem:[%s7883_s18 + $0x38] sm:$0xff] %vm285_vm0, %v4353_v55  ;;  %v4352_v19 = vadd.f32 %v4320_v7, %v8801_v11  ;;  %v3971_v41 = vsel %vm1917_vm9, %v3939_v39, %v3679_v5  ;;  %v3750_v17 = vsel %vm285_vm0, %v4799_v1, %v8811_v20  ;;  %v3783_v55 = vsel %vm1719_vm3, %v3751_v54, %v8812_v0  ;;  %v8813_v39 = vld [vmem:[#allocation112_spill] sm:$0xff] }
 0x593   : > { %v3045_v30 = vpop.permute.xlu1 %3044  ;;  %4728 = vmatmul.mubr.msk.f32.gmra.mxu1 %vm1962_vm10, %v3971_v41  ;;  %v3782_v5 = vsel %vm1719_vm3, %v3750_v17, %v8813_v39  ;;  %v8821_v54 = vld [vmem:[#allocation20_spill] sm:$0xff]  ;;  %v8822_v39 = vld [vmem:[#allocation25_spill] sm:$0xff] }
 0x594   : > { %4384 = vst.msk [vmem:[%s7883_s18 + $0x30] sm:$0xff] %vm285_vm0, %v4352_v19  ;;  %v3814_v19 = vsel %vm1752_vm4, %v3782_v5, %v3045_v30 }
 0x595   : > { %v3425_v4 = vpop.permute.xlu0 %3424 }
 0x596   : > { %v3908_v58 = vsel %vm1851_vm7, %v3876_v45, %v3425_v4 }
 0x597   : > { %v3553_v56 = vpop.permute.xlu1 %3552 }
 0x598   : > { %v3940_v53 = vsel %vm1884_vm8, %v3908_v58, %v3553_v56 }
 0x599   : > { %v3427_v63 = vpop.permute.xlu0 %3426 }
 0x59a   : > { %v3909_v35 = vsel %vm1851_vm7, %v3877_v22, %v3427_v63  ;;  %v8819_v22 = vld [vmem:[#allocation18_spill] sm:$0xff] }
 0x59b   : > { %v3173_v36 = vpop.permute.xlu1 %3172 }
 0x59c   : > { %v3846_v28 = vsel %vm1785_vm5, %v3814_v19, %v3173_v36  ;;  %v8823_v19 = vld [vmem:[#allocation22_spill] sm:$0xff] }
 0x59d   : > { %v3047_v43 = vpop.permute.xlu0 %3046 }
 0x59e   : > { %v3815_v11 = vsel %vm1752_vm4, %v3783_v55, %v3047_v43 }
 0x59f   : > { %v3681_v61 = vpop.permute.xlu1 %3680  ;;  %v4702_v38 = vpop.f32.mrf.mxu1 }
 0x5a0   : > { %v3972_v34 = vsel %vm1917_vm9, %v3940_v53, %v3681_v61  ;;  %v4199_v47 = vadd.f32 %v4702_v38, %v7865_v60  ;;  %v8814_v61 = vld [vmem:[#allocation17_spill] sm:$0xff] }
 0x5a1   : > { %v3555_v31 = vpop.permute.xlu0 %3554  ;;  %v4193_v26 = vpop.f32.mrf.mxu1  ;;  %4730 = vmatprep.mubr.msk.f32.mxu1 %vm1962_vm10, %v3972_v34 }
 0x5a2   : > { %v4323_v37 = vmul.f32 %v7871_v32, %v4199_v47  ;;  %v4194_v52 = vadd.f32 %v7865_v60, %v4193_v26  ;;  %v3941_v59 = vsel %vm1884_vm8, %v3909_v35, %v3555_v31  ;;  %v8815_v47 = vld [vmem:[#allocation14_spill] sm:$0xff] }
 0x5a3   : > { %v3301_v46 = vpop.permute.xlu1 %3300 }
 0x5a4   : > { %v4355_v49 = vadd.f32 %v4323_v37, %v8808_v21  ;;  %v4322_v13 = vmul.f32 %v7871_v32, %v4194_v52  ;;  %v3878_v62 = vsel %vm1818_vm6, %v3846_v28, %v3301_v46 }
 0x5a5   : > { %v3175_v48 = vpop.permute.xlu0 %3174 }
 0x5a6   : > { %4387 = vst.msk [vmem:[%s7883_s18 + $0x48] sm:$0xff] %vm285_vm0, %v4355_v49  ;;  %v4354_v50 = vadd.f32 %v4322_v13, %v8809_v9  ;;  %v3847_v41 = vsel %vm1785_vm5, %v3815_v11, %v3175_v48  ;;  %v8818_v48 = vld [vmem:[#allocation21_spill] sm:$0xff] }
 0x5a7   : > { %v3303_v40 = vpop.permute.xlu1 %3302 }
 0x5a8   : > { %4386 = vst.msk [vmem:[%s7883_s18 + $0x40] sm:$0xff] %vm285_vm0, %v4354_v50  ;;  %v3879_v56 = vsel %vm1818_vm6, %v3847_v41, %v3303_v40 }
 0x5a9   : > { %v3683_v2 = vpop.permute.xlu0 %3682 }
 0x5aa   : > { %v3973_v8 = vsel %vm1917_vm9, %v3941_v59, %v3683_v2 }
 0x5ab   : > { %v3431_v18 = vpop.permute.xlu1 %3430  ;;  %4731 = vmatmul.mubr.msk.f32.gmra.mxu1 %vm1962_vm10, %v3973_v8 }
 0x5ac   : > { %v3911_v6 = vsel %vm1851_vm7, %v3879_v56, %v3431_v18 }
 0x5ad   : > { %v3429_v24 = vpop.permute.xlu0 %3428 }
 0x5ae   : > { %v3910_v27 = vsel %vm1851_vm7, %v3878_v62, %v3429_v24  ;;  %v8820_v24 = vld [vmem:[#allocation23_spill] sm:$0xff] }
 0x5af   : > { %v3559_v7 = vpop.permute.xlu1 %3558 }
 0x5b0   : > { %v3943_v45 = vsel %vm1884_vm8, %v3911_v6, %v3559_v7  ;;  %v8825_v6 = vld [vmem:[#allocation24_spill] sm:$0xff] }
 0x5b1   : > { %v3557_v4 = vpop.permute.xlu0 %3556 }
 0x5b2   : > { %v3942_v30 = vsel %vm1884_vm8, %v3910_v27, %v3557_v4  ;;  %v8824_v27 = vld [vmem:[#allocation27_spill] sm:$0xff] }
 0x5b3   : > { %v4705_v57 = vpop.f32.mrf.mxu1  ;;  %v3687_v42 = vpop.permute.xlu1 %3686 }
 0x5b4   : > { %v4209_v3 = vadd.f32 %v4705_v57, %v7865_v60  ;;  %v3975_v53 = vsel %vm1917_vm9, %v3943_v45, %v3687_v42 }
 0x5b5   : > { %v3685_v63 = vpop.permute.xlu0 %3684  ;;  %v4203_v33 = vpop.f32.mrf.mxu1 }
 0x5b6   : > { %v4325_v36 = vmul.f32 %v7871_v32, %v4209_v3  ;;  %v3974_v58 = vsel %vm1917_vm9, %v3942_v30, %v3685_v63  ;;  %v4204_v43 = vadd.f32 %v7865_v60, %v4203_v33 }
 0x5b7   : > { %4733 = vmatprep.mubr.msk.f32.mxu1 %vm1962_vm10, %v3974_v58 }
 0x5b8   : > { %v4357_v38 = vadd.f32 %v4325_v36, %v8814_v61  ;;  %v4324_v34 = vmul.f32 %v7871_v32, %v4204_v43  ;;  %4734 = vmatmul.mubr.msk.f32.gmra.mxu1 %vm1962_vm10, %v3975_v53  ;;  %v8826_v43 = vld [vmem:[#allocation29_spill] sm:$0xff] }
 0x5ba   : > { %4389 = vst.msk [vmem:[%s7883_s18 + $0x58] sm:$0xff] %vm285_vm0, %v4357_v38  ;;  %v4356_v51 = vadd.f32 %v4324_v34, %v8815_v47  ;;  %v8827_v38 = vld [vmem:[#allocation26_spill] sm:$0xff] }
 0x5bc   : > { %4388 = vst.msk [vmem:[%s7883_s18 + $0x50] sm:$0xff] %vm285_vm0, %v4356_v51 }
 0x5c7   : > { %v4708_v44 = vpop.f32.mrf.mxu1 }
 0x5c8   : > { %v4219_v15 = vadd.f32 %v4708_v44, %v7865_v60 }
 0x5c9   : > { %v4213_v31 = vpop.f32.mrf.mxu1 }
 0x5ca   : > { %v4327_v26 = vmul.f32 %v7871_v32, %v4219_v15  ;;  %v4214_v16 = vadd.f32 %v7865_v60, %v4213_v31 }
 0x5cc   : > { %v4359_v37 = vadd.f32 %v4327_v26, %v8816_v10  ;;  %v4326_v52 = vmul.f32 %v7871_v32, %v4214_v16  ;;  %v8828_v26 = vld [vmem:[#allocation31_spill] sm:$0xff] }
 0x5ce   : > { %4391 = vst.msk [vmem:[%s7883_s18 + $0x68] sm:$0xff] %vm285_vm0, %v4359_v37  ;;  %v4358_v25 = vadd.f32 %v4326_v52, %v8817_v23  ;;  %v8829_v37 = vld [vmem:[#allocation28_spill] sm:$0xff] }
 0x5d0   : > { %4390 = vst.msk [vmem:[%s7883_s18 + $0x60] sm:$0xff] %vm285_vm0, %v4358_v25 }
 0x5db   : > { %v4711_v46 = vpop.f32.mrf.mxu1 }
 0x5dc   : > { %v4229_v12 = vadd.f32 %v4711_v46, %v7865_v60 }
 0x5dd   : > { %v4223_v21 = vpop.f32.mrf.mxu1 }
 0x5de   : > { %v4329_v49 = vmul.f32 %v7871_v32, %v4229_v12  ;;  %v4224_v13 = vadd.f32 %v7865_v60, %v4223_v21 }
 0x5e0   : > { %v4361_v9 = vadd.f32 %v4329_v49, %v8818_v48  ;;  %v4328_v50 = vmul.f32 %v7871_v32, %v4224_v13  ;;  %v8830_v49 = vld [vmem:[#allocation33_spill] sm:$0xff] }
 0x5e2   : > { %4393 = vst.msk [vmem:[%s7883_s18 + $0x78] sm:$0xff] %vm285_vm0, %v4361_v9  ;;  %v4360_v40 = vadd.f32 %v4328_v50, %v8819_v22  ;;  %v8831_v9 = vld [vmem:[#allocation30_spill] sm:$0xff] }
 0x5e4   : > { %4392 = vst.msk [vmem:[%s7883_s18 + $0x70] sm:$0xff] %vm285_vm0, %v4360_v40 }
 0x5ef   : > { %v4714_v35 = vpop.f32.mrf.mxu1 }
 0x5f0   : > { %v4239_v59 = vadd.f32 %v4714_v35, %v7865_v60 }
 0x5f1   : > { %v4233_v2 = vpop.f32.mrf.mxu1 }
 0x5f2   : > { %v4331_v8 = vmul.f32 %v7871_v32, %v4239_v59  ;;  %v4234_v18 = vadd.f32 %v7865_v60, %v4233_v2 }
 0x5f4   : > { %v4363_v14 = vadd.f32 %v4331_v8, %v8820_v24  ;;  %v4330_v29 = vmul.f32 %v7871_v32, %v4234_v18  ;;  %v8832_v8 = vld [vmem:[#allocation34_spill] sm:$0xff] }
 0x5f6   : > { %4395 = vst.msk [vmem:[%s7883_s18 + $0x88] sm:$0xff] %vm285_vm0, %v4363_v14  ;;  %v4362_v1 = vadd.f32 %v4330_v29, %v8821_v54  ;;  %v8833_v14 = vld [vmem:[#allocation32_spill] sm:$0xff] }
 0x5f8   : > { %4394 = vst.msk [vmem:[%s7883_s18 + $0x80] sm:$0xff] %vm285_vm0, %v4362_v1 }
 0x603   : > { %v4717_v20 = vpop.f32.mrf.mxu1 }
 0x604   : > { %v4249_v17 = vadd.f32 %v4717_v20, %v7865_v60 }
 0x605   : > { %v4243_v0 = vpop.f32.mrf.mxu1 }
 0x606   : > { %v4333_v55 = vmul.f32 %v7871_v32, %v4249_v17  ;;  %v4244_v7 = vadd.f32 %v7865_v60, %v4243_v0 }
 0x608   : > { %v4365_v5 = vadd.f32 %v4333_v55, %v8822_v39  ;;  %v4332_v11 = vmul.f32 %v7871_v32, %v4244_v7  ;;  %v8834_v55 = vld [vmem:[#allocation36_spill] sm:$0xff] }
 0x60a   : > { %4397 = vst.msk [vmem:[%s7883_s18 + $0x98] sm:$0xff] %vm285_vm0, %v4365_v5  ;;  %v4364_v41 = vadd.f32 %v4332_v11, %v8823_v19  ;;  %v8835_v5 = vld [vmem:[#allocation35_spill] sm:$0xff] }
 0x60c   : > { %4396 = vst.msk [vmem:[%s7883_s18 + $0x90] sm:$0xff] %vm285_vm0, %v4364_v41 }
 0x617   : > { %v4720_v4 = vpop.f32.mrf.mxu1 }
 0x618   : > { %v4259_v28 = vadd.f32 %v4720_v4, %v7865_v60 }
 0x619   : > { %v4253_v62 = vpop.f32.mrf.mxu1 }
 0x61a   : > { %v4335_v57 = vmul.f32 %v7871_v32, %v4259_v28  ;;  %v4254_v56 = vadd.f32 %v7865_v60, %v4253_v62 }
 0x61c   : > { %v4367_v42 = vadd.f32 %v4335_v57, %v8824_v27  ;;  %v4334_v3 = vmul.f32 %v7871_v32, %v4254_v56 }
 0x61e   : > { %4399 = vst.msk [vmem:[%s7883_s18 + $0xa8] sm:$0xff] %vm285_vm0, %v4367_v42  ;;  %v4366_v30 = vadd.f32 %v4334_v3, %v8825_v6 }
 0x620   : > { %4398 = vst.msk [vmem:[%s7883_s18 + $0xa0] sm:$0xff] %vm285_vm0, %v4366_v30 }
 0x62b   : > { %v4723_v63 = vpop.f32.mrf.mxu1 }
 0x62c   : > { %v4269_v33 = vadd.f32 %v4723_v63, %v7865_v60 }
 0x62d   : > { %v4263_v45 = vpop.f32.mrf.mxu1 }
 0x62e   : > { %v4337_v36 = vmul.f32 %v7871_v32, %v4269_v33  ;;  %v4264_v58 = vadd.f32 %v7865_v60, %v4263_v45 }
 0x630   : > { %v4369_v53 = vadd.f32 %v4337_v36, %v8826_v43  ;;  %v4336_v61 = vmul.f32 %v7871_v32, %v4264_v58 }
 0x632   : > { %4401 = vst.msk [vmem:[%s7883_s18 + $0xb8] sm:$0xff] %vm285_vm0, %v4369_v53  ;;  %v4368_v34 = vadd.f32 %v4336_v61, %v8827_v38 }
 0x634   : > { %4400 = vst.msk [vmem:[%s7883_s18 + $0xb0] sm:$0xff] %vm285_vm0, %v4368_v34 }
 0x63f   : > { %v4726_v47 = vpop.f32.mrf.mxu1 }
 0x640   : > { %v4279_v51 = vadd.f32 %v4726_v47, %v7865_v60 }
 0x641   : > { %v4273_v44 = vpop.f32.mrf.mxu1 }
 0x642   : > { %v4339_v15 = vmul.f32 %v7871_v32, %v4279_v51  ;;  %v4274_v31 = vadd.f32 %v7865_v60, %v4273_v44 }
 0x644   : > { %v4371_v16 = vadd.f32 %v4339_v15, %v8828_v26  ;;  %v4338_v10 = vmul.f32 %v7871_v32, %v4274_v31 }
 0x646   : > { %4403 = vst.msk [vmem:[%s7883_s18 + $0xc8] sm:$0xff] %vm285_vm0, %v4371_v16  ;;  %v4370_v52 = vadd.f32 %v4338_v10, %v8829_v37 }
 0x648   : > { %4402 = vst.msk [vmem:[%s7883_s18 + $0xc0] sm:$0xff] %vm285_vm0, %v4370_v52 }
 0x653   : > { %v4729_v23 = vpop.f32.mrf.mxu1 }
 0x654   : > { %v4289_v25 = vadd.f32 %v4729_v23, %v7865_v60 }
 0x655   : > { %v4283_v46 = vpop.f32.mrf.mxu1 }
 0x656   : > { %v4341_v12 = vmul.f32 %v7871_v32, %v4289_v25  ;;  %v4284_v21 = vadd.f32 %v7865_v60, %v4283_v46 }
 0x658   : > { %v4373_v13 = vadd.f32 %v4341_v12, %v8830_v49  ;;  %v4340_v48 = vmul.f32 %v7871_v32, %v4284_v21 }
 0x65a   : > { %4405 = vst.msk [vmem:[%s7883_s18 + $0xd8] sm:$0xff] %vm285_vm0, %v4373_v13  ;;  %v4372_v50 = vadd.f32 %v4340_v48, %v8831_v9 }
 0x65c   : > { %4404 = vst.msk [vmem:[%s7883_s18 + $0xd0] sm:$0xff] %vm285_vm0, %v4372_v50 }
 0x66b   : > { %v4732_v22 = vpop.f32.mrf.mxu1 }
 0x66c   : > { %v4299_v40 = vadd.f32 %v4732_v22, %v7865_v60 }
 0x66d   : > { %v4293_v35 = vpop.f32.mrf.mxu1 }
 0x66e   : > { %v4343_v59 = vmul.f32 %v7871_v32, %v4299_v40  ;;  %v4294_v2 = vadd.f32 %v7865_v60, %v4293_v35 }
 0x670   : > { %v4375_v18 = vadd.f32 %v4343_v59, %v8832_v8  ;;  %v4342_v24 = vmul.f32 %v7871_v32, %v4294_v2 }
 0x672   : > { %4407 = vst.msk [vmem:[%s7883_s18 + $0xe8] sm:$0xff] %vm285_vm0, %v4375_v18  ;;  %v4374_v29 = vadd.f32 %v4342_v24, %v8833_v14 }
 0x674   : > { %4406 = vst.msk [vmem:[%s7883_s18 + $0xe0] sm:$0xff] %vm285_vm0, %v4374_v29 }
 0x678   : > { %v4735_v54 = vpop.f32.mrf.mxu1 }
 0x679   : > { %v4309_v1 = vadd.f32 %v4735_v54, %v7865_v60 }
 0x67a   : > { %v4303_v20 = vpop.f32.mrf.mxu1 }
 0x67b   : > { %v4345_v17 = vmul.f32 %v7871_v32, %v4309_v1  ;;  %v4304_v0 = vadd.f32 %v7865_v60, %v4303_v20 }
 0x67d   : > { %v4377_v7 = vadd.f32 %v4345_v17, %v8834_v55  ;;  %v4344_v39 = vmul.f32 %v7871_v32, %v4304_v0 }
 0x67f   : > { %4409 = vst.msk [vmem:[%s7883_s18 + $0xf8] sm:$0xff] %vm285_vm0, %v4377_v7  ;;  %v4376_v11 = vadd.f32 %v4344_v39, %v8835_v5 }
 0x681   : > { %4408 = vst.msk [vmem:[%s7883_s18 + $0xf0] sm:$0xff] %vm285_vm0, %v4376_v11 }
 0x682 PF: > { %s17_s23 = sadd.s32 1, %s4806_s23  }
 0x683   : > { %p14_p4 = scmp.ge.s32.totalorder %s17_s23, 4  }
 0x685   :  { %16 = sbr.rel (!%p14_p4) target bundleno = 2 (0x2), region = 78 }

</bundles_post_ra>
